<compile_context>
chip_gen: v7x
topology: tpu7x:2x2x1
jax: 0.10.0
libtpu: 0.0.40
codegen_flags: <defaults>
</compile_context>

<pallas_src>
import math
import numpy as np
import jax
import jax.numpy as jnp
from jax import lax
from jax.experimental import pallas as pl
from jax.experimental.pallas import tpu as pltpu


def _round_up(x, m):
    return (x + m - 1) // m * m


def _cdiv(a, b):
    return -(-a // b)


# ---------------------------------------------------------------------------
# Kernel 1: conv encoder (im2col matmuls, bf16) + fused GRU input projection
#   Conv2d(3,16,2) -> ReLU -> MaxPool2 -> Conv2d(16,32,2) -> ReLU
#   -> Conv2d(32,64,2) -> ReLU -> [feat | dir | act | 0] @ W_ih(256,3H) + b_ih
# ---------------------------------------------------------------------------
def make_encode_kernel(obs_dim):
    h0, w0 = obs_dim
    h1, w1 = h0 - 1, w0 - 1          # conv1 (2x2, VALID)
    hp, wp = h1 // 2, w1 // 2        # maxpool (2x2, stride 2)
    h2, w2 = hp - 1, wp - 1          # conv2
    h3, w3 = h2 - 1, w2 - 1          # conv3
    # TODO(synk): generalise the fused conv kernel to final spatial maps > 1x1.
    assert h3 == 1 and w3 == 1, "encoder kernel specialised to obs_dim=(7, 7)"
    n_pos1 = h1 * w1                 # 36 for obs_dim=(7,7)

    def kernel(pat_ref, da_ref,
               w1_ref, b1_ref, w2_ref, b2_ref, w3_ref, b3_ref,
               wih_ref, bih_ref, gi_ref):
        tn = pat_ref.shape[1]                      # rows (time*batch) per tile
        k1 = pat_ref.shape[2]                      # 2*2*3 = 12

        def rows(y, p):                            # rows of spatial position p
            return y[p * tn:(p + 1) * tn]

        # conv1: one im2col matmul over all h1*w1 positions, M = n_pos1*tn
        xp = pat_ref[...].reshape(n_pos1 * tn, k1)                 # bf16
        y1 = jnp.maximum(
            jnp.dot(xp, w1_ref[...], preferred_element_type=jnp.float32)
            + b1_ref[...], 0.0).astype(jnp.bfloat16)               # (n_pos1*tn, 16)

        # maxpool 2x2, stride 2  -> hp x wp map of (tn, 16) tiles
        # TODO(synk): lane-densify (block-diag conv1 packing) so these
        #             intermediates use full 128-lane vregs.
        pool = {}
        for i in range(hp):
            for j in range(wp):
                p00 = rows(y1, (2 * i) * w1 + 2 * j)
                p01 = rows(y1, (2 * i) * w1 + 2 * j + 1)
                p10 = rows(y1, (2 * i + 1) * w1 + 2 * j)
                p11 = rows(y1, (2 * i + 1) * w1 + 2 * j + 1)
                pool[(i, j)] = jnp.maximum(jnp.maximum(p00, p01),
                                           jnp.maximum(p10, p11))

        # conv2: im2col (concat 4 taps along K=64), all h2*w2 positions, one matmul
        x2 = jnp.concatenate(
            [jnp.concatenate([pool[(i, j)], pool[(i, j + 1)],
                              pool[(i + 1, j)], pool[(i + 1, j + 1)]], axis=-1)
             for i in range(h2) for j in range(w2)], axis=0)       # (h2*w2*tn, 64)
        y2 = jnp.maximum(
            jnp.dot(x2, w2_ref[...], preferred_element_type=jnp.float32)
            + b2_ref[...], 0.0).astype(jnp.bfloat16)               # (h2*w2*tn, 32)

        # conv3: single output position, K = 4*32 = 128
        x3 = jnp.concatenate([rows(y2, k) for k in range(h2 * w2)], axis=-1)
        feat = jnp.maximum(
            jnp.dot(x3, w3_ref[...], preferred_element_type=jnp.float32)
            + b3_ref[...], 0.0).astype(jnp.bfloat16)               # (tn, 64)

        # fused GRU input projection, single K=256 matmul:
        # xin = [feat(64) | dir(50) | act(100) | zeros(42)],  W_ih packed to (256, 3H)
        xin = jnp.concatenate([feat, da_ref[...]], axis=-1)        # (tn, 256) bf16
        gi_ref[...] = (
            jnp.dot(xin, wih_ref[...], preferred_element_type=jnp.float32)
            + bih_ref[...]).astype(gi_ref.dtype)                   # (tn, 3H) bf16

    return kernel


# ---------------------------------------------------------------------------
# Kernel 2: GRU recurrence, time-tiled grid + optional batch-parallel grid.
#           gi already contains x @ W_ih + b_ih; only h @ W_hh remains here.
# ---------------------------------------------------------------------------
def gru_kernel(gi_ref, lens_ref, whh_ref, bhh_ref, out_ref, h_ref):
    t_blk = pl.program_id(1)
    Tt = gi_ref.shape[0]                                 # time steps this block
    Bt = gi_ref.shape[1]                                 # batch rows this block
    H = whh_ref.shape[0]

    @pl.when(t_blk == 0)
    def _():
        h_ref[...] = jnp.zeros_like(h_ref)

    whh = whh_ref[...]                                   # bf16, VMEM-resident
    bhh = jnp.broadcast_to(bhh_ref[...], (Bt, 3 * H))    # hoisted broadcast, f32
    lens = lens_ref[...]                                 # (Bt, 1) int32
    t0 = t_blk * Tt

    def step(i, h):
        gi = gi_ref[i].astype(jnp.float32)               # (Bt, 3H)
        gh = jnp.dot(h.astype(jnp.bfloat16), whh,
                     preferred_element_type=jnp.float32) + bhh
        r = jax.nn.sigmoid(gi[:, :H] + gh[:, :H])
        z = jax.nn.sigmoid(gi[:, H:2 * H] + gh[:, H:2 * H])
        n = jnp.tanh(gi[:, 2 * H:] + r * gh[:, 2 * H:])
        h_new = (1.0 - z) * n + z * h
        # pack_padded_sequence semantics: stop updating once t >= length
        return jnp.where(lens > (t0 + i), h_new, h)

    h_ref[...] = lax.fori_loop(0, Tt, step, h_ref[...])

    @pl.when(t_blk == pl.num_programs(1) - 1)
    def _():
        out_ref[...] = h_ref[...]

    # TODO(synk): for tiny batches, hold W_hh tiles resident across steps via
    #             pltpu.matmul_push_rhs to amortize weight streaming.


# ---------------------------------------------------------------------------
# Wrapper (layout glue: time-major packing, im2col patches, gathers, padding)
# ---------------------------------------------------------------------------
def demonstration_encoder_forward(params, obs, dirs, acts, obs_lens, obs_dim=(7, 7)):
    B, T = obs.shape[:2]
    h0, w0 = obs_dim
    h1, w1 = h0 - 1, w0 - 1
    Hd = params["whh"].shape[0]
    obs_hidden = 64
    dir_dim = params["dir_emb"].shape[1]
    act_dim = params["act_emb"].shape[1]
    K_IN = 256                                    # padded fused-projection K
    pad_k = K_IN - (obs_hidden + dir_dim + act_dim)

    # --- padded time-major layout --------------------------------------------
    B_pad = _round_up(B, 8)
    n_tblk = _cdiv(_round_up(T, 8), 128)          # GRU time-chunks of <=~128 steps
    T_TILE = _round_up(_cdiv(T, n_tblk), 8)
    T_pad = T_TILE * n_tblk
    Np = T_pad * B_pad                            # flattened (t, b) rows

    # transpose/pad the SMALL raw inputs (instead of the big gi later)
    obs_tb = jnp.transpose(obs, (1, 0, 2, 3, 4)).astype(jnp.bfloat16)
    obs_tb = jnp.pad(obs_tb, ((0, T_pad - T), (0, B_pad - B),
                              (0, 0), (0, 0), (0, 0)))
    dirs_tb = jnp.pad(jnp.transpose(dirs), ((0, T_pad - T), (0, B_pad - B)))
    acts_tb = jnp.pad(jnp.transpose(acts), ((0, T_pad - T), (0, B_pad - B)))

    # NCHW -> NHWC, conv1 im2col patches: (h1*w1, Np, 12), feature order (di,dj,c)
    x = obs_tb.reshape(Np, 3, h0, w0).transpose(0, 2, 3, 1)
    taps = jnp.stack([x[:, di:di + h1, dj:dj + w1, :]
                      for di in range(2) for dj in range(2)], axis=3)  # (Np,h1,w1,4,3)
    patches = taps.reshape(Np, h1 * w1, 12).transpose(1, 0, 2)          # (h1*w1,Np,12)

    # Embedding lookups + lane-pack [dir | act | zeros] for the fused projection
    dirs_enc = jnp.take(params["dir_emb"].astype(jnp.bfloat16),
                        dirs_tb.reshape((Np,)), axis=0)                 # (Np, 50)
    acts_enc = jnp.take(params["act_emb"].astype(jnp.bfloat16),
                        acts_tb.reshape((Np,)), axis=0)                 # (Np, 100)
    da = jnp.concatenate(
        [dirs_enc, acts_enc, jnp.zeros((Np, pad_k), jnp.bfloat16)], axis=-1)

    # bf16 weights; f32 biases (added after f32-accumulating dots)
    w1f = params["w1"].reshape(12, 16).astype(jnp.bfloat16)
    w2f = params["w2"].reshape(64, 32).astype(jnp.bfloat16)
    w3f = params["w3"].reshape(128, 64).astype(jnp.bfloat16)
    wih_p = (jnp.zeros((K_IN, 3 * Hd), jnp.float32)
             .at[:params["wih"].shape[0]].set(params["wih"])
             .astype(jnp.bfloat16))                                     # (256, 3H)
    whh_b = params["whh"].astype(jnp.bfloat16)

    # Kernel-1 row tile: multiple of 16 (bf16 sublanes), divides Np, <= 256,
    # and keeps >= 2 grid tiles so v7x megacore can split the encode stage.
    # TODO(synk): allow TN1 up to 512 on v6e/v5e (128 MiB VMEM).
    TN1 = math.gcd(Np, 256)
    if Np // TN1 == 1 and TN1 >= 32:
        TN1 //= 2

    encode_kernel = make_encode_kernel(obs_dim)
    gi = pl.pallas_call(
        encode_kernel,
        out_shape=jax.ShapeDtypeStruct((Np, 3 * Hd), jnp.bfloat16),
        grid_spec=pltpu.PrefetchScalarGridSpec(
            num_scalar_prefetch=0,
            grid=(Np // TN1,),
            in_specs=[
                pl.BlockSpec((h1 * w1, TN1, 12), lambda n: (0, n, 0)),  # patches
                pl.BlockSpec((TN1, da.shape[1]), lambda n: (n, 0)),     # dir|act|0
                pl.BlockSpec((12, 16), lambda n: (0, 0)),               # w1
                pl.BlockSpec((1, 16), lambda n: (0, 0)),                # b1
                pl.BlockSpec((64, 32), lambda n: (0, 0)),               # w2
                pl.BlockSpec((1, 32), lambda n: (0, 0)),                # b2
                pl.BlockSpec((128, 64), lambda n: (0, 0)),              # w3
                pl.BlockSpec((1, 64), lambda n: (0, 0)),                # b3
                pl.BlockSpec((K_IN, 3 * Hd), lambda n: (0, 0)),         # packed W_ih
                pl.BlockSpec((1, 3 * Hd), lambda n: (0, 0)),            # b_ih
            ],
            out_specs=pl.BlockSpec((TN1, 3 * Hd), lambda n: (n, 0)),
        ),
        compiler_params=pltpu.CompilerParams(dimension_semantics=("parallel",)),
    )(patches, da, w1f, params["b1"], w2f, params["b2"], w3f, params["b3"],
      wih_p, params["bih"])

    # Time-major gi is already the memory layout: free reshape, no transpose.
    gi_tb = gi.reshape(T_pad, B_pad, 3 * Hd)

    lens = jnp.pad(obs_lens.astype(jnp.int32).reshape(B, 1),
                   ((0, B_pad - B), (0, 0)))

    # Batch-parallel GRU blocks (v7x megacore) when the padded batch allows it.
    if B_pad >= 32 and (B_pad // 2) % 16 == 0:
        B_TILE = B_pad // 2
    else:
        B_TILE = B_pad

    h = pl.pallas_call(
        gru_kernel,
        out_shape=jax.ShapeDtypeStruct((B_pad, Hd), jnp.float32),
        grid_spec=pltpu.PrefetchScalarGridSpec(
            num_scalar_prefetch=0,
            grid=(B_pad // B_TILE, T_pad // T_TILE),
            in_specs=[
                pl.BlockSpec((T_TILE, B_TILE, 3 * Hd), lambda b, t: (t, b, 0)),
                pl.BlockSpec((B_TILE, 1), lambda b, t: (b, 0)),
                pl.BlockSpec((Hd, 3 * Hd), lambda b, t: (0, 0)),
                pl.BlockSpec((1, 3 * Hd), lambda b, t: (0, 0)),
            ],
            out_specs=pl.BlockSpec((B_TILE, Hd), lambda b, t: (b, 0)),
            scratch_shapes=[pltpu.VMEM((B_TILE, Hd), jnp.float32)],
        ),
        compiler_params=pltpu.CompilerParams(
            dimension_semantics=("parallel", "arbitrary")),
    )(gi_tb, lens, whh_b, params["bhh"])
    return h[:B]                                                 # (B, hidden_dim)


# ---------------------------------------------------------------------------
# Deterministic parameter initialization (shapes from the module __init__)
# ---------------------------------------------------------------------------
def init_params(key, n_dirs, n_acts, dir_dim=50, act_dim=100, hidden_dim=512,
                obs_hidden_dim=64):
    ks = jax.random.split(key, 12)

    def u(k, shape, scale):
        return jax.random.uniform(k, shape, jnp.float32, -scale, scale)

    input_dim = obs_hidden_dim + dir_dim + act_dim
    sg = 1.0 / math.sqrt(hidden_dim)
    params = {
        # conv weights stored as (kh, kw, Cin, Cout)
        "w1": u(ks[0], (2, 2, 3, 16), 1 / math.sqrt(3 * 4)),
        "b1": u(ks[1], (1, 16), 1 / math.sqrt(3 * 4)),
        "w2": u(ks[2], (2, 2, 16, 32), 1 / math.sqrt(16 * 4)),
        "b2": u(ks[3], (1, 32), 1 / math.sqrt(16 * 4)),
        "w3": u(ks[4], (2, 2, 32, 64), 1 / math.sqrt(32 * 4)),
        "b3": u(ks[5], (1, 64), 1 / math.sqrt(32 * 4)),
        # embeddings with padding_idx=0 -> zero row
        "dir_emb": jax.random.normal(ks[6], (n_dirs, dir_dim), jnp.float32).at[0].set(0.0),
        "act_emb": jax.random.normal(ks[7], (n_acts, act_dim), jnp.float32).at[0].set(0.0),
        # GRU weights (pre-transposed; gate order r, z, n; wih == torch weight_ih_l0.T)
        "wih": u(ks[8], (input_dim, 3 * hidden_dim), sg),
        "whh": u(ks[9], (hidden_dim, 3 * hidden_dim), sg),
        "bih": u(ks[10], (1, 3 * hidden_dim), sg),
        "bhh": u(ks[11], (1, 3 * hidden_dim), sg),
    }
    return params


# ---------------------------------------------------------------------------
# Pure-JAX reference (f32, for correctness check)
# ---------------------------------------------------------------------------
def reference_forward(params, obs, dirs, acts, obs_lens, obs_dim=(7, 7)):
    B, T = obs.shape[:2]
    x = obs.reshape(B * T, 3, obs_dim[0], obs_dim[1])

    def conv(x, w, b):  # w: (kh, kw, Cin, Cout)
        w_oihw = jnp.transpose(w, (3, 2, 0, 1))
        y = lax.conv_general_dilated(x, w_oihw, (1, 1), "VALID",
                                     dimension_numbers=("NCHW", "OIHW", "NCHW"))
        return y + b.reshape(1, -1, 1, 1)

    y = jax.nn.relu(conv(x, params["w1"], params["b1"]))
    y = lax.reduce_window(y, -jnp.inf, lax.max, (1, 1, 2, 2), (1, 1, 2, 2), "VALID")
    y = jax.nn.relu(conv(y, params["w2"], params["b2"]))
    y = jax.nn.relu(conv(y, params["w3"], params["b3"]))
    obs_enc = y.reshape(B, T, -1)

    dirs_enc = jnp.take(params["dir_emb"], dirs, axis=0)
    acts_enc = jnp.take(params["act_emb"], acts, axis=0)
    inp = jnp.concatenate([obs_enc, dirs_enc, acts_enc], axis=2)

    Hd = params["whh"].shape[0]
    wih, whh, bih, bhh = params["wih"], params["whh"], params["bih"], params["bhh"]

    def step(h, xs):
        x_t, t = xs
        gi = x_t @ wih + bih
        gh = h @ whh + bhh
        r = jax.nn.sigmoid(gi[:, :Hd] + gh[:, :Hd])
        z = jax.nn.sigmoid(gi[:, Hd:2 * Hd] + gh[:, Hd:2 * Hd])
        n = jnp.tanh(gi[:, 2 * Hd:] + r * gh[:, 2 * Hd:])
        h_new = (1.0 - z) * n + z * h
        mask = (obs_lens > t)[:, None]
        return jnp.where(mask, h_new, h), None

    h0 = jnp.zeros((B, Hd), jnp.float32)
    h, _ = lax.scan(step, h0, (inp.transpose(1, 0, 2), jnp.arange(T)))
    return h


if __name__ == "__main__":
    key = jax.random.PRNGKey(0)
    B, T = 2, 8
    n_dirs, n_acts = 5, 8

    kp, ko, kd, ka = jax.random.split(key, 4)
    params = init_params(kp, n_dirs, n_acts)

    obs = jax.random.uniform(ko, (B, T, 3, 7, 7), jnp.float32)
    dirs = jax.random.randint(kd, (B, T), 0, n_dirs, jnp.int32)
    acts = jax.random.randint(ka, (B, T), 0, n_acts, jnp.int32)
    obs_lens = jnp.array([8, 5], jnp.int32)   # padded-sequence lengths

    out = demonstration_encoder_forward(params, obs, dirs, acts, obs_lens)
    out = jax.block_until_ready(out)

    ref = reference_forward(params, obs, dirs, acts, obs_lens)
    # bf16 matmul operands (f32 accumulation) -> looser tolerance vs f32 ref.
    np.testing.assert_allclose(np.asarray(out), np.asarray(ref),
                               atol=3e-2, rtol=3e-2)
    print("KERNEL_OK")
</pallas_src>

<mosaic_0001>
module attributes {stable_mosaic.version = 11 : i64} {
  func.func @kernel(%arg0: i32, %arg1: memref<36x32x12xbf16, #tpu.memory_space<vmem>>, %arg2: memref<32x192xbf16, #tpu.memory_space<vmem>>, %arg3: memref<12x16xbf16, #tpu.memory_space<vmem>>, %arg4: memref<1x16xf32, #tpu.memory_space<vmem>>, %arg5: memref<64x32xbf16, #tpu.memory_space<vmem>>, %arg6: memref<1x32xf32, #tpu.memory_space<vmem>>, %arg7: memref<128x64xbf16, #tpu.memory_space<vmem>>, %arg8: memref<1x64xf32, #tpu.memory_space<vmem>>, %arg9: memref<256x1536xbf16, #tpu.memory_space<vmem>>, %arg10: memref<1x1536xf32, #tpu.memory_space<vmem>>, %arg11: memref<32x1536xbf16, #tpu.memory_space<vmem>>) attributes {dimension_semantics = [#tpu.dimension_semantics<parallel>], iteration_bounds = array<i64: 2>, scalar_prefetch = 0 : i64, scratch_operands = 0 : i64, tpu.core_type = #tpu.core_type<tc>, window_params = [{transform_indices = @transform_0, window_bounds = array<i64: 36, 32, 12>}, {transform_indices = @transform_1, window_bounds = array<i64: 32, 192>}, {pipeline_mode = #tpu.pipeline_mode<synchronous>, transform_indices = @transform_2, window_bounds = array<i64: 12, 16>}, {pipeline_mode = #tpu.pipeline_mode<synchronous>, transform_indices = @transform_3, window_bounds = array<i64: 1, 16>}, {pipeline_mode = #tpu.pipeline_mode<synchronous>, transform_indices = @transform_4, window_bounds = array<i64: 64, 32>}, {pipeline_mode = #tpu.pipeline_mode<synchronous>, transform_indices = @transform_5, window_bounds = array<i64: 1, 32>}, {pipeline_mode = #tpu.pipeline_mode<synchronous>, transform_indices = @transform_6, window_bounds = array<i64: 128, 64>}, {pipeline_mode = #tpu.pipeline_mode<synchronous>, transform_indices = @transform_7, window_bounds = array<i64: 1, 64>}, {pipeline_mode = #tpu.pipeline_mode<synchronous>, transform_indices = @transform_8, window_bounds = array<i64: 256, 1536>}, {pipeline_mode = #tpu.pipeline_mode<synchronous>, transform_indices = @transform_9, window_bounds = array<i64: 1, 1536>}, {transform_indices = @transform_10, window_bounds = array<i64: 32, 1536>}]} {
    %c0 = arith.constant 0 : index
    %c0_0 = arith.constant 0 : index
    %c0_1 = arith.constant 0 : index
    %0 = vector.load %arg1[%c0, %c0_0, %c0_1] : memref<36x32x12xbf16, #tpu.memory_space<vmem>>, vector<36x32x12xbf16>
    %1 = vector.shape_cast %0 : vector<36x32x12xbf16> to vector<1152x12xbf16>
    %c0_2 = arith.constant 0 : index
    %c0_3 = arith.constant 0 : index
    %2 = vector.load %arg3[%c0_2, %c0_3] : memref<12x16xbf16, #tpu.memory_space<vmem>>, vector<12x16xbf16>
    %cst = arith.constant dense<0.000000e+00> : vector<1152x16xf32>
    %3 = tpu.matmul %1, %2, %cst {dimension_numbers = #tpu.dot_dimension_numbers<[1], [0], [0], [1], [0, 0, 1, 1], [], []>} : vector<1152x12xbf16>, vector<12x16xbf16>, vector<1152x16xf32> -> vector<1152x16xf32>
    %c0_4 = arith.constant 0 : index
    %c0_5 = arith.constant 0 : index
    %4 = vector.load %arg4[%c0_4, %c0_5] : memref<1x16xf32, #tpu.memory_space<vmem>>, vector<1x16xf32>
    %5 = vector.broadcast %4 : vector<1x16xf32> to vector<1152x16xf32>
    %6 = arith.addf %3, %5 : vector<1152x16xf32>
    %cst_6 = arith.constant 0.000000e+00 : f32
    %7 = vector.broadcast %cst_6 : f32 to vector<1152x16xf32>
    %8 = arith.maximumf %6, %7 : vector<1152x16xf32>
    %9 = arith.truncf %8 : vector<1152x16xf32> to vector<1152x16xbf16>
    %10 = vector.extract_strided_slice %9 {offsets = [0, 0], sizes = [32, 16], strides = [1, 1]} : vector<1152x16xbf16> to vector<32x16xbf16>
    %11 = vector.extract_strided_slice %9 {offsets = [32, 0], sizes = [32, 16], strides = [1, 1]} : vector<1152x16xbf16> to vector<32x16xbf16>
    %12 = vector.extract_strided_slice %9 {offsets = [192, 0], sizes = [32, 16], strides = [1, 1]} : vector<1152x16xbf16> to vector<32x16xbf16>
    %13 = vector.extract_strided_slice %9 {offsets = [224, 0], sizes = [32, 16], strides = [1, 1]} : vector<1152x16xbf16> to vector<32x16xbf16>
    %14 = arith.maximumf %10, %11 : vector<32x16xbf16>
    %15 = arith.maximumf %12, %13 : vector<32x16xbf16>
    %16 = arith.maximumf %14, %15 : vector<32x16xbf16>
    %17 = vector.extract_strided_slice %9 {offsets = [64, 0], sizes = [32, 16], strides = [1, 1]} : vector<1152x16xbf16> to vector<32x16xbf16>
    %18 = vector.extract_strided_slice %9 {offsets = [96, 0], sizes = [32, 16], strides = [1, 1]} : vector<1152x16xbf16> to vector<32x16xbf16>
    %19 = vector.extract_strided_slice %9 {offsets = [256, 0], sizes = [32, 16], strides = [1, 1]} : vector<1152x16xbf16> to vector<32x16xbf16>
    %20 = vector.extract_strided_slice %9 {offsets = [288, 0], sizes = [32, 16], strides = [1, 1]} : vector<1152x16xbf16> to vector<32x16xbf16>
    %21 = arith.maximumf %17, %18 : vector<32x16xbf16>
    %22 = arith.maximumf %19, %20 : vector<32x16xbf16>
    %23 = arith.maximumf %21, %22 : vector<32x16xbf16>
    %24 = vector.extract_strided_slice %9 {offsets = [128, 0], sizes = [32, 16], strides = [1, 1]} : vector<1152x16xbf16> to vector<32x16xbf16>
    %25 = vector.extract_strided_slice %9 {offsets = [160, 0], sizes = [32, 16], strides = [1, 1]} : vector<1152x16xbf16> to vector<32x16xbf16>
    %26 = vector.extract_strided_slice %9 {offsets = [320, 0], sizes = [32, 16], strides = [1, 1]} : vector<1152x16xbf16> to vector<32x16xbf16>
    %27 = vector.extract_strided_slice %9 {offsets = [352, 0], sizes = [32, 16], strides = [1, 1]} : vector<1152x16xbf16> to vector<32x16xbf16>
    %28 = arith.maximumf %24, %25 : vector<32x16xbf16>
    %29 = arith.maximumf %26, %27 : vector<32x16xbf16>
    %30 = arith.maximumf %28, %29 : vector<32x16xbf16>
    %31 = vector.extract_strided_slice %9 {offsets = [384, 0], sizes = [32, 16], strides = [1, 1]} : vector<1152x16xbf16> to vector<32x16xbf16>
    %32 = vector.extract_strided_slice %9 {offsets = [416, 0], sizes = [32, 16], strides = [1, 1]} : vector<1152x16xbf16> to vector<32x16xbf16>
    %33 = vector.extract_strided_slice %9 {offsets = [576, 0], sizes = [32, 16], strides = [1, 1]} : vector<1152x16xbf16> to vector<32x16xbf16>
    %34 = vector.extract_strided_slice %9 {offsets = [608, 0], sizes = [32, 16], strides = [1, 1]} : vector<1152x16xbf16> to vector<32x16xbf16>
    %35 = arith.maximumf %31, %32 : vector<32x16xbf16>
    %36 = arith.maximumf %33, %34 : vector<32x16xbf16>
    %37 = arith.maximumf %35, %36 : vector<32x16xbf16>
    %38 = vector.extract_strided_slice %9 {offsets = [448, 0], sizes = [32, 16], strides = [1, 1]} : vector<1152x16xbf16> to vector<32x16xbf16>
    %39 = vector.extract_strided_slice %9 {offsets = [480, 0], sizes = [32, 16], strides = [1, 1]} : vector<1152x16xbf16> to vector<32x16xbf16>
    %40 = vector.extract_strided_slice %9 {offsets = [640, 0], sizes = [32, 16], strides = [1, 1]} : vector<1152x16xbf16> to vector<32x16xbf16>
    %41 = vector.extract_strided_slice %9 {offsets = [672, 0], sizes = [32, 16], strides = [1, 1]} : vector<1152x16xbf16> to vector<32x16xbf16>
    %42 = arith.maximumf %38, %39 : vector<32x16xbf16>
    %43 = arith.maximumf %40, %41 : vector<32x16xbf16>
    %44 = arith.maximumf %42, %43 : vector<32x16xbf16>
    %45 = vector.extract_strided_slice %9 {offsets = [512, 0], sizes = [32, 16], strides = [1, 1]} : vector<1152x16xbf16> to vector<32x16xbf16>
    %46 = vector.extract_strided_slice %9 {offsets = [544, 0], sizes = [32, 16], strides = [1, 1]} : vector<1152x16xbf16> to vector<32x16xbf16>
    %47 = vector.extract_strided_slice %9 {offsets = [704, 0], sizes = [32, 16], strides = [1, 1]} : vector<1152x16xbf16> to vector<32x16xbf16>
    %48 = vector.extract_strided_slice %9 {offsets = [736, 0], sizes = [32, 16], strides = [1, 1]} : vector<1152x16xbf16> to vector<32x16xbf16>
    %49 = arith.maximumf %45, %46 : vector<32x16xbf16>
    %50 = arith.maximumf %47, %48 : vector<32x16xbf16>
    %51 = arith.maximumf %49, %50 : vector<32x16xbf16>
    %52 = vector.extract_strided_slice %9 {offsets = [768, 0], sizes = [32, 16], strides = [1, 1]} : vector<1152x16xbf16> to vector<32x16xbf16>
    %53 = vector.extract_strided_slice %9 {offsets = [800, 0], sizes = [32, 16], strides = [1, 1]} : vector<1152x16xbf16> to vector<32x16xbf16>
    %54 = vector.extract_strided_slice %9 {offsets = [960, 0], sizes = [32, 16], strides = [1, 1]} : vector<1152x16xbf16> to vector<32x16xbf16>
    %55 = vector.extract_strided_slice %9 {offsets = [992, 0], sizes = [32, 16], strides = [1, 1]} : vector<1152x16xbf16> to vector<32x16xbf16>
    %56 = arith.maximumf %52, %53 : vector<32x16xbf16>
    %57 = arith.maximumf %54, %55 : vector<32x16xbf16>
    %58 = arith.maximumf %56, %57 : vector<32x16xbf16>
    %59 = vector.extract_strided_slice %9 {offsets = [832, 0], sizes = [32, 16], strides = [1, 1]} : vector<1152x16xbf16> to vector<32x16xbf16>
    %60 = vector.extract_strided_slice %9 {offsets = [864, 0], sizes = [32, 16], strides = [1, 1]} : vector<1152x16xbf16> to vector<32x16xbf16>
    %61 = vector.extract_strided_slice %9 {offsets = [1024, 0], sizes = [32, 16], strides = [1, 1]} : vector<1152x16xbf16> to vector<32x16xbf16>
    %62 = vector.extract_strided_slice %9 {offsets = [1056, 0], sizes = [32, 16], strides = [1, 1]} : vector<1152x16xbf16> to vector<32x16xbf16>
    %63 = arith.maximumf %59, %60 : vector<32x16xbf16>
    %64 = arith.maximumf %61, %62 : vector<32x16xbf16>
    %65 = arith.maximumf %63, %64 : vector<32x16xbf16>
    %66 = vector.extract_strided_slice %9 {offsets = [896, 0], sizes = [32, 16], strides = [1, 1]} : vector<1152x16xbf16> to vector<32x16xbf16>
    %67 = vector.extract_strided_slice %9 {offsets = [928, 0], sizes = [32, 16], strides = [1, 1]} : vector<1152x16xbf16> to vector<32x16xbf16>
    %68 = vector.extract_strided_slice %9 {offsets = [1088, 0], sizes = [32, 16], strides = [1, 1]} : vector<1152x16xbf16> to vector<32x16xbf16>
    %69 = vector.extract_strided_slice %9 {offsets = [1120, 0], sizes = [32, 16], strides = [1, 1]} : vector<1152x16xbf16> to vector<32x16xbf16>
    %70 = arith.maximumf %66, %67 : vector<32x16xbf16>
    %71 = arith.maximumf %68, %69 : vector<32x16xbf16>
    %72 = arith.maximumf %70, %71 : vector<32x16xbf16>
    %73 = tpu.concatenate %16, %23, %37, %44 in 1 : vector<32x16xbf16>, vector<32x16xbf16>, vector<32x16xbf16>, vector<32x16xbf16> -> vector<32x64xbf16>
    %74 = tpu.concatenate %23, %30, %44, %51 in 1 : vector<32x16xbf16>, vector<32x16xbf16>, vector<32x16xbf16>, vector<32x16xbf16> -> vector<32x64xbf16>
    %75 = tpu.concatenate %37, %44, %58, %65 in 1 : vector<32x16xbf16>, vector<32x16xbf16>, vector<32x16xbf16>, vector<32x16xbf16> -> vector<32x64xbf16>
    %76 = tpu.concatenate %44, %51, %65, %72 in 1 : vector<32x16xbf16>, vector<32x16xbf16>, vector<32x16xbf16>, vector<32x16xbf16> -> vector<32x64xbf16>
    %77 = tpu.concatenate %73, %74, %75, %76 in 0 : vector<32x64xbf16>, vector<32x64xbf16>, vector<32x64xbf16>, vector<32x64xbf16> -> vector<128x64xbf16>
    %c0_7 = arith.constant 0 : index
    %c0_8 = arith.constant 0 : index
    %78 = vector.load %arg5[%c0_7, %c0_8] : memref<64x32xbf16, #tpu.memory_space<vmem>>, vector<64x32xbf16>
    %cst_9 = arith.constant dense<0.000000e+00> : vector<128x32xf32>
    %79 = tpu.matmul %77, %78, %cst_9 {dimension_numbers = #tpu.dot_dimension_numbers<[1], [0], [0], [1], [0, 0, 1, 1], [], []>} : vector<128x64xbf16>, vector<64x32xbf16>, vector<128x32xf32> -> vector<128x32xf32>
    %c0_10 = arith.constant 0 : index
    %c0_11 = arith.constant 0 : index
    %80 = vector.load %arg6[%c0_10, %c0_11] : memref<1x32xf32, #tpu.memory_space<vmem>>, vector<1x32xf32>
    %81 = vector.broadcast %80 : vector<1x32xf32> to vector<128x32xf32>
    %82 = arith.addf %79, %81 : vector<128x32xf32>
    %cst_12 = arith.constant 0.000000e+00 : f32
    %83 = vector.broadcast %cst_12 : f32 to vector<128x32xf32>
    %84 = arith.maximumf %82, %83 : vector<128x32xf32>
    %85 = arith.truncf %84 : vector<128x32xf32> to vector<128x32xbf16>
    %86 = vector.extract_strided_slice %85 {offsets = [0, 0], sizes = [32, 32], strides = [1, 1]} : vector<128x32xbf16> to vector<32x32xbf16>
    %87 = vector.extract_strided_slice %85 {offsets = [32, 0], sizes = [32, 32], strides = [1, 1]} : vector<128x32xbf16> to vector<32x32xbf16>
    %88 = vector.extract_strided_slice %85 {offsets = [64, 0], sizes = [32, 32], strides = [1, 1]} : vector<128x32xbf16> to vector<32x32xbf16>
    %89 = vector.extract_strided_slice %85 {offsets = [96, 0], sizes = [32, 32], strides = [1, 1]} : vector<128x32xbf16> to vector<32x32xbf16>
    %90 = tpu.concatenate %86, %87, %88, %89 in 1 : vector<32x32xbf16>, vector<32x32xbf16>, vector<32x32xbf16>, vector<32x32xbf16> -> vector<32x128xbf16>
    %c0_13 = arith.constant 0 : index
    %c0_14 = arith.constant 0 : index
    %91 = vector.load %arg7[%c0_13, %c0_14] : memref<128x64xbf16, #tpu.memory_space<vmem>>, vector<128x64xbf16>
    %cst_15 = arith.constant dense<0.000000e+00> : vector<32x64xf32>
    %92 = tpu.matmul %90, %91, %cst_15 {dimension_numbers = #tpu.dot_dimension_numbers<[1], [0], [0], [1], [0, 0, 1, 1], [], []>} : vector<32x128xbf16>, vector<128x64xbf16>, vector<32x64xf32> -> vector<32x64xf32>
    %c0_16 = arith.constant 0 : index
    %c0_17 = arith.constant 0 : index
    %93 = vector.load %arg8[%c0_16, %c0_17] : memref<1x64xf32, #tpu.memory_space<vmem>>, vector<1x64xf32>
    %94 = vector.broadcast %93 : vector<1x64xf32> to vector<32x64xf32>
    %95 = arith.addf %92, %94 : vector<32x64xf32>
    %cst_18 = arith.constant 0.000000e+00 : f32
    %96 = vector.broadcast %cst_18 : f32 to vector<32x64xf32>
    %97 = arith.maximumf %95, %96 : vector<32x64xf32>
    %98 = arith.truncf %97 : vector<32x64xf32> to vector<32x64xbf16>
    %c0_19 = arith.constant 0 : index
    %c0_20 = arith.constant 0 : index
    %99 = vector.load %arg2[%c0_19, %c0_20] : memref<32x192xbf16, #tpu.memory_space<vmem>>, vector<32x192xbf16>
    %100 = tpu.concatenate %98, %99 in 1 : vector<32x64xbf16>, vector<32x192xbf16> -> vector<32x256xbf16>
    %c0_21 = arith.constant 0 : index
    %c0_22 = arith.constant 0 : index
    %101 = vector.load %arg9[%c0_21, %c0_22] : memref<256x1536xbf16, #tpu.memory_space<vmem>>, vector<256x1536xbf16>
    %cst_23 = arith.constant dense<0.000000e+00> : vector<32x1536xf32>
    %102 = tpu.matmul %100, %101, %cst_23 {dimension_numbers = #tpu.dot_dimension_numbers<[1], [0], [0], [1], [0, 0, 1, 1], [], []>} : vector<32x256xbf16>, vector<256x1536xbf16>, vector<32x1536xf32> -> vector<32x1536xf32>
    %c0_24 = arith.constant 0 : index
    %c0_25 = arith.constant 0 : index
    %103 = vector.load %arg10[%c0_24, %c0_25] : memref<1x1536xf32, #tpu.memory_space<vmem>>, vector<1x1536xf32>
    %104 = vector.broadcast %103 : vector<1x1536xf32> to vector<32x1536xf32>
    %105 = arith.addf %102, %104 : vector<32x1536xf32>
    %106 = arith.truncf %105 : vector<32x1536xf32> to vector<32x1536xbf16>
    %c0_26 = arith.constant 0 : index
    %c0_27 = arith.constant 0 : index
    %107 = vector.load %arg11[%c0_26, %c0_27] : memref<32x1536xbf16, #tpu.memory_space<vmem>>, vector<32x1536xbf16>
    tpu.vector_store %arg11[%c0_26, %c0_27], %106 {strides = array<i32>} : memref<32x1536xbf16, #tpu.memory_space<vmem>>, vector<32x1536xbf16>,
    return
  }
  func.func @transform_0(%arg0: i32) -> (i32, i32, i32) {
    %c0_i32 = arith.constant 0 : i32
    %c0_i32_0 = arith.constant 0 : i32
    %c0_i32_1 = arith.constant 0 : i32
    return %c0_i32, %arg0, %c0_i32_0 : i32, i32, i32
  }
  func.func @transform_1(%arg0: i32) -> (i32, i32) {
    %c0_i32 = arith.constant 0 : i32
    %c0_i32_0 = arith.constant 0 : i32
    return %arg0, %c0_i32 : i32, i32
  }
  func.func @transform_2(%arg0: i32) -> (i32, i32) {
    %c0_i32 = arith.constant 0 : i32
    %c0_i32_0 = arith.constant 0 : i32
    %c0_i32_1 = arith.constant 0 : i32
    return %c0_i32, %c0_i32_0 : i32, i32
  }
  func.func @transform_3(%arg0: i32) -> (i32, i32) {
    %c0_i32 = arith.constant 0 : i32
    %c0_i32_0 = arith.constant 0 : i32
    %c0_i32_1 = arith.constant 0 : i32
    return %c0_i32, %c0_i32_0 : i32, i32
  }
  func.func @transform_4(%arg0: i32) -> (i32, i32) {
    %c0_i32 = arith.constant 0 : i32
    %c0_i32_0 = arith.constant 0 : i32
    %c0_i32_1 = arith.constant 0 : i32
    return %c0_i32, %c0_i32_0 : i32, i32
  }
  func.func @transform_5(%arg0: i32) -> (i32, i32) {
    %c0_i32 = arith.constant 0 : i32
    %c0_i32_0 = arith.constant 0 : i32
    %c0_i32_1 = arith.constant 0 : i32
    return %c0_i32, %c0_i32_0 : i32, i32
  }
  func.func @transform_6(%arg0: i32) -> (i32, i32) {
    %c0_i32 = arith.constant 0 : i32
    %c0_i32_0 = arith.constant 0 : i32
    %c0_i32_1 = arith.constant 0 : i32
    return %c0_i32, %c0_i32_0 : i32, i32
  }
  func.func @transform_7(%arg0: i32) -> (i32, i32) {
    %c0_i32 = arith.constant 0 : i32
    %c0_i32_0 = arith.constant 0 : i32
    %c0_i32_1 = arith.constant 0 : i32
    return %c0_i32, %c0_i32_0 : i32, i32
  }
  func.func @transform_8(%arg0: i32) -> (i32, i32) {
    %c0_i32 = arith.constant 0 : i32
    %c0_i32_0 = arith.constant 0 : i32
    %c0_i32_1 = arith.constant 0 : i32
    return %c0_i32, %c0_i32_0 : i32, i32
  }
  func.func @transform_9(%arg0: i32) -> (i32, i32) {
    %c0_i32 = arith.constant 0 : i32
    %c0_i32_0 = arith.constant 0 : i32
    %c0_i32_1 = arith.constant 0 : i32
    return %c0_i32, %c0_i32_0 : i32, i32
  }
  func.func @transform_10(%arg0: i32) -> (i32, i32) {
    %c0_i32 = arith.constant 0 : i32
    %c0_i32_0 = arith.constant 0 : i32
    return %arg0, %c0_i32 : i32, i32
  }
}

</mosaic_0001>

<bundles_post_ra>
// kernel: tpu_custom_call.1
= control target key start
LH: loop header
LB: loop body
LE: loop exit
PB: predicated region body
PF: predicated region fallthrough
CT: control target
= control target key end

     0   :  { %s7904_s0 = inlined_call_operand.vmem [shape: bf16[36,64,12], index: 0, kind: input, shape index: {}]   ;;  %s7905_s1 = inlined_call_operand.hbm [shape: bf16[64,192], index: 1, kind: input, shape index: {}]   ;;  %s7906_s2 = inlined_call_operand.vmem [shape: bf16[12,16], index: 2, kind: input, shape index: {}]   ;;  %s7907_s3 = inlined_call_operand.vmem [shape: f32[1,16], index: 3, kind: input, shape index: {}]   ;;  %s7908_s4 = inlined_call_operand.vmem [shape: bf16[64,32], index: 4, kind: input, shape index: {}]   ;;  %s7909_s5 = inlined_call_operand.vmem [shape: f32[1,32], index: 5, kind: input, shape index: {}]   ;;  %s7910_s6 = inlined_call_operand.vmem [shape: bf16[128,64], index: 6, kind: input, shape index: {}]   ;;  %s7911_s7 = inlined_call_operand.vmem [shape: f32[1,64], index: 7, kind: input, shape index: {}]   ;;  %s7912_s8 = inlined_call_operand.vmem [shape: bf16[256,1536], index: 8, kind: input, shape index: {}]   ;;  %s7913_s9 = inlined_call_operand.vmem [shape: f32[1,1536], index: 9, kind: input, shape index: {}]   ;;  %s7914_s10 = inlined_call_operand.hbm [shape: bf16[64,1536], index: 10, kind: output, shape index: {}]  }
   0x1   :  { %7918 = sst [smem:[#allocation11_spill]] %s7904_s0 }
   0x2   :  { %15 = vsyncpa [#allocation4], 0 }
   0x3   :  { %17 = vsyncpa [#allocation4 + $0x1], 0 }
   0x4   :  { %18 = vsyncpa [#allocation5], 0 }
   0x5   :  { %20 = vsyncpa [#allocation5 + $0x1], 0  ;;  %s6259_s13 = smov 0   ;;  %s6261_s14 = smov 0  }
   0x6   :  { %s6263_s15 = smov 0   ;;  %s6265_s16 = smov 0  }
   0x7 LB: > { %7919 = sst [smem:[#allocation9_spill]] %s6188_s15  ;;  %s6280_s17 = sadd.s32 4294967295, %s6192_s16   ;;  %s6192_s16 = sphi %s6265_s16, %s7933_s16   ;;  %s6188_s15 = sphi %s6263_s15, %s7930_s15   ;;  %s6184_s14 = sphi %s6261_s14, %s7932_s14   ;;  %s6180_s13 = sphi %s6259_s13, %s7931_s13  }
   0x8   : > { %s4945_s18 = sadd.s32 4294967294, %s6192_s16   ;;  %s6284_s19 = sadd.s32 1, %s6192_s16  }
   0x9   : > { %s33_s20 = sadd.s32 1, %s6188_s15  ;;  %s30_s21 = ssub.s32 %s6192_s16, %s6284_s19 }
   0xa   : > { %p40_p0 = scmp.ne.s32.totalorder %s6188_s15, %s6184_s14  ;;  %p31_p1 = scmp.eq.s32.totalorder %s30_s21, 0 }
   0xb   : > { %p41_p2 = scmp.eq.s32.totalorder %s6192_s16, 0  ;;  %p72_p3 = scmp.ne.s32.totalorder %s6184_s14, %s6180_s13 }
   0xc   : > { %p73_p4 = scmp.eq.s32.totalorder %s6280_s17, 0  ;;  %p264_p7 = scmp.eq.s32.totalorder %s6280_s17, 1 }
   0xd   : > { %s6296_s22 = scalar_select %p31_p1, %s6188_s15, %s33_s20  }
   0xe   : > { %p6298_p5 = por %p41_p2, %p40_p0  ;;  %p6302_p6 = por %p73_p4, %p72_p3 }
   0xf   : > { %7920 = sst [smem:[#allocation10_spill]] %s6296_s22  ;;  %p270_p8 = scmp.eq.s32.totalorder %s4945_s18, 1 }
  0x10   : > { %p6307_p9 = por %p264_p7, %p40_p0  ;;  %p7916_p11 = scmp.ge.s32.totalorder %s6192_s16, 2 }
  0x11   : > { %p6311_p10 = por %p270_p8, %p72_p3 }
  0x12   : > { %s7923_s25 = scalar_select %p6307_p9, 1, 0 }
  0x13   : > { %s7924_s26 = scalar_select %p6311_p10, 1, 0 }
  0x14   : > { %310 = sbr.rel (%p7916_p11) target bundleno = 99 (0x63), region = 48 }
  0x1b   : > { %313 = sbr.rel (!%p6298_p5) target bundleno = 73 (0x49), region = 52  ;;  %s315_s27 = sand.u32 (%p6298_p5), 1, %s6188_s15  }
  0x1c   : > { %s5349_s28 = sshll.u32 (%p6298_p5), %s6192_s16, 4  ;;  %s5665_s29 = smul.u32 (%p6298_p5), 576, %s315_s27 }
  0x1d   : > { %s7925_s0 = sld [smem:[#allocation11_spill]] (%p6298_p5) }
  0x1e   : > { %s6333_s18 = scalar_lea.vmem (%p6298_p5), [#allocation2], %s5665_s29 }
  0x23   : > { %s6325_s12 = scalar_lea.vmem %s7925_s0, %s5349_s28 }
  0x24   : > { %v336_v0 = vld [vmem:[%s6325_s12] sm:$0xff]   ;;  %v340_v1 = vld [vmem:[%s6325_s12 + $0x8] sm:$0xff]  }
  0x25   : > { %v344_v2 = vld [vmem:[%s6325_s12 + $0x20] sm:$0xff]   ;;  %v348_v3 = vld [vmem:[%s6325_s12 + $0x28] sm:$0xff]   ;;  %337 = vst [vmem:[%s6333_s18] sm:$0xff] %v336_v0   ;;  %341 = vst [vmem:[%s6333_s18 + $0x8] sm:$0xff] %v340_v1  }
  0x26   : > { %v352_v4 = vld [vmem:[%s6325_s12 + $0x40] sm:$0xff]   ;;  %v356_v5 = vld [vmem:[%s6325_s12 + $0x48] sm:$0xff]   ;;  %345 = vst [vmem:[%s6333_s18 + $0x10] sm:$0xff] %v344_v2   ;;  %349 = vst [vmem:[%s6333_s18 + $0x18] sm:$0xff] %v348_v3  }
  0x27   : > { %353 = vst [vmem:[%s6333_s18 + $0x20] sm:$0xff] %v352_v4   ;;  %357 = vst [vmem:[%s6333_s18 + $0x28] sm:$0xff] %v356_v5   ;;  %v360_v6 = vld [vmem:[%s6325_s12 + $0x60] sm:$0xff]   ;;  %v364_v7 = vld [vmem:[%s6325_s12 + $0x68] sm:$0xff]  }
  0x28   : > { %v368_v8 = vld [vmem:[%s6325_s12 + $0x80] sm:$0xff]   ;;  %361 = vst [vmem:[%s6333_s18 + $0x30] sm:$0xff] %v360_v6   ;;  %365 = vst [vmem:[%s6333_s18 + $0x38] sm:$0xff] %v364_v7   ;;  %v372_v9 = vld [vmem:[%s6325_s12 + $0x88] sm:$0xff]  }
  0x29   : > { %369 = vst [vmem:[%s6333_s18 + $0x40] sm:$0xff] %v368_v8   ;;  %v376_v10 = vld [vmem:[%s6325_s12 + $0xa0] sm:$0xff]   ;;  %v380_v11 = vld [vmem:[%s6325_s12 + $0xa8] sm:$0xff]   ;;  %373 = vst [vmem:[%s6333_s18 + $0x48] sm:$0xff] %v372_v9  }
  0x2a   : > { %377 = vst [vmem:[%s6333_s18 + $0x50] sm:$0xff] %v376_v10   ;;  %381 = vst [vmem:[%s6333_s18 + $0x58] sm:$0xff] %v380_v11   ;;  %v384_v12 = vld [vmem:[%s6325_s12 + $0xc0] sm:$0xff]   ;;  %v388_v13 = vld [vmem:[%s6325_s12 + $0xc8] sm:$0xff]  }
  0x2b   : > { %v392_v14 = vld [vmem:[%s6325_s12 + $0xe0] sm:$0xff]   ;;  %385 = vst [vmem:[%s6333_s18 + $0x60] sm:$0xff] %v384_v12   ;;  %389 = vst [vmem:[%s6333_s18 + $0x68] sm:$0xff] %v388_v13   ;;  %v396_v15 = vld [vmem:[%s6325_s12 + $0xe8] sm:$0xff]  }
  0x2c   : > { %393 = vst [vmem:[%s6333_s18 + $0x70] sm:$0xff] %v392_v14   ;;  %v400_v16 = vld [vmem:[%s6325_s12 + $0x100] sm:$0xff]   ;;  %v404_v17 = vld [vmem:[%s6325_s12 + $0x108] sm:$0xff]   ;;  %397 = vst [vmem:[%s6333_s18 + $0x78] sm:$0xff] %v396_v15  }
  0x2d   : > { %401 = vst [vmem:[%s6333_s18 + $0x80] sm:$0xff] %v400_v16   ;;  %405 = vst [vmem:[%s6333_s18 + $0x88] sm:$0xff] %v404_v17   ;;  %v408_v18 = vld [vmem:[%s6325_s12 + $0x120] sm:$0xff]   ;;  %v412_v19 = vld [vmem:[%s6325_s12 + $0x128] sm:$0xff]  }
  0x2e   : > { %v416_v20 = vld [vmem:[%s6325_s12 + $0x140] sm:$0xff]   ;;  %409 = vst [vmem:[%s6333_s18 + $0x90] sm:$0xff] %v408_v18   ;;  %413 = vst [vmem:[%s6333_s18 + $0x98] sm:$0xff] %v412_v19   ;;  %v420_v21 = vld [vmem:[%s6325_s12 + $0x148] sm:$0xff]  }
  0x2f   : > { %417 = vst [vmem:[%s6333_s18 + $0xa0] sm:$0xff] %v416_v20   ;;  %v424_v22 = vld [vmem:[%s6325_s12 + $0x160] sm:$0xff]   ;;  %v428_v23 = vld [vmem:[%s6325_s12 + $0x168] sm:$0xff]   ;;  %421 = vst [vmem:[%s6333_s18 + $0xa8] sm:$0xff] %v420_v21  }
  0x30   : > { %425 = vst [vmem:[%s6333_s18 + $0xb0] sm:$0xff] %v424_v22   ;;  %429 = vst [vmem:[%s6333_s18 + $0xb8] sm:$0xff] %v428_v23   ;;  %v432_v24 = vld [vmem:[%s6325_s12 + $0x180] sm:$0xff]   ;;  %v436_v25 = vld [vmem:[%s6325_s12 + $0x188] sm:$0xff]  }
  0x31   : > { %v440_v26 = vld [vmem:[%s6325_s12 + $0x1a0] sm:$0xff]   ;;  %433 = vst [vmem:[%s6333_s18 + $0xc0] sm:$0xff] %v432_v24   ;;  %437 = vst [vmem:[%s6333_s18 + $0xc8] sm:$0xff] %v436_v25   ;;  %v444_v27 = vld [vmem:[%s6325_s12 + $0x1a8] sm:$0xff]  }
  0x32   : > { %441 = vst [vmem:[%s6333_s18 + $0xd0] sm:$0xff] %v440_v26   ;;  %v448_v28 = vld [vmem:[%s6325_s12 + $0x1c0] sm:$0xff]   ;;  %v452_v29 = vld [vmem:[%s6325_s12 + $0x1c8] sm:$0xff]   ;;  %445 = vst [vmem:[%s6333_s18 + $0xd8] sm:$0xff] %v444_v27  }
  0x33   : > { %449 = vst [vmem:[%s6333_s18 + $0xe0] sm:$0xff] %v448_v28   ;;  %453 = vst [vmem:[%s6333_s18 + $0xe8] sm:$0xff] %v452_v29   ;;  %v456_v30 = vld [vmem:[%s6325_s12 + $0x1e0] sm:$0xff]   ;;  %v460_v31 = vld [vmem:[%s6325_s12 + $0x1e8] sm:$0xff]  }
  0x34   : > { %v464_v32 = vld [vmem:[%s6325_s12 + $0x200] sm:$0xff]   ;;  %457 = vst [vmem:[%s6333_s18 + $0xf0] sm:$0xff] %v456_v30   ;;  %461 = vst [vmem:[%s6333_s18 + $0xf8] sm:$0xff] %v460_v31   ;;  %v468_v33 = vld [vmem:[%s6325_s12 + $0x208] sm:$0xff]  }
  0x35   : > { %465 = vst [vmem:[%s6333_s18 + $0x100] sm:$0xff] %v464_v32   ;;  %v472_v34 = vld [vmem:[%s6325_s12 + $0x220] sm:$0xff]   ;;  %v476_v35 = vld [vmem:[%s6325_s12 + $0x228] sm:$0xff]   ;;  %469 = vst [vmem:[%s6333_s18 + $0x108] sm:$0xff] %v468_v33  }
  0x36   : > { %473 = vst [vmem:[%s6333_s18 + $0x110] sm:$0xff] %v472_v34   ;;  %477 = vst [vmem:[%s6333_s18 + $0x118] sm:$0xff] %v476_v35   ;;  %v480_v36 = vld [vmem:[%s6325_s12 + $0x240] sm:$0xff]   ;;  %v484_v37 = vld [vmem:[%s6325_s12 + $0x248] sm:$0xff]  }
  0x37   : > { %v488_v38 = vld [vmem:[%s6325_s12 + $0x260] sm:$0xff]   ;;  %481 = vst [vmem:[%s6333_s18 + $0x120] sm:$0xff] %v480_v36   ;;  %485 = vst [vmem:[%s6333_s18 + $0x128] sm:$0xff] %v484_v37   ;;  %v492_v39 = vld [vmem:[%s6325_s12 + $0x268] sm:$0xff]  }
  0x38   : > { %489 = vst [vmem:[%s6333_s18 + $0x130] sm:$0xff] %v488_v38   ;;  %v496_v40 = vld [vmem:[%s6325_s12 + $0x280] sm:$0xff]   ;;  %v500_v41 = vld [vmem:[%s6325_s12 + $0x288] sm:$0xff]   ;;  %493 = vst [vmem:[%s6333_s18 + $0x138] sm:$0xff] %v492_v39  }
  0x39   : > { %497 = vst [vmem:[%s6333_s18 + $0x140] sm:$0xff] %v496_v40   ;;  %501 = vst [vmem:[%s6333_s18 + $0x148] sm:$0xff] %v500_v41   ;;  %v504_v42 = vld [vmem:[%s6325_s12 + $0x2a0] sm:$0xff]   ;;  %v508_v43 = vld [vmem:[%s6325_s12 + $0x2a8] sm:$0xff]  }
  0x3a   : > { %v512_v44 = vld [vmem:[%s6325_s12 + $0x2c0] sm:$0xff]   ;;  %505 = vst [vmem:[%s6333_s18 + $0x150] sm:$0xff] %v504_v42   ;;  %509 = vst [vmem:[%s6333_s18 + $0x158] sm:$0xff] %v508_v43   ;;  %v516_v45 = vld [vmem:[%s6325_s12 + $0x2c8] sm:$0xff]  }
  0x3b   : > { %513 = vst [vmem:[%s6333_s18 + $0x160] sm:$0xff] %v512_v44   ;;  %v520_v46 = vld [vmem:[%s6325_s12 + $0x2e0] sm:$0xff]   ;;  %v524_v47 = vld [vmem:[%s6325_s12 + $0x2e8] sm:$0xff]   ;;  %517 = vst [vmem:[%s6333_s18 + $0x168] sm:$0xff] %v516_v45  }
  0x3c   : > { %521 = vst [vmem:[%s6333_s18 + $0x170] sm:$0xff] %v520_v46   ;;  %525 = vst [vmem:[%s6333_s18 + $0x178] sm:$0xff] %v524_v47   ;;  %v528_v48 = vld [vmem:[%s6325_s12 + $0x300] sm:$0xff]   ;;  %v532_v49 = vld [vmem:[%s6325_s12 + $0x308] sm:$0xff]  }
  0x3d   : > { %v536_v50 = vld [vmem:[%s6325_s12 + $0x320] sm:$0xff]   ;;  %529 = vst [vmem:[%s6333_s18 + $0x180] sm:$0xff] %v528_v48   ;;  %533 = vst [vmem:[%s6333_s18 + $0x188] sm:$0xff] %v532_v49   ;;  %v540_v51 = vld [vmem:[%s6325_s12 + $0x328] sm:$0xff]  }
  0x3e   : > { %537 = vst [vmem:[%s6333_s18 + $0x190] sm:$0xff] %v536_v50   ;;  %v544_v52 = vld [vmem:[%s6325_s12 + $0x340] sm:$0xff]   ;;  %v548_v53 = vld [vmem:[%s6325_s12 + $0x348] sm:$0xff]   ;;  %541 = vst [vmem:[%s6333_s18 + $0x198] sm:$0xff] %v540_v51  }
  0x3f   : > { %545 = vst [vmem:[%s6333_s18 + $0x1a0] sm:$0xff] %v544_v52   ;;  %549 = vst [vmem:[%s6333_s18 + $0x1a8] sm:$0xff] %v548_v53   ;;  %v552_v54 = vld [vmem:[%s6325_s12 + $0x360] sm:$0xff]   ;;  %v556_v55 = vld [vmem:[%s6325_s12 + $0x368] sm:$0xff]  }
  0x40   : > { %v560_v56 = vld [vmem:[%s6325_s12 + $0x380] sm:$0xff]   ;;  %553 = vst [vmem:[%s6333_s18 + $0x1b0] sm:$0xff] %v552_v54   ;;  %557 = vst [vmem:[%s6333_s18 + $0x1b8] sm:$0xff] %v556_v55   ;;  %v564_v57 = vld [vmem:[%s6325_s12 + $0x388] sm:$0xff]  }
  0x41   : > { %561 = vst [vmem:[%s6333_s18 + $0x1c0] sm:$0xff] %v560_v56   ;;  %v568_v58 = vld [vmem:[%s6325_s12 + $0x3a0] sm:$0xff]   ;;  %v572_v59 = vld [vmem:[%s6325_s12 + $0x3a8] sm:$0xff]   ;;  %565 = vst [vmem:[%s6333_s18 + $0x1c8] sm:$0xff] %v564_v57  }
  0x42   : > { %569 = vst [vmem:[%s6333_s18 + $0x1d0] sm:$0xff] %v568_v58   ;;  %573 = vst [vmem:[%s6333_s18 + $0x1d8] sm:$0xff] %v572_v59   ;;  %v576_v60 = vld [vmem:[%s6325_s12 + $0x3c0] sm:$0xff]   ;;  %v580_v61 = vld [vmem:[%s6325_s12 + $0x3c8] sm:$0xff]  }
  0x43   : > { %v584_v62 = vld [vmem:[%s6325_s12 + $0x3e0] sm:$0xff]   ;;  %577 = vst [vmem:[%s6333_s18 + $0x1e0] sm:$0xff] %v576_v60   ;;  %581 = vst [vmem:[%s6333_s18 + $0x1e8] sm:$0xff] %v580_v61   ;;  %v588_v63 = vld [vmem:[%s6325_s12 + $0x3e8] sm:$0xff]  }
  0x44   : > { %585 = vst [vmem:[%s6333_s18 + $0x1f0] sm:$0xff] %v584_v62   ;;  %v592_v0 = vld [vmem:[%s6325_s12 + $0x400] sm:$0xff]   ;;  %v596_v1 = vld [vmem:[%s6325_s12 + $0x408] sm:$0xff]   ;;  %589 = vst [vmem:[%s6333_s18 + $0x1f8] sm:$0xff] %v588_v63  }
  0x45   : > { %593 = vst [vmem:[%s6333_s18 + $0x200] sm:$0xff] %v592_v0   ;;  %597 = vst [vmem:[%s6333_s18 + $0x208] sm:$0xff] %v596_v1   ;;  %v600_v2 = vld [vmem:[%s6325_s12 + $0x420] sm:$0xff]   ;;  %v604_v3 = vld [vmem:[%s6325_s12 + $0x428] sm:$0xff]  }
  0x46   : > { %v608_v4 = vld [vmem:[%s6325_s12 + $0x440] sm:$0xff]   ;;  %601 = vst [vmem:[%s6333_s18 + $0x210] sm:$0xff] %v600_v2   ;;  %605 = vst [vmem:[%s6333_s18 + $0x218] sm:$0xff] %v604_v3   ;;  %v612_v5 = vld [vmem:[%s6325_s12 + $0x448] sm:$0xff]  }
  0x47   : > { %609 = vst [vmem:[%s6333_s18 + $0x220] sm:$0xff] %v608_v4   ;;  %v616_v6 = vld [vmem:[%s6325_s12 + $0x460] sm:$0xff]   ;;  %v620_v7 = vld [vmem:[%s6325_s12 + $0x468] sm:$0xff]   ;;  %613 = vst [vmem:[%s6333_s18 + $0x228] sm:$0xff] %v612_v5  }
  0x48   : > { %617 = vst [vmem:[%s6333_s18 + $0x230] sm:$0xff] %v616_v6   ;;  %621 = vst [vmem:[%s6333_s18 + $0x238] sm:$0xff] %v620_v7  }
  0x49 PF: > { %s935_s20 = sand.u32 1, %s6188_s15   ;;  %s5351_s21 = sshll.u32 %s6192_s16, 9 }
  0x4a   : > { %s4950_s27 = sshll.u32 %s935_s20, 5  ;;  %s6478_s30 = scalar_lea.hbm %s7905_s1, %s5351_s21 }
  0x4b   : > { %s939_s11 = scalar_lea.vmem [#allocation3], %s4950_s27  ;;  %s6482_s18 = scalar_lea.sflag [#allocation4], %s935_s20 }
  0x4c   : > { %s947_s12 = sshll.u32 %s939_s11, 4  ;;  %s6098_s0 = scalar_lea.hbm %s6478_s30, 512  ;;  %s6480_s12 = int_to_ptr.vmem [resolvable:$true] %s947_s12 }
  0x4d   : > { %p6099_p12 = scmp.ne.s32.totalorder %s6478_s30, %s6098_s0  ;;  %s6102_s21 = scalar_lea.hbm %s7905_s1, 1024 }
  0x4e   : > { %p6103_p1 = scmp.lt.u32.totalorder %s6478_s30, %s7905_s1  ;;  %p6104_p2 = scmp.lt.u32.totalorder %s6102_s21, %s6098_s0 }
  0x4f   : > { %p6100_p13 = pnand %p6099_p12, %p6298_p5  ;;  %p6106_p4 = scmp.lt.u32.totalorder %s6098_s0, %s6478_s30 }
  0x50   : > { %p6105_p3 = por %p6104_p2, %p6103_p1 }
  0x51   : > { %p6101_p0 = pneg %p6100_p13 }
  0x52   : > { %p6107_p7 = por %p6106_p4, %p6105_p3 }
  0x54   : > { %p6108_p8 = pnand %p6107_p7, %p6101_p0 }
  0x56   : > { %6111 = shalt.err (!%p6108_p8)
}
  0x57   : > { %s6112_s20 = scalar_lea.vmem %s6480_s12, 512  ;;  %s6194_s15 = smov [#allocation3]  }
  0x58   : > { %p6113_p12 = scmp.ne.s32.totalorder %s6480_s12, %s6112_s20  ;;  %s6116_s22 = sshll.u32 %s6194_s15, 4  ;;  %s6117_s22 = int_to_ptr.vmem [resolvable:$false] %s6116_s22 }
  0x59   : > { %s6118_s27 = scalar_lea.vmem %s6117_s22, 1024  ;;  %p6119_p10 = scmp.lt.s32.totalorder %s6480_s12, %s6117_s22 }
  0x5a   : > { %p6114_p13 = pnand %p6113_p12, %p6298_p5  ;;  %p6120_p9 = scmp.lt.s32.totalorder %s6118_s27, %s6112_s20 }
  0x5c   : > { %p6115_p11 = pneg %p6114_p13  ;;  %p6121_p1 = por %p6120_p9, %p6119_p10 }
  0x5e   : > { %p6122_p2 = pnand %p6121_p1, %p6115_p11 }
  0x60   : > { %6125 = shalt.err (!%p6122_p2)
}
  0x61   : > { %s6195_s0 = smov 128   ;;  %s6196_s11 = smov 8  }
  0x62   : > { %5669 = dma.hbm_to_vmem [thread:$0]  (%p6298_p5), %s6478_s30, 512, %s6480_s12, %s6482_s18, %s6195_s0, %s6195_s0, %s6196_s11  }
  0x63 PF: > { %p4954_p0 = scmp.ge.s32.totalorder %s6192_s16, 1  ;;  %p955_p3 = scmp.lt.s32.totalorder %s6192_s16, 3 }
  0x65   : > { %p956_p4 = pnand %p4954_p0, %p955_p3 }
  0x66   : > { %s6509_s21 = sand.u32 (!%p956_p4), 1, %s6184_s14  }
  0x67   : > { %959 = sbr.rel (%p956_p4) target bundleno = 1712 (0x6b0), region = 97  ;;  %s4955_s29 = sshll.u32 (!%p956_p4), %s6509_s21, 5 }
  0x68   : > { %s5666_s28 = smul.u32 (!%p956_p4), 576, %s6509_s21  ;;  %s969_s23 = scalar_lea.sflag (!%p956_p4), [#allocation4], %s6509_s21 }
  0x69   : > { %s6516_s30 = scalar_lea.vmem (!%p956_p4), [#allocation3], %s4955_s29 }
  0x6a   : > { %s6513_s20 = scalar_lea.vmem (!%p956_p4), [#allocation2], %s5666_s28 }
  0x6e   : > { %6171 = dma.done.wait (%p6302_p6), %s969_s23, 512  }
  0x6f   : > { %6173 = vsyncadd (%p6302_p6), %s969_s23, 4294966784  ;;  %vm1752_vm0 = vcmask 1045504   ;;  %vm1535_vm1 = vcmask 97280   ;;  %v5718_v8 = vld [vmem:[%s7906_s2] sm:$0x3f]   ;;  %v5720_v11 = vld [vmem:[%s6513_s20 + $0x8] sm:$0xff]  }
  0x70   : > { %v5719_v9 = vld [vmem:[%s6513_s20] sm:$0xff]   ;;  %5663 = vmatprep.subr.msk.bf16.mxu0 %vm1752_vm0, %v5718_v8  ;;  %v1754_v10 = vsel %vm1752_vm0, %v5718_v8, 0  ;;  %5664 = vmatprep.subr.msk.bf16.mxu1 %vm1752_vm0, %v5718_v8  ;;  %v5721_v12 = vld [vmem:[%s6513_s20 + $0x10] sm:$0xff]   ;;  %v5722_v13 = vld [vmem:[%s6513_s20 + $0x18] sm:$0xff]   ;;  %s6197_s22 = smov 16   ;;  %s6198_s18 = smov 32  }
  0x71   : > { %5472 = vmatpush3.bf16.msra.mxu0 %v1754_v10  ;;  %5473 = vmatprep.mubr.msk.bf16.mxu0 %vm1535_vm1, %v5719_v9  ;;  %v5723_v14 = vld [vmem:[%s6513_s20 + $0x20] sm:$0xff]   ;;  %v5724_v15 = vld [vmem:[%s6513_s20 + $0x28] sm:$0xff]   ;;  %v5725_v16 = vld [vmem:[%s6513_s20 + $0x30] sm:$0xff]   ;;  %s6199_s24 = smov 48   ;;  %vm2653_vm2 = vcmask 130048   ;;  %vm2660_vm3 = vcmask 261120  }
  0x72   : > { %5662 = vmatpush3.bf16.msra.mxu1 %v1754_v10  ;;  %v5726_v17 = vld [vmem:[%s6513_s20 + $0x38] sm:$0xff]   ;;  %v5727_v18 = vld [vmem:[%s6513_s20 + $0x40] sm:$0xff]   ;;  %v5728_v19 = vld [vmem:[%s6513_s20 + $0x48] sm:$0xff]   ;;  %vm2665_vm4 = vcmask 392192   ;;  %vm2797_vm5 = vcmask 523264   ;;  %s6201_s29 = smov 96  }
  0x73   : > { %v5729_v20 = vld [vmem:[%s6513_s20 + $0x50] sm:$0xff]   ;;  %v5730_v21 = vld [vmem:[%s6513_s20 + $0x58] sm:$0xff]   ;;  %v5731_v22 = vld [vmem:[%s6513_s20 + $0x60] sm:$0xff]   ;;  %vm2963_vm6 = vcmask 785408   ;;  %s5667_s23 = smul.u32 192, %s6509_s21  ;;  %p7926_p6 = scmp.ne.s32.totalorder %s7923_s25, 0 }
  0x74   : > { %5474 = vmatmul.mubr.msk.bf16.vlgmr.msra.gmra.mrb[0].mxu0 %vm1535_vm1, %v5720_v11  ;;  %v5732_v23 = vld [vmem:[%s6513_s20 + $0x68] sm:$0xff]   ;;  %v5733_v24 = vld [vmem:[%s6513_s20 + $0x70] sm:$0xff]   ;;  %v5734_v25 = vld [vmem:[%s6513_s20 + $0x78] sm:$0xff]  }
  0x75   : > { %5477 = vmatprep.mubr.msk.bf16.mxu0 %vm1535_vm1, %v5721_v12  ;;  %v5735_v26 = vld [vmem:[%s6513_s20 + $0x80] sm:$0xff]   ;;  %v5736_v27 = vld [vmem:[%s6513_s20 + $0x88] sm:$0xff]   ;;  %v5737_v28 = vld [vmem:[%s6513_s20 + $0x90] sm:$0xff]   ;;  %s7805_s12 = scalar_lea.vmem [#allocation6], %s5667_s23 }
  0x76   : > { %v5738_v29 = vld [vmem:[%s6513_s20 + $0x98] sm:$0xff]   ;;  %v5739_v30 = vld [vmem:[%s6513_s20 + $0xa0] sm:$0xff]   ;;  %v5740_v32 = vld [vmem:[%s6513_s20 + $0xa8] sm:$0xff]  }
  0x77   : > { %v5772_v31 = vld [vmem:[%s6513_s20 + $0x200] sm:$0xff]   ;;  %v5741_v33 = vld [vmem:[%s6513_s20 + $0xb0] sm:$0xff]   ;;  %v5774_v34 = vld [vmem:[%s6513_s20 + $0x208] sm:$0xff]  }
  0x78   : > { %5601 = vmatprep.mubr.msk.bf16.mxu1 %vm1535_vm1, %v5772_v31  ;;  %v5742_v35 = vld [vmem:[%s6513_s20 + $0xb8] sm:$0xff]   ;;  %v5743_v36 = vld [vmem:[%s6513_s20 + $0xc0] sm:$0xff]   ;;  %v5776_v37 = vld [vmem:[%s6513_s20 + $0x210] sm:$0xff]  }
  0x79   : > { %5602 = vmatmul.mubr.msk.bf16.vlgmr.msra.gmra.mrb[0].mxu1 %vm1535_vm1, %v5774_v34  ;;  %v5778_v38 = vld [vmem:[%s6513_s20 + $0x218] sm:$0xff]   ;;  %v5744_v39 = vld [vmem:[%s6513_s20 + $0xc8] sm:$0xff]   ;;  %v5745_v40 = vld [vmem:[%s6513_s20 + $0xd0] sm:$0xff]  }
  0x7a   : > { %5605 = vmatprep.mubr.msk.bf16.mxu1 %vm1535_vm1, %v5776_v37  ;;  %v5780_v41 = vld [vmem:[%s6513_s20 + $0x220] sm:$0xff]   ;;  %v5782_v42 = vld [vmem:[%s6513_s20 + $0x228] sm:$0xff]   ;;  %v5746_v43 = vld [vmem:[%s6513_s20 + $0xd8] sm:$0xff]  }
  0x7b   : > { %v5747_v44 = vld [vmem:[%s6513_s20 + $0xe0] sm:$0xff]   ;;  %v5784_v45 = vld [vmem:[%s6513_s20 + $0x230] sm:$0xff]   ;;  %v5786_v46 = vld [vmem:[%s6513_s20 + $0x238] sm:$0xff]  }
  0x7c   : > { %5478 = vmatmul.mubr.msk.bf16.gmra.mrb[4].mxu0 %vm1535_vm1, %v5722_v13  ;;  %v5748_v47 = vld [vmem:[%s6513_s20 + $0xe8] sm:$0xff]   ;;  %v5749_v48 = vld [vmem:[%s6513_s20 + $0xf0] sm:$0xff]   ;;  %v5750_v49 = vld [vmem:[%s6513_s20 + $0xf8] sm:$0xff]  }
  0x7d   : > { %5481 = vmatprep.mubr.msk.bf16.mxu0 %vm1535_vm1, %v5723_v14  ;;  %v5751_v50 = vld [vmem:[%s6513_s20 + $0x100] sm:$0xff]   ;;  %v5752_v51 = vld [vmem:[%s6513_s20 + $0x108] sm:$0xff]   ;;  %v5753_v52 = vld [vmem:[%s6513_s20 + $0x110] sm:$0xff]  }
  0x7e   : > { %v5754_v53 = vld [vmem:[%s6513_s20 + $0x118] sm:$0xff]   ;;  %v5755_v54 = vld [vmem:[%s6513_s20 + $0x120] sm:$0xff]   ;;  %v5756_v55 = vld [vmem:[%s6513_s20 + $0x128] sm:$0xff]  }
  0x7f   : > { %v5757_v56 = vld [vmem:[%s6513_s20 + $0x130] sm:$0xff]   ;;  %v5758_v57 = vld [vmem:[%s6513_s20 + $0x138] sm:$0xff]   ;;  %v5759_v58 = vld [vmem:[%s6513_s20 + $0x140] sm:$0xff]  }
  0x80   : > { %v5760_v59 = vld [vmem:[%s6513_s20 + $0x148] sm:$0xff]   ;;  %v5761_v60 = vld [vmem:[%s6513_s20 + $0x150] sm:$0xff]   ;;  %v5762_v61 = vld [vmem:[%s6513_s20 + $0x158] sm:$0xff]  }
  0x81   : > { %5606 = vmatmul.mubr.msk.bf16.gmra.mrb[4].mxu1 %vm1535_vm1, %v5778_v38  ;;  %v5763_v62 = vld [vmem:[%s6513_s20 + $0x160] sm:$0xff]   ;;  %v5764_v63 = vld [vmem:[%s6513_s20 + $0x168] sm:$0xff]   ;;  %v5765_v0 = vld [vmem:[%s6513_s20 + $0x170] sm:$0xff]  }
  0x82   : > { %5609 = vmatprep.mubr.msk.bf16.mxu1 %vm1535_vm1, %v5780_v41  ;;  %v5766_v1 = vld [vmem:[%s6513_s20 + $0x178] sm:$0xff]   ;;  %v5767_v2 = vld [vmem:[%s6513_s20 + $0x180] sm:$0xff]   ;;  %v5768_v3 = vld [vmem:[%s6513_s20 + $0x188] sm:$0xff]  }
  0x83   : > { %v5769_v4 = vld [vmem:[%s6513_s20 + $0x190] sm:$0xff]   ;;  %v5770_v5 = vld [vmem:[%s6513_s20 + $0x198] sm:$0xff]   ;;  %v5771_v6 = vld [vmem:[%s6513_s20 + $0x1a0] sm:$0xff]  }
  0x84   : > { %5482 = vmatmul.mubr.msk.bf16.gmra.mrb[8].mxu0 %vm1535_vm1, %v5724_v15  ;;  %v5773_v7 = vld [vmem:[%s6513_s20 + $0x1a8] sm:$0xff]   ;;  %v5775_v8 = vld [vmem:[%s6513_s20 + $0x1b0] sm:$0xff]   ;;  %v6653_v9 = vld [vmem:[%s7907_s3] ss:$0 sm:$0xff] }
  0x85   : > { %5485 = vmatprep.mubr.msk.bf16.mxu0 %vm1535_vm1, %v5725_v16  ;;  %v5777_v13 = vld [vmem:[%s6513_s20 + $0x1b8] sm:$0xff]   ;;  %v5779_v16 = vld [vmem:[%s6513_s20 + $0x1c0] sm:$0xff]  }
  0x89   : > { %5610 = vmatmul.mubr.msk.bf16.gmra.mrb[8].mxu1 %vm1535_vm1, %v5782_v42 }
  0x8a   : > { %5613 = vmatprep.mubr.msk.bf16.mxu1 %vm1535_vm1, %v5784_v45 }
  0x8c   : > { %5486 = vmatmul.mubr.msk.bf16.gmra.mrb[12].mxu0 %vm1535_vm1, %v5726_v17 }
  0x8d   : > { %5489 = vmatprep.mubr.msk.bf16.mxu0 %vm1535_vm1, %v5727_v18 }
  0x91   : > { %5614 = vmatmul.mubr.msk.bf16.gmra.mrb[12].mxu1 %vm1535_vm1, %v5786_v46  ;;  %v5785_v46 = vld [vmem:[%s6513_s20 + $0x1d8] sm:$0xff]  }
  0x94   : > { %5490 = vmatmul.mubr.msk.bf16.gmra.mrb[16].mxu0 %vm1535_vm1, %v5728_v19 }
  0x95   : > { %5493 = vmatprep.mubr.msk.bf16.mxu0 %vm1535_vm1, %v5729_v20 }
  0x9c   : > { %5494 = vmatmul.mubr.msk.bf16.gmra.mrb[20].mxu0 %vm1535_vm1, %v5730_v21 }
  0x9d   : > { %5497 = vmatprep.mubr.msk.bf16.mxu0 %vm1535_vm1, %v5731_v22 }
  0xa4   : > { %5498 = vmatmul.mubr.msk.bf16.gmra.mrb[24].mxu0 %vm1535_vm1, %v5732_v23 }
  0xa5   : > { %5501 = vmatprep.mubr.msk.bf16.mxu0 %vm1535_vm1, %v5733_v24 }
  0xac   : > { %5502 = vmatmul.mubr.msk.bf16.gmra.mrb[28].mxu0 %vm1535_vm1, %v5734_v25 }
  0xad   : > { %5505 = vmatprep.mubr.msk.bf16.mxu0 %vm1535_vm1, %v5735_v26 }
  0xb4   : > { %5506 = vmatmul.mubr.msk.bf16.gmra.mrb[32].mxu0 %vm1535_vm1, %v5736_v27 }
  0xb5   : > { %5509 = vmatprep.mubr.msk.bf16.mxu0 %vm1535_vm1, %v5737_v28 }
  0xbc   : > { %5510 = vmatmul.mubr.msk.bf16.gmra.mrb[36].mxu0 %vm1535_vm1, %v5738_v29  ;;  %v5781_v29 = vld [vmem:[%s6513_s20 + $0x1c8] sm:$0xff]  }
  0xbd   : > { %5513 = vmatprep.mubr.msk.bf16.mxu0 %vm1535_vm1, %v5739_v30 }
  0xc4   : > { %5514 = vmatmul.mubr.msk.bf16.gmra.mrb[40].mxu0 %vm1535_vm1, %v5740_v32  ;;  %v5783_v32 = vld [vmem:[%s6513_s20 + $0x1d0] sm:$0xff]  }
  0xc5   : > { %5517 = vmatprep.mubr.msk.bf16.mxu0 %vm1535_vm1, %v5741_v33 }
  0xcc   : > { %5518 = vmatmul.mubr.msk.bf16.gmra.mrb[44].mxu0 %vm1535_vm1, %v5742_v35 }
  0xcd   : > { %5521 = vmatprep.mubr.msk.bf16.mxu0 %vm1535_vm1, %v5743_v36 }
  0xd4   : > { %5522 = vmatmul.mubr.msk.bf16.gmra.mrb[48].mxu0 %vm1535_vm1, %v5744_v39 }
  0xd5   : > { %5525 = vmatprep.mubr.msk.bf16.mxu0 %vm1535_vm1, %v5745_v40 }
  0xdc   : > { %5526 = vmatmul.mubr.msk.bf16.gmra.mrb[52].mxu0 %vm1535_vm1, %v5746_v43 }
  0xdd   : > { %5529 = vmatprep.mubr.msk.bf16.mxu0 %vm1535_vm1, %v5747_v44 }
  0xe4   : > { %5530 = vmatmul.mubr.msk.bf16.gmra.mrb[56].mxu0 %vm1535_vm1, %v5748_v47 }
  0xe5   : > { %5533 = vmatprep.mubr.msk.bf16.mxu0 %vm1535_vm1, %v5749_v48 }
  0xec   : > { %5534 = vmatmul.mubr.msk.bf16.gmra.mrb[60].mxu0 %vm1535_vm1, %v5750_v49 }
  0xed   : > { %5537 = vmatprep.mubr.msk.bf16.mxu0 %vm1535_vm1, %v5751_v50  ;;  %v5787_v50 = vld [vmem:[%s6513_s20 + $0x1e0] sm:$0xff]  }
  0xf4   : > { %5538 = vmatmul.mubr.msk.bf16.gmra.mrb[64].mxu0 %vm1535_vm1, %v5752_v51 }
  0xf5   : > { %5541 = vmatprep.mubr.msk.bf16.mxu0 %vm1535_vm1, %v5753_v52 }
  0xfc   : > { %5542 = vmatmul.mubr.msk.bf16.gmra.mrb[68].mxu0 %vm1535_vm1, %v5754_v53 }
  0xfd   : > { %5545 = vmatprep.mubr.msk.bf16.mxu0 %vm1535_vm1, %v5755_v54 }
 0x104   : > { %5546 = vmatmul.mubr.msk.bf16.gmra.mrb[72].mxu0 %vm1535_vm1, %v5756_v55 }
 0x105   : > { %5549 = vmatprep.mubr.msk.bf16.mxu0 %vm1535_vm1, %v5757_v56 }
 0x10c   : > { %5550 = vmatmul.mubr.msk.bf16.gmra.mrb[76].mxu0 %vm1535_vm1, %v5758_v57 }
 0x10d   : > { %5553 = vmatprep.mubr.msk.bf16.mxu0 %vm1535_vm1, %v5759_v58 }
 0x114   : > { %5554 = vmatmul.mubr.msk.bf16.gmra.mrb[80].mxu0 %vm1535_vm1, %v5760_v59 }
 0x115   : > { %5557 = vmatprep.mubr.msk.bf16.mxu0 %vm1535_vm1, %v5761_v60 }
 0x11c   : > { %5558 = vmatmul.mubr.msk.bf16.gmra.mrb[84].mxu0 %vm1535_vm1, %v5762_v61 }
 0x11d   : > { %5561 = vmatprep.mubr.msk.bf16.mxu0 %vm1535_vm1, %v5763_v62 }
 0x124   : > { %5562 = vmatmul.mubr.msk.bf16.gmra.mrb[88].mxu0 %vm1535_vm1, %v5764_v63  ;;  %v5788_v63 = vld [vmem:[%s6513_s20 + $0x1e8] sm:$0xff]  }
 0x125   : > { %5565 = vmatprep.mubr.msk.bf16.mxu0 %vm1535_vm1, %v5765_v0 }
 0x12c   : > { %5566 = vmatmul.mubr.msk.bf16.gmra.mrb[92].mxu0 %vm1535_vm1, %v5766_v1 }
 0x12d   : > { %5569 = vmatprep.mubr.msk.bf16.mxu0 %vm1535_vm1, %v5767_v2  ;;  %v5789_v2 = vld [vmem:[%s6513_s20 + $0x1f0] sm:$0xff]  }
 0x134   : > { %5570 = vmatmul.mubr.msk.bf16.gmra.mrb[96].mxu0 %vm1535_vm1, %v5768_v3 }
 0x135   : > { %5573 = vmatprep.mubr.msk.bf16.mxu0 %vm1535_vm1, %v5769_v4 }
 0x13c   : > { %5574 = vmatmul.mubr.msk.bf16.gmra.mrb[100].mxu0 %vm1535_vm1, %v5770_v5 }
 0x13d   : > { %5577 = vmatprep.mubr.msk.bf16.mxu0 %vm1535_vm1, %v5771_v6 }
 0x144   : > { %5578 = vmatmul.mubr.msk.bf16.gmra.mrb[104].mxu0 %vm1535_vm1, %v5773_v7 }
 0x145   : > { %5581 = vmatprep.mubr.msk.bf16.mxu0 %vm1535_vm1, %v5775_v8 }
 0x147   : > { %v5475_v10 = vpop.f32.mrb[0].mxu0 }
 0x148   : > { %v1799_v11 = vadd.f32 %v5475_v10, %v6653_v9  ;;  %v1790_v12 = vpop.f32.mrb[1].mxu0 }
 0x149   : > { %v1791_v14 = vadd.f32 %v6653_v9, %v1790_v12  ;;  %v5476_v15 = vpop.f32.mrb[2].mxu0 }
 0x14a   : > { %v1802_v17 = vadd.f32 %v5476_v15, %v6653_v9  ;;  %v1793_v18 = vpop.f32.mrb[3].mxu0  ;;  %v2367_v20 = vmax.f32 %v1799_v11, 0.0 }
 0x14b   : > { %v1794_v19 = vadd.f32 %v6653_v9, %v1793_v18  ;;  %v2365_v22 = vmax.f32 %v1791_v14, 0.0 }
 0x14c   : > { %v2368_v21 = vmax.f32 %v1802_v17, 0.0  ;;  %5582 = vmatmul.mubr.msk.bf16.gmra.mrb[108].mxu0 %vm1535_vm1, %v5777_v13 }
 0x14d   : > { %v2366_v23 = vmax.f32 %v1794_v19, 0.0  ;;  %5585 = vmatprep.mubr.msk.bf16.mxu0 %vm1535_vm1, %v5779_v16  ;;  %v5790_v16 = vld [vmem:[%s6513_s20 + $0x1f8] sm:$0xff]  }
 0x14e   : > { %v6664_v24 = vpack.c.bf16 %v2368_v21, %v2367_v20 }
 0x14f   : > { %v6666_v25 = vpack.c.bf16 %v2366_v23, %v2365_v22  ;;  %v5479_v26 = vpop.f32.mrb[4].mxu0 }
 0x150   : > { %v1815_v27 = vadd.f32 %v5479_v26, %v6653_v9  ;;  %v1806_v28 = vpop.f32.mrb[5].mxu0 }
 0x151   : > { %v1807_v30 = vadd.f32 %v6653_v9, %v1806_v28  ;;  %v5480_v31 = vpop.f32.mrb[6].mxu0 }
 0x152   : > { %v1818_v33 = vadd.f32 %v5480_v31, %v6653_v9  ;;  %v1809_v34 = vpop.f32.mrb[7].mxu0  ;;  %v2371_v36 = vmax.f32 %v1815_v27, 0.0 }
 0x153   : > { %v1810_v35 = vadd.f32 %v6653_v9, %v1809_v34  ;;  %v2369_v38 = vmax.f32 %v1807_v30, 0.0 }
 0x154   : > { %v2372_v37 = vmax.f32 %v1818_v33, 0.0  ;;  %5586 = vmatmul.mubr.msk.bf16.gmra.mrb[112].mxu0 %vm1535_vm1, %v5781_v29 }
 0x155   : > { %v2370_v39 = vmax.f32 %v1810_v35, 0.0  ;;  %5589 = vmatprep.mubr.msk.bf16.mxu0 %vm1535_vm1, %v5783_v32 }
 0x156   : > { %v6676_v40 = vpack.c.bf16 %v2372_v37, %v2371_v36 }
 0x157   : > { %v6678_v41 = vpack.c.bf16 %v2370_v39, %v2369_v38  ;;  %v5483_v42 = vpop.f32.mrb[8].mxu0 }
 0x158   : > { %v2582_v43 = vmax.bf16 %v6676_v40, %v6664_v24  ;;  %v1831_v44 = vadd.f32 %v5483_v42, %v6653_v9  ;;  %v1822_v45 = vpop.f32.mrb[9].mxu0 }
 0x159   : > { %v2581_v47 = vmax.bf16 %v6678_v41, %v6666_v25  ;;  %v1823_v48 = vadd.f32 %v6653_v9, %v1822_v45  ;;  %v5484_v49 = vpop.f32.mrb[10].mxu0 }
 0x15a   : > { %v1834_v51 = vadd.f32 %v5484_v49, %v6653_v9  ;;  %v1825_v52 = vpop.f32.mrb[11].mxu0  ;;  %v2375_v54 = vmax.f32 %v1831_v44, 0.0 }
 0x15b   : > { %v1826_v53 = vadd.f32 %v6653_v9, %v1825_v52  ;;  %v2373_v56 = vmax.f32 %v1823_v48, 0.0 }
 0x15c   : > { %v2376_v55 = vmax.f32 %v1834_v51, 0.0  ;;  %5590 = vmatmul.mubr.msk.bf16.gmra.mrb[116].mxu0 %vm1535_vm1, %v5785_v46 }
 0x15d   : > { %v2374_v57 = vmax.f32 %v1826_v53, 0.0  ;;  %5593 = vmatprep.mubr.msk.bf16.mxu0 %vm1535_vm1, %v5787_v50 }
 0x15e   : > { %v6692_v58 = vpack.c.bf16 %v2376_v55, %v2375_v54 }
 0x15f   : > { %v6694_v59 = vpack.c.bf16 %v2374_v57, %v2373_v56  ;;  %v5487_v60 = vpop.f32.mrb[12].mxu0 }
 0x160   : > { %v1847_v61 = vadd.f32 %v5487_v60, %v6653_v9  ;;  %v1838_v62 = vpop.f32.mrb[13].mxu0 }
 0x161   : > { %v1839_v0 = vadd.f32 %v6653_v9, %v1838_v62  ;;  %v5488_v1 = vpop.f32.mrb[14].mxu0 }
 0x162   : > { %v1850_v3 = vadd.f32 %v5488_v1, %v6653_v9  ;;  %v1841_v4 = vpop.f32.mrb[15].mxu0  ;;  %v2379_v6 = vmax.f32 %v1847_v61, 0.0 }
 0x163   : > { %v1842_v5 = vadd.f32 %v6653_v9, %v1841_v4  ;;  %v2377_v8 = vmax.f32 %v1839_v0, 0.0 }
 0x164   : > { %v2380_v7 = vmax.f32 %v1850_v3, 0.0  ;;  %5594 = vmatmul.mubr.msk.bf16.gmra.mrb[120].mxu0 %vm1535_vm1, %v5788_v63 }
 0x165   : > { %v2378_v10 = vmax.f32 %v1842_v5, 0.0  ;;  %5597 = vmatprep.mubr.msk.bf16.mxu0 %vm1535_vm1, %v5789_v2 }
 0x166   : > { %v6704_v11 = vpack.c.bf16 %v2380_v7, %v2379_v6 }
 0x167   : > { %v6706_v12 = vpack.c.bf16 %v2378_v10, %v2377_v8  ;;  %v5491_v13 = vpop.f32.mrb[16].mxu0 }
 0x168   : > { %v1863_v14 = vadd.f32 %v5491_v13, %v6653_v9  ;;  %v1854_v15 = vpop.f32.mrb[17].mxu0  ;;  %v2588_v17 = vmax.bf16 %v6704_v11, %v6692_v58 }
 0x169   : > { %v2587_v18 = vmax.bf16 %v6706_v12, %v6694_v59  ;;  %v1855_v19 = vadd.f32 %v6653_v9, %v1854_v15  ;;  %v5492_v20 = vpop.f32.mrb[18].mxu0 }
 0x16a   : > { %v1866_v21 = vadd.f32 %v5492_v20, %v6653_v9  ;;  %v1857_v22 = vpop.f32.mrb[19].mxu0  ;;  %v2383_v26 = vmax.f32 %v1863_v14, 0.0 }
 0x16b   : > { %v1858_v23 = vadd.f32 %v6653_v9, %v1857_v22  ;;  %v2381_v28 = vmax.f32 %v1855_v19, 0.0 }
 0x16c   : > { %v2384_v27 = vmax.f32 %v1866_v21, 0.0  ;;  %5598 = vmatmul.mubr.msk.bf16.gmra.mrb[124].mxu0 %vm1535_vm1, %v5790_v16 }
 0x16d   : > { %v2382_v29 = vmax.f32 %v1858_v23, 0.0 }
 0x16e   : > { %v6718_v30 = vpack.c.bf16 %v2384_v27, %v2383_v26 }
 0x16f   : > { %v6720_v31 = vpack.c.bf16 %v2382_v29, %v2381_v28  ;;  %v5495_v32 = vpop.f32.mrb[20].mxu0 }
 0x170   : > { %v1879_v33 = vadd.f32 %v5495_v32, %v6653_v9  ;;  %v1870_v34 = vpop.f32.mrb[21].mxu0 }
 0x171   : > { %v1871_v35 = vadd.f32 %v6653_v9, %v1870_v34  ;;  %v5496_v36 = vpop.f32.mrb[22].mxu0 }
 0x172   : > { %v1882_v37 = vadd.f32 %v5496_v36, %v6653_v9  ;;  %v1873_v38 = vpop.f32.mrb[23].mxu0  ;;  %v2387_v42 = vmax.f32 %v1879_v33, 0.0 }
 0x173   : > { %v1874_v39 = vadd.f32 %v6653_v9, %v1873_v38  ;;  %v2385_v45 = vmax.f32 %v1871_v35, 0.0 }
 0x174   : > { %v2388_v44 = vmax.f32 %v1882_v37, 0.0 }
 0x175   : > { %v2386_v46 = vmax.f32 %v1874_v39, 0.0 }
 0x176   : > { %v6726_v48 = vpack.c.bf16 %v2388_v44, %v2387_v42 }
 0x177   : > { %v6728_v49 = vpack.c.bf16 %v2386_v46, %v2385_v45  ;;  %v5499_v50 = vpop.f32.mrb[24].mxu0 }
 0x178   : > { %v1895_v51 = vadd.f32 %v5499_v50, %v6653_v9  ;;  %v1886_v52 = vpop.f32.mrb[25].mxu0  ;;  %v2594_v53 = vmax.bf16 %v6726_v48, %v6718_v30 }
 0x179   : > { %v2593_v54 = vmax.bf16 %v6728_v49, %v6720_v31  ;;  %v1887_v55 = vadd.f32 %v6653_v9, %v1886_v52  ;;  %v5500_v56 = vpop.f32.mrb[26].mxu0 }
 0x17a   : > { %v1898_v57 = vadd.f32 %v5500_v56, %v6653_v9  ;;  %v1889_v60 = vpop.f32.mrb[27].mxu0  ;;  %v2391_v62 = vmax.f32 %v1895_v51, 0.0 }
 0x17b   : > { %v1890_v61 = vadd.f32 %v6653_v9, %v1889_v60  ;;  %v2389_v0 = vmax.f32 %v1887_v55, 0.0 }
 0x17c   : > { %v2392_v63 = vmax.f32 %v1898_v57, 0.0 }
 0x17d   : > { %v2390_v1 = vmax.f32 %v1890_v61, 0.0 }
 0x17e   : > { %v2522_v2 = vpack.c.bf16 %v2392_v63, %v2391_v62 }
 0x17f   : > { %v2521_v3 = vpack.c.bf16 %v2390_v1, %v2389_v0  ;;  %v5503_v4 = vpop.f32.mrb[28].mxu0 }
 0x180   : > { %v1911_v5 = vadd.f32 %v5503_v4, %v6653_v9  ;;  %v1902_v6 = vpop.f32.mrb[29].mxu0 }
 0x181   : > { %v1903_v7 = vadd.f32 %v6653_v9, %v1902_v6  ;;  %v5504_v8 = vpop.f32.mrb[30].mxu0 }
 0x182   : > { %v1914_v10 = vadd.f32 %v5504_v8, %v6653_v9  ;;  %v1905_v13 = vpop.f32.mrb[31].mxu0  ;;  %v2395_v15 = vmax.f32 %v1911_v5, 0.0 }
 0x183   : > { %v1906_v14 = vadd.f32 %v6653_v9, %v1905_v13  ;;  %v2393_v19 = vmax.f32 %v1903_v7, 0.0 }
 0x184   : > { %v2396_v16 = vmax.f32 %v1914_v10, 0.0 }
 0x185   : > { %v2394_v20 = vmax.f32 %v1906_v14, 0.0  ;;  %v5603_v14 = vpop.f32.mrb[0].mxu1 }
 0x186   : > { %v2524_v21 = vpack.c.bf16 %v2396_v16, %v2395_v15 }
 0x187   : > { %v2523_v22 = vpack.c.bf16 %v2394_v20, %v2393_v19  ;;  %v5507_v23 = vpop.f32.mrb[32].mxu0  ;;  %v2302_v19 = vpop.f32.mrb[1].mxu1 }
 0x188   : > { %v2584_v26 = vmax.bf16 %v2524_v21, %v2522_v2  ;;  %v1927_v27 = vadd.f32 %v5507_v23, %v6653_v9  ;;  %v1918_v28 = vpop.f32.mrb[33].mxu0  ;;  %v5604_v58 = vpop.f32.mrb[2].mxu1  ;;  %v2303_v59 = vadd.f32 %v6653_v9, %v2302_v19 }
 0x189   : > { %v2583_v29 = vmax.bf16 %v2523_v22, %v2521_v3  ;;  %v1919_v32 = vadd.f32 %v6653_v9, %v1918_v28  ;;  %v5508_v33 = vpop.f32.mrb[34].mxu0  ;;  %v2314_v12 = vadd.f32 %v5604_v58, %v6653_v9 }
 0x18a   : > { %v1930_v34 = vadd.f32 %v5508_v33, %v6653_v9  ;;  %v1921_v35 = vpop.f32.mrb[35].mxu0  ;;  %v6748_v36 = vmax.bf16 %v2584_v26, %v2582_v43  ;;  %v2399_v39 = vmax.f32 %v1927_v27, 0.0  ;;  %v2311_v26 = vadd.f32 %v5603_v14, %v6653_v9 }
 0x18b   : > { %v1922_v37 = vadd.f32 %v6653_v9, %v1921_v35  ;;  %v6754_v38 = vmax.bf16 %v2583_v29, %v2581_v47  ;;  %v2397_v44 = vmax.f32 %v1919_v32, 0.0 }
 0x18c   : > { %v2400_v42 = vmax.f32 %v1930_v34, 0.0  ;;  %v2495_v35 = vmax.f32 %v2311_v26, 0.0 }
 0x18d   : > { %v2398_v45 = vmax.f32 %v1922_v37, 0.0  ;;  %v2493_v37 = vmax.f32 %v2303_v59, 0.0 }
 0x18e   : > { %v2526_v46 = vpack.c.bf16 %v2400_v42, %v2399_v39  ;;  %v2496_v39 = vmax.f32 %v2314_v12, 0.0 }
 0x18f   : > { %v2525_v50 = vpack.c.bf16 %v2398_v45, %v2397_v44  ;;  %v5511_v51 = vpop.f32.mrb[36].mxu0 }
 0x190   : > { %v1943_v52 = vadd.f32 %v5511_v51, %v6653_v9  ;;  %v1934_v55 = vpop.f32.mrb[37].mxu0 }
 0x191   : > { %v1935_v24 = vadd.f32 %v6653_v9, %v1934_v55  ;;  %v5512_v40 = vpop.f32.mrb[38].mxu0 }
 0x192   : > { %v1946_v43 = vadd.f32 %v5512_v40, %v6653_v9  ;;  %v1937_v56 = vpop.f32.mrb[39].mxu0  ;;  %v2403_v41 = vmax.f32 %v1943_v52, 0.0 }
 0x193   : > { %v1938_v25 = vadd.f32 %v6653_v9, %v1937_v56  ;;  %v2401_v57 = vmax.f32 %v1935_v24, 0.0  ;;  %v6787_v24 = vpack.c.bf16 %v2496_v39, %v2495_v35 }
 0x194   : > { %v2404_v47 = vmax.f32 %v1946_v43, 0.0 }
 0x195   : > { %v2402_v60 = vmax.f32 %v1938_v25, 0.0 }
 0x196   : > { %v2528_v61 = vpack.c.bf16 %v2404_v47, %v2403_v41 }
 0x197   : > { %v2527_v62 = vpack.c.bf16 %v2402_v60, %v2401_v57  ;;  %v5515_v63 = vpop.f32.mrb[40].mxu0 }
 0x198   : > { %v1959_v0 = vadd.f32 %v5515_v63, %v6653_v9  ;;  %v1950_v1 = vpop.f32.mrb[41].mxu0  ;;  %v2590_v2 = vmax.bf16 %v2528_v61, %v2526_v46 }
 0x199   : > { %v2589_v3 = vmax.bf16 %v2527_v62, %v2525_v50  ;;  %v1951_v4 = vadd.f32 %v6653_v9, %v1950_v1  ;;  %v5516_v5 = vpop.f32.mrb[42].mxu0 }
 0x19a   : > { %v1962_v6 = vadd.f32 %v5516_v5, %v6653_v9  ;;  %v1953_v7 = vpop.f32.mrb[43].mxu0  ;;  %v6766_v8 = vmax.bf16 %v2590_v2, %v2588_v17  ;;  %v2407_v15 = vmax.f32 %v1959_v0, 0.0  ;;  %v2305_v17 = vpop.f32.mrb[3].mxu1 }
 0x19b   : > { %v1954_v10 = vadd.f32 %v6653_v9, %v1953_v7  ;;  %v6772_v13 = vmax.bf16 %v2589_v3, %v2587_v18  ;;  %v2405_v20 = vmax.f32 %v1951_v4, 0.0  ;;  %v5607_v18 = vpop.f32.mrb[4].mxu1  ;;  %v2306_v29 = vadd.f32 %v6653_v9, %v2305_v17 }
 0x19c   : > { %v2408_v16 = vmax.f32 %v1962_v6, 0.0  ;;  %2639 = vrot.lane.b32.xlu0 %v6766_v8, %s6197_s22  ;;  %v2318_v32 = vpop.f32.mrb[5].mxu1  ;;  %v2327_v50 = vadd.f32 %v5607_v18, %v6653_v9 }
 0x19d   : > { %v2406_v21 = vmax.f32 %v1954_v10, 0.0  ;;  %v5608_v42 = vpop.f32.mrb[6].mxu1  ;;  %v2494_v46 = vmax.f32 %v2306_v29, 0.0  ;;  %v2319_v40 = vadd.f32 %v6653_v9, %v2318_v32 }
 0x19e   : > { %v2530_v11 = vpack.c.bf16 %v2408_v16, %v2407_v15  ;;  %v2321_v51 = vpop.f32.mrb[7].mxu1  ;;  %v2499_v25 = vmax.f32 %v2327_v50, 0.0  ;;  %v2330_v41 = vadd.f32 %v5608_v42, %v6653_v9 }
 0x19f   : > { %v2529_v22 = vpack.c.bf16 %v2406_v21, %v2405_v20  ;;  %v5519_v23 = vpop.f32.mrb[44].mxu0  ;;  %v6790_v56 = vpack.c.bf16 %v2494_v46, %v2493_v37  ;;  %v2497_v60 = vmax.f32 %v2319_v40, 0.0  ;;  %v2322_v61 = vadd.f32 %v6653_v9, %v2321_v51 }
 0x1a0   : > { %v1975_v27 = vadd.f32 %v5519_v23, %v6653_v9  ;;  %v1966_v28 = vpop.f32.mrb[45].mxu0  ;;  %2637 = vrot.lane.b32.xlu0 %v6772_v13, %s6197_s22  ;;  %v2500_v63 = vmax.f32 %v2330_v41, 0.0 }
 0x1a1   : > { %v1967_v33 = vadd.f32 %v6653_v9, %v1966_v28  ;;  %v5520_v34 = vpop.f32.mrb[46].mxu0  ;;  %v2498_v2 = vmax.f32 %v2322_v61, 0.0 }
 0x1a2   : > { %v1978_v44 = vadd.f32 %v5520_v34, %v6653_v9  ;;  %v1969_v45 = vpop.f32.mrb[47].mxu0  ;;  %v2411_v52 = vmax.f32 %v1975_v27, 0.0  ;;  %v6795_v6 = vpack.c.bf16 %v2500_v63, %v2499_v25 }
 0x1a3   : > { %v1970_v55 = vadd.f32 %v6653_v9, %v1969_v45  ;;  %v2409_v47 = vmax.f32 %v1967_v33, 0.0  ;;  %v6798_v15 = vpack.c.bf16 %v2498_v2, %v2497_v60 }
 0x1a4   : > { %v2412_v43 = vmax.f32 %v1978_v44, 0.0  ;;  %v2626_v21 = vmax.bf16 %v6795_v6, %v6787_v24 }
 0x1a5   : > { %v2410_v57 = vmax.f32 %v1970_v55, 0.0  ;;  %v2625_v17 = vmax.bf16 %v6798_v15, %v6790_v56 }
 0x1a6   : > { %v2532_v62 = vpack.c.bf16 %v2412_v43, %v2411_v52 }
 0x1a7   : > { %v2531_v0 = vpack.c.bf16 %v2410_v57, %v2409_v47  ;;  %v5523_v1 = vpop.f32.mrb[48].mxu0 }
 0x1a8   : > { %v1991_v3 = vadd.f32 %v5523_v1, %v6653_v9  ;;  %v1982_v4 = vpop.f32.mrb[49].mxu0  ;;  %v2596_v5 = vmax.bf16 %v2532_v62, %v2530_v11 }
 0x1a9   : > { %v2595_v7 = vmax.bf16 %v2531_v0, %v2529_v22  ;;  %v1983_v10 = vadd.f32 %v6653_v9, %v1982_v4  ;;  %v5524_v14 = vpop.f32.mrb[50].mxu0  ;;  %v5611_v22 = vpop.f32.mrb[8].mxu1 }
 0x1aa   : > { %v1994_v16 = vadd.f32 %v5524_v14, %v6653_v9  ;;  %v1985_v19 = vpop.f32.mrb[51].mxu0  ;;  %v2598_v20 = vmax.bf16 %v2596_v5, %v2594_v53  ;;  %v2415_v23 = vmax.f32 %v1991_v3, 0.0  ;;  %v2334_v59 = vpop.f32.mrb[9].mxu1  ;;  %v2343_v49 = vadd.f32 %v5611_v22, %v6653_v9 }
 0x1ab   : > { %v1986_v58 = vadd.f32 %v6653_v9, %v1985_v19  ;;  %v2597_v11 = vmax.bf16 %v2595_v7, %v2593_v54  ;;  %v2413_v30 = vmax.f32 %v1983_v10, 0.0  ;;  %v5612_v53 = vpop.f32.mrb[10].mxu1  ;;  %v2335_v54 = vadd.f32 %v6653_v9, %v2334_v59 }
 0x1ac   : > { %v2416_v26 = vmax.f32 %v1994_v16, 0.0  ;;  %2674 = vrot.lane.b32.xlu1 %v2598_v20, %s6197_s22  ;;  %v2337_v18 = vpop.f32.mrb[11].mxu1  ;;  %v2346_v28 = vadd.f32 %v5612_v53, %v6653_v9  ;;  %v2503_v42 = vmax.f32 %v2343_v49, 0.0 }
 0x1ad   : > { %v2414_v48 = vmax.f32 %v1986_v58, 0.0  ;;  %2672 = vrot.lane.b32.xlu0 %v2597_v11, %s6197_s22  ;;  %v5615_v29 = vpop.f32.mrb[12].mxu1  ;;  %v2338_v34 = vadd.f32 %v6653_v9, %v2337_v18  ;;  %v2501_v44 = vmax.f32 %v2335_v54, 0.0 }
 0x1ae   : > { %v6814_v12 = vpack.c.bf16 %v2416_v26, %v2415_v23  ;;  %v2350_v35 = vpop.f32.mrb[13].mxu1  ;;  %v2504_v45 = vmax.f32 %v2346_v28, 0.0  ;;  %v2359_v55 = vadd.f32 %v5615_v29, %v6653_v9 }
 0x1af   : > { %v6816_v27 = vpack.c.bf16 %v2414_v48, %v2413_v30  ;;  %v5527_v31 = vpop.f32.mrb[52].mxu0  ;;  %v5616_v46 = vpop.f32.mrb[14].mxu1  ;;  %v2502_v52 = vmax.f32 %v2338_v34, 0.0  ;;  %v2351_v47 = vadd.f32 %v6653_v9, %v2350_v35 }
 0x1b0   : > { %v2007_v32 = vadd.f32 %v5527_v31, %v6653_v9  ;;  %v1998_v33 = vpop.f32.mrb[53].mxu0  ;;  %v2353_v40 = vpop.f32.mrb[15].mxu1  ;;  %v6827_v41 = vpack.c.bf16 %v2504_v45, %v2503_v42  ;;  %v2507_v61 = vmax.f32 %v2359_v55, 0.0  ;;  %v2362_v62 = vadd.f32 %v5616_v46, %v6653_v9 }
 0x1b1   : > { %v1999_v37 = vadd.f32 %v6653_v9, %v1998_v33  ;;  %v5528_v39 = vpop.f32.mrb[54].mxu0  ;;  %v6830_v60 = vpack.c.bf16 %v2502_v52, %v2501_v44  ;;  %v2505_v1 = vmax.f32 %v2351_v47, 0.0  ;;  %v2354_v2 = vadd.f32 %v6653_v9, %v2353_v40 }
 0x1b2   : > { %v2010_v50 = vadd.f32 %v5528_v39, %v6653_v9  ;;  %v2001_v51 = vpop.f32.mrb[55].mxu0  ;;  %v2419_v43 = vmax.f32 %v2007_v32, 0.0  ;;  %v2508_v4 = vmax.f32 %v2362_v62, 0.0 }
 0x1b3   : > { %v2002_v25 = vadd.f32 %v6653_v9, %v2001_v51  ;;  %v2417_v63 = vmax.f32 %v1999_v37, 0.0  ;;  %v2506_v10 = vmax.f32 %v2354_v2, 0.0 }
 0x1b4   : > { %v2420_v57 = vmax.f32 %v2010_v50, 0.0  ;;  %v6841_v20 = vpack.c.bf16 %v2508_v4, %v2507_v61 }
 0x1b5   : > { %v2418_v0 = vmax.f32 %v2002_v25, 0.0  ;;  %v6846_v23 = vpack.c.bf16 %v2506_v10, %v2505_v1 }
 0x1b6   : > { %v6834_v3 = vpack.c.bf16 %v2420_v57, %v2419_v43  ;;  %v2632_v30 = vmax.bf16 %v6841_v20, %v6827_v41 }
 0x1b7   : > { %v6836_v5 = vpack.c.bf16 %v2418_v0, %v2417_v63  ;;  %v5531_v7 = vpop.f32.mrb[56].mxu0  ;;  %v2631_v53 = vmax.bf16 %v6846_v23, %v6830_v60 }
 0x1b8   : > { %v2600_v14 = vmax.bf16 %v6834_v3, %v6814_v12  ;;  %v2023_v16 = vadd.f32 %v5531_v7, %v6653_v9  ;;  %v2014_v19 = vpop.f32.mrb[57].mxu0 }
 0x1b9   : > { %v2599_v58 = vmax.bf16 %v6836_v5, %v6816_v27  ;;  %v2015_v11 = vadd.f32 %v6653_v9, %v2014_v19  ;;  %v5532_v22 = vpop.f32.mrb[58].mxu0 }
 0x1ba   : > { %v2026_v26 = vadd.f32 %v5532_v22, %v6653_v9  ;;  %v2017_v59 = vpop.f32.mrb[59].mxu0  ;;  %v2423_v18 = vmax.f32 %v2023_v16, 0.0 }
 0x1bb   : > { %v2018_v48 = vadd.f32 %v6653_v9, %v2017_v59  ;;  %v2421_v49 = vmax.f32 %v2015_v11, 0.0 }
 0x1bc   : > { %v2424_v31 = vmax.f32 %v2026_v26, 0.0 }
 0x1bd   : > { %v2422_v54 = vmax.f32 %v2018_v48, 0.0 }
 0x1be   : > { %v6854_v28 = vpack.c.bf16 %v2424_v31, %v2423_v18 }
 0x1bf   : > { %v6856_v29 = vpack.c.bf16 %v2422_v54, %v2421_v49  ;;  %v5535_v32 = vpop.f32.mrb[60].mxu0 }
 0x1c0   : > { %v2039_v33 = vadd.f32 %v5535_v32, %v6653_v9  ;;  %v2030_v34 = vpop.f32.mrb[61].mxu0 }
 0x1c1   : > { %v2031_v35 = vadd.f32 %v6653_v9, %v2030_v34  ;;  %v5536_v37 = vpop.f32.mrb[62].mxu0 }
 0x1c2   : > { %v2042_v39 = vadd.f32 %v5536_v37, %v6653_v9  ;;  %v2033_v42 = vpop.f32.mrb[63].mxu0  ;;  %v2427_v45 = vmax.f32 %v2039_v33, 0.0 }
 0x1c3   : > { %v2034_v44 = vadd.f32 %v6653_v9, %v2033_v42  ;;  %v2425_v50 = vmax.f32 %v2031_v35, 0.0 }
 0x1c4   : > { %v2428_v46 = vmax.f32 %v2042_v39, 0.0 }
 0x1c5   : > { %v2426_v51 = vmax.f32 %v2034_v44, 0.0 }
 0x1c6   : > { %v6862_v52 = vpack.c.bf16 %v2428_v46, %v2427_v45 }
 0x1c7   : > { %v6864_v55 = vpack.c.bf16 %v2426_v51, %v2425_v50  ;;  %v5539_v40 = vpop.f32.mrb[64].mxu0 }
 0x1c8   : > { %v2606_v43 = vmax.bf16 %v6862_v52, %v6854_v28  ;;  %v2055_v25 = vadd.f32 %v5539_v40, %v6653_v9  ;;  %v2046_v47 = vpop.f32.mrb[65].mxu0 }
 0x1c9   : > { %v2605_v57 = vmax.bf16 %v6864_v55, %v6856_v29  ;;  %v2047_v61 = vadd.f32 %v6653_v9, %v2046_v47  ;;  %v5540_v62 = vpop.f32.mrb[66].mxu0 }
 0x1ca   : > { %v2058_v63 = vadd.f32 %v5540_v62, %v6653_v9  ;;  %v2049_v0 = vpop.f32.mrb[67].mxu0  ;;  %v2431_v2 = vmax.f32 %v2055_v25, 0.0 }
 0x1cb   : > { %v2050_v1 = vadd.f32 %v6653_v9, %v2049_v0  ;;  %v2429_v7 = vmax.f32 %v2047_v61, 0.0 }
 0x1cc   : > { %v2432_v4 = vmax.f32 %v2058_v63, 0.0 }
 0x1cd   : > { %v2430_v10 = vmax.f32 %v2050_v1, 0.0 }
 0x1ce   : > { %v6874_v16 = vpack.c.bf16 %v2432_v4, %v2431_v2 }
 0x1cf   : > { %v6876_v19 = vpack.c.bf16 %v2430_v10, %v2429_v7  ;;  %v5543_v11 = vpop.f32.mrb[68].mxu0  ;;  %v5791_v7 = vld [vmem:[%s7908_s4] sm:$0xff]  }
 0x1d0   : > { %v2071_v22 = vadd.f32 %v5543_v11, %v6653_v9  ;;  %v2062_v26 = vpop.f32.mrb[69].mxu0  ;;  %5617 = vmatprep.subr.bf16.mxu1 %v5791_v7 }
 0x1d1   : > { %v2063_v59 = vadd.f32 %v6653_v9, %v2062_v26  ;;  %v5544_v48 = vpop.f32.mrb[70].mxu0  ;;  %5618 = vmatpush3.bf16.msra.mxu1 %v5791_v7 }
 0x1d2   : > { %v2074_v18 = vadd.f32 %v5544_v48, %v6653_v9  ;;  %v2065_v31 = vpop.f32.mrb[71].mxu0  ;;  %v2435_v54 = vmax.f32 %v2071_v22, 0.0 }
 0x1d3   : > { %v2066_v49 = vadd.f32 %v6653_v9, %v2065_v31  ;;  %v2433_v33 = vmax.f32 %v2063_v59, 0.0  ;;  %v5792_v31 = vld [vmem:[%s7908_s4 + $0x8] sm:$0xff]  }
 0x1d4   : > { %v2436_v32 = vmax.f32 %v2074_v18, 0.0  ;;  %5619 = vmatprep.subr.bf16.mxu1 %v5792_v31 }
 0x1d5   : > { %v2434_v34 = vmax.f32 %v2066_v49, 0.0  ;;  %v5793_v49 = vld [vmem:[%s7908_s4 + $0x10] sm:$0xff]   ;;  %5620 = vmatpush3.bf16.msra.mxu1 %v5792_v31 }
 0x1d6   : > { %v6882_v35 = vpack.c.bf16 %v2436_v32, %v2435_v54  ;;  %5621 = vmatprep.subr.bf16.mxu1 %v5793_v49 }
 0x1d7   : > { %v6884_v37 = vpack.c.bf16 %v2434_v34, %v2433_v33  ;;  %v5547_v39 = vpop.f32.mrb[72].mxu0 }
 0x1d8   : > { %v2612_v42 = vmax.bf16 %v6882_v35, %v6874_v16  ;;  %v2087_v44 = vadd.f32 %v5547_v39, %v6653_v9  ;;  %v2078_v45 = vpop.f32.mrb[73].mxu0 }
 0x1d9   : > { %v2611_v46 = vmax.bf16 %v6884_v37, %v6876_v19  ;;  %v2079_v50 = vadd.f32 %v6653_v9, %v2078_v45  ;;  %v5548_v51 = vpop.f32.mrb[74].mxu0  ;;  %5622 = vmatpush3.bf16.msra.mxu1 %v5793_v49 }
 0x1da   : > { %v2090_v40 = vadd.f32 %v5548_v51, %v6653_v9  ;;  %v2081_v25 = vpop.f32.mrb[75].mxu0  ;;  %v2439_v61 = vmax.f32 %v2087_v44, 0.0 }
 0x1db   : > { %v2082_v47 = vadd.f32 %v6653_v9, %v2081_v25  ;;  %v2437_v63 = vmax.f32 %v2079_v50, 0.0  ;;  %v5794_v50 = vld [vmem:[%s7908_s4 + $0x18] sm:$0xff]  }
 0x1dc   : > { %v2440_v62 = vmax.f32 %v2090_v40, 0.0  ;;  %5623 = vmatprep.subr.bf16.mxu1 %v5794_v50 }
 0x1dd   : > { %v2438_v0 = vmax.f32 %v2082_v47, 0.0  ;;  %5624 = vmatpush3.bf16.msra.mxu1 %v5794_v50 }
 0x1de   : > { %v2546_v1 = vpack.c.bf16 %v2440_v62, %v2439_v61 }
 0x1df   : > { %v2545_v2 = vpack.c.bf16 %v2438_v0, %v2437_v63  ;;  %v5551_v4 = vpop.f32.mrb[76].mxu0 }
 0x1e0   : > { %v2103_v10 = vadd.f32 %v5551_v4, %v6653_v9  ;;  %v2094_v11 = vpop.f32.mrb[77].mxu0 }
 0x1e1   : > { %v2095_v22 = vadd.f32 %v6653_v9, %v2094_v11  ;;  %v5552_v26 = vpop.f32.mrb[78].mxu0 }
 0x1e2   : > { %v2106_v59 = vadd.f32 %v5552_v26, %v6653_v9  ;;  %v2097_v48 = vpop.f32.mrb[79].mxu0  ;;  %v2443_v54 = vmax.f32 %v2103_v10, 0.0 }
 0x1e3   : > { %v2098_v18 = vadd.f32 %v6653_v9, %v2097_v48  ;;  %v2441_v33 = vmax.f32 %v2095_v22, 0.0 }
 0x1e4   : > { %v2444_v32 = vmax.f32 %v2106_v59, 0.0 }
 0x1e5   : > { %v2442_v34 = vmax.f32 %v2098_v18, 0.0 }
 0x1e6   : > { %v2548_v39 = vpack.c.bf16 %v2444_v32, %v2443_v54 }
 0x1e7   : > { %v2547_v44 = vpack.c.bf16 %v2442_v34, %v2441_v33  ;;  %v5555_v45 = vpop.f32.mrb[80].mxu0 }
 0x1e8   : > { %v2602_v51 = vmax.bf16 %v2548_v39, %v2546_v1  ;;  %v2119_v40 = vadd.f32 %v5555_v45, %v6653_v9  ;;  %v2110_v25 = vpop.f32.mrb[81].mxu0 }
 0x1e9   : > { %v2601_v47 = vmax.bf16 %v2547_v44, %v2545_v2  ;;  %v2111_v61 = vadd.f32 %v6653_v9, %v2110_v25  ;;  %v5556_v62 = vpop.f32.mrb[82].mxu0 }
 0x1ea   : > { %v2122_v63 = vadd.f32 %v5556_v62, %v6653_v9  ;;  %v2113_v0 = vpop.f32.mrb[83].mxu0  ;;  %v6916_v4 = vmax.bf16 %v2602_v51, %v2600_v14  ;;  %v2447_v2 = vmax.f32 %v2119_v40, 0.0 }
 0x1eb   : > { %v2114_v7 = vadd.f32 %v6653_v9, %v2113_v0  ;;  %v6922_v1 = vmax.bf16 %v2601_v47, %v2599_v58  ;;  %v2445_v11 = vmax.f32 %v2111_v61, 0.0 }
 0x1ec   : > { %v2448_v10 = vmax.f32 %v2122_v63, 0.0  ;;  %2645 = vrot.lane.b32.xlu1 %v6916_v4, %s6198_s18 }
 0x1ed   : > { %v2446_v22 = vmax.f32 %v2114_v7, 0.0 }
 0x1ee   : > { %v2550_v12 = vpack.c.bf16 %v2448_v10, %v2447_v2 }
 0x1ef   : > { %v2549_v3 = vpack.c.bf16 %v2446_v22, %v2445_v11  ;;  %v5559_v14 = vpop.f32.mrb[84].mxu0 }
 0x1f0   : > { %v2135_v26 = vadd.f32 %v5559_v14, %v6653_v9  ;;  %v2126_v59 = vpop.f32.mrb[85].mxu0  ;;  %2643 = vrot.lane.b32.xlu1 %v6922_v1, %s6198_s18 }
 0x1f1   : > { %v2127_v27 = vadd.f32 %v6653_v9, %v2126_v59  ;;  %v5560_v5 = vpop.f32.mrb[86].mxu0 }
 0x1f2   : > { %v2138_v58 = vadd.f32 %v5560_v5, %v6653_v9  ;;  %v2129_v48 = vpop.f32.mrb[87].mxu0  ;;  %v2451_v31 = vmax.f32 %v2135_v26, 0.0 }
 0x1f3   : > { %v2130_v18 = vadd.f32 %v6653_v9, %v2129_v48  ;;  %v2449_v54 = vmax.f32 %v2127_v27, 0.0 }
 0x1f4   : > { %v2452_v49 = vmax.f32 %v2138_v58, 0.0 }
 0x1f5   : > { %v2450_v32 = vmax.f32 %v2130_v18, 0.0 }
 0x1f6   : > { %v2552_v33 = vpack.c.bf16 %v2452_v49, %v2451_v31 }
 0x1f7   : > { %v2551_v34 = vpack.c.bf16 %v2450_v32, %v2449_v54  ;;  %v5563_v39 = vpop.f32.mrb[88].mxu0 }
 0x1f8   : > { %v2608_v44 = vmax.bf16 %v2552_v33, %v2550_v12  ;;  %v2151_v45 = vadd.f32 %v5563_v39, %v6653_v9  ;;  %v2142_v50 = vpop.f32.mrb[89].mxu0 }
 0x1f9   : > { %v2607_v51 = vmax.bf16 %v2551_v34, %v2549_v3  ;;  %v2143_v40 = vadd.f32 %v6653_v9, %v2142_v50  ;;  %v5564_v25 = vpop.f32.mrb[90].mxu0 }
 0x1fa   : > { %v6937_v47 = vmax.bf16 %v2608_v44, %v2606_v43  ;;  %v2154_v61 = vadd.f32 %v5564_v25, %v6653_v9  ;;  %v2145_v62 = vpop.f32.mrb[91].mxu0  ;;  %v2455_v7 = vmax.f32 %v2151_v45, 0.0 }
 0x1fb   : > { %v6943_v63 = vmax.bf16 %v2607_v51, %v2605_v57  ;;  %v2146_v0 = vadd.f32 %v6653_v9, %v2145_v62  ;;  %v2453_v10 = vmax.f32 %v2143_v40, 0.0 }
 0x1fc   : > { %v2456_v2 = vmax.f32 %v2154_v61, 0.0  ;;  %2651 = vrot.lane.b32.xlu1 %v6937_v47, %s6199_s24 }
 0x1fd   : > { %v2454_v28 = vmax.f32 %v2146_v0, 0.0  ;;  %2649 = vrot.lane.b32.xlu0 %v6943_v63, %s6199_s24 }
 0x1fe   : > { %v2554_v52 = vpack.c.bf16 %v2456_v2, %v2455_v7 }
 0x1ff   : > { %v2553_v43 = vpack.c.bf16 %v2454_v28, %v2453_v10  ;;  %v5567_v11 = vpop.f32.mrb[92].mxu0 }
 0x200   : > { %v2167_v29 = vadd.f32 %v5567_v11, %v6653_v9  ;;  %v2158_v55 = vpop.f32.mrb[93].mxu0  ;;  %2678 = vrot.lane.b32.xlu1 %v6937_v47, %s6198_s18 }
 0x201   : > { %v2159_v57 = vadd.f32 %v6653_v9, %v2158_v55  ;;  %v5568_v22 = vpop.f32.mrb[94].mxu0  ;;  %2676 = vrot.lane.b32.xlu0 %v6943_v63, %s6198_s18 }
 0x202   : > { %v2170_v12 = vadd.f32 %v5568_v22, %v6653_v9  ;;  %v2161_v3 = vpop.f32.mrb[95].mxu0  ;;  %v2459_v26 = vmax.f32 %v2167_v29, 0.0 }
 0x203   : > { %v2162_v14 = vadd.f32 %v6653_v9, %v2161_v3  ;;  %v2457_v27 = vmax.f32 %v2159_v57, 0.0 }
 0x204   : > { %v2460_v59 = vmax.f32 %v2170_v12, 0.0  ;;  %2702 = vrot.lane.b32.xlu1 %v6937_v47, %s6197_s22 }
 0x205   : > { %v2458_v5 = vmax.f32 %v2162_v14, 0.0  ;;  %2700 = vrot.lane.b32.xlu0 %v6943_v63, %s6197_s22 }
 0x206   : > { %v2556_v58 = vpack.c.bf16 %v2460_v59, %v2459_v26  ;;  %v7000_v26 = vld [vmem:[%s7907_s3] ss:$0 sm:$0xff] }
 0x207   : > { %v2555_v48 = vpack.c.bf16 %v2458_v5, %v2457_v27  ;;  %v5571_v18 = vpop.f32.mrb[96].mxu0 }
 0x208   : > { %v2614_v31 = vmax.bf16 %v2556_v58, %v2554_v52  ;;  %v2183_v49 = vadd.f32 %v5571_v18, %v6653_v9  ;;  %v2174_v54 = vpop.f32.mrb[97].mxu0 }
 0x209   : > { %v2613_v32 = vmax.bf16 %v2555_v48, %v2553_v43  ;;  %v2175_v33 = vadd.f32 %v6653_v9, %v2174_v54  ;;  %v5572_v34 = vpop.f32.mrb[98].mxu0 }
 0x20a   : > { %v2186_v39 = vadd.f32 %v5572_v34, %v6653_v9  ;;  %v2177_v44 = vpop.f32.mrb[99].mxu0  ;;  %v6968_v45 = vmax.bf16 %v2614_v31, %v2612_v42  ;;  %v2463_v40 = vmax.f32 %v2183_v49, 0.0 }
 0x20b   : > { %v2178_v50 = vadd.f32 %v6653_v9, %v2177_v44  ;;  %v6974_v51 = vmax.bf16 %v2613_v32, %v2611_v46  ;;  %v2461_v61 = vmax.f32 %v2175_v33, 0.0 }
 0x20c   : > { %v2464_v25 = vmax.f32 %v2186_v39, 0.0  ;;  %2684 = vrot.lane.b32.xlu1 %v6968_v45, %s6199_s24 }
 0x20d   : > { %v2462_v62 = vmax.f32 %v2178_v50, 0.0  ;;  %2682 = vrot.lane.b32.xlu0 %v6974_v51, %s6199_s24 }
 0x20e   : > { %v6980_v16 = vpack.c.bf16 %v2464_v25, %v2463_v40 }
 0x20f   : > { %v6982_v35 = vpack.c.bf16 %v2462_v62, %v2461_v61  ;;  %v5575_v42 = vpop.f32.mrb[100].mxu0 }
 0x210   : > { %v2199_v0 = vadd.f32 %v5575_v42, %v6653_v9  ;;  %v2190_v19 = vpop.f32.mrb[101].mxu0 }
 0x211   : > { %v2191_v37 = vadd.f32 %v6653_v9, %v2190_v19  ;;  %v5576_v46 = vpop.f32.mrb[102].mxu0 }
 0x212   : > { %v2202_v7 = vadd.f32 %v5576_v46, %v6653_v9  ;;  %v2193_v2 = vpop.f32.mrb[103].mxu0  ;;  %v2467_v28 = vmax.f32 %v2199_v0, 0.0 }
 0x213   : > { %v2194_v10 = vadd.f32 %v6653_v9, %v2193_v2  ;;  %v2465_v43 = vmax.f32 %v2191_v37, 0.0 }
 0x214   : > { %v2468_v52 = vmax.f32 %v2202_v7, 0.0 }
 0x215   : > { %v2466_v11 = vmax.f32 %v2194_v10, 0.0 }
 0x216   : > { %v6988_v29 = vpack.c.bf16 %v2468_v52, %v2467_v28 }
 0x217   : > { %v6990_v55 = vpack.c.bf16 %v2466_v11, %v2465_v43  ;;  %v5579_v57 = vpop.f32.mrb[104].mxu0 }
 0x218   : > { %v2618_v22 = vmax.bf16 %v6988_v29, %v6980_v16  ;;  %v2215_v12 = vadd.f32 %v5579_v57, %v6653_v9  ;;  %v2206_v3 = vpop.f32.mrb[105].mxu0 }
 0x219   : > { %v2617_v14 = vmax.bf16 %v6990_v55, %v6982_v35  ;;  %v2207_v59 = vadd.f32 %v7000_v26, %v2206_v3  ;;  %v5580_v27 = vpop.f32.mrb[106].mxu0  ;;  %v2640_v35 = vpop.permute.xlu0 %2639 }
 0x21a   : > { %v2218_v5 = vadd.f32 %v7000_v26, %v5580_v27  ;;  %v2209_v58 = vpop.f32.mrb[107].mxu0  ;;  %v2471_v18 = vmax.f32 %v2215_v12, 0.0 }
 0x21b   : > { %v2210_v48 = vadd.f32 %v7000_v26, %v2209_v58  ;;  %v2469_v9 = vmax.f32 %v2207_v59, 0.0 }
 0x21c   : > { %v2472_v31 = vmax.f32 %v2218_v5, 0.0 }
 0x21d   : > { %v2470_v49 = vmax.f32 %v2210_v48, 0.0  ;;  %v2638_v55 = vpop.permute.xlu0 %2637 }
 0x21e   : > { %v2562_v54 = vpack.c.bf16 %v2472_v31, %v2471_v18  ;;  %v2675_v16 = vpop.permute.xlu1 %2674 }
 0x21f   : > { %v2561_v32 = vpack.c.bf16 %v2470_v49, %v2469_v9  ;;  %v5583_v33 = vpop.f32.mrb[108].mxu0 }
 0x220   : > { %v2231_v34 = vadd.f32 %v7000_v26, %v5583_v33  ;;  %v2222_v39 = vpop.f32.mrb[109].mxu0 }
 0x221   : > { %v2223_v44 = vadd.f32 %v7000_v26, %v2222_v39  ;;  %v5584_v50 = vpop.f32.mrb[110].mxu0 }
 0x222   : > { %v2234_v40 = vadd.f32 %v7000_v26, %v5584_v50  ;;  %v2225_v25 = vpop.f32.mrb[111].mxu0  ;;  %v2475_v62 = vmax.f32 %v2231_v34, 0.0 }
 0x223   : > { %v2226_v61 = vadd.f32 %v7000_v26, %v2225_v25  ;;  %v2473_v0 = vmax.f32 %v2223_v44, 0.0 }
 0x224   : > { %v2476_v42 = vmax.f32 %v2234_v40, 0.0 }
 0x225   : > { %v2474_v19 = vmax.f32 %v2226_v61, 0.0 }
 0x226   : > { %v2564_v37 = vpack.c.bf16 %v2476_v42, %v2475_v62 }
 0x227   : > { %v2563_v46 = vpack.c.bf16 %v2474_v19, %v2473_v0  ;;  %v5587_v7 = vpop.f32.mrb[112].mxu0 }
 0x228   : > { %v2624_v2 = vmax.bf16 %v2564_v37, %v2562_v54  ;;  %v2247_v10 = vadd.f32 %v7000_v26, %v5587_v7  ;;  %v2238_v28 = vpop.f32.mrb[113].mxu0 }
 0x229   : > { %v2623_v52 = vmax.bf16 %v2563_v46, %v2561_v32  ;;  %v2239_v43 = vadd.f32 %v7000_v26, %v2238_v28  ;;  %v5588_v11 = vpop.f32.mrb[114].mxu0 }
 0x22a   : > { %v2250_v57 = vadd.f32 %v7000_v26, %v5588_v11  ;;  %v2241_v12 = vpop.f32.mrb[115].mxu0  ;;  %v7015_v3 = vmax.bf16 %v2626_v21, %v2624_v2  ;;  %v2479_v5 = vmax.f32 %v2247_v10, 0.0 }
 0x22b   : > { %v2242_v59 = vadd.f32 %v7000_v26, %v2241_v12  ;;  %v7021_v27 = vmax.bf16 %v2625_v17, %v2623_v52  ;;  %v2477_v48 = vmax.f32 %v2239_v43, 0.0 }
 0x22c   : > { %v2480_v58 = vmax.f32 %v2250_v57, 0.0  ;;  %2714 = vrot.lane.b32.xlu1 %v7015_v3, %s6199_s24 }
 0x22d   : > { %v2478_v18 = vmax.f32 %v2242_v59, 0.0  ;;  %2712 = vrot.lane.b32.xlu0 %v7021_v27, %s6199_s24 }
 0x22e   : > { %v2566_v24 = vpack.c.bf16 %v2480_v58, %v2479_v5 }
 0x22f   : > { %v2565_v6 = vpack.c.bf16 %v2478_v18, %v2477_v48  ;;  %v5591_v21 = vpop.f32.mrb[116].mxu0 }
 0x230   : > { %v2263_v31 = vadd.f32 %v7000_v26, %v5591_v21  ;;  %v2254_v9 = vpop.f32.mrb[117].mxu0 }
 0x231   : > { %v2255_v56 = vadd.f32 %v7000_v26, %v2254_v9  ;;  %v5592_v15 = vpop.f32.mrb[118].mxu0 }
 0x232   : > { %v2266_v17 = vadd.f32 %v7000_v26, %v5592_v15  ;;  %v2257_v49 = vpop.f32.mrb[119].mxu0  ;;  %v2483_v32 = vmax.f32 %v2263_v31, 0.0 }
 0x233   : > { %v2258_v54 = vadd.f32 %v7000_v26, %v2257_v49  ;;  %v2481_v34 = vmax.f32 %v2255_v56, 0.0 }
 0x234   : > { %v2484_v33 = vmax.f32 %v2266_v17, 0.0 }
 0x235   : > { %v2482_v39 = vmax.f32 %v2258_v54, 0.0 }
 0x236   : > { %v2568_v44 = vpack.c.bf16 %v2484_v33, %v2483_v32 }
 0x237   : > { %v2567_v50 = vpack.c.bf16 %v2482_v39, %v2481_v34  ;;  %v5595_v40 = vpop.f32.mrb[120].mxu0 }
 0x238   : > { %v2630_v25 = vmax.bf16 %v2568_v44, %v2566_v24  ;;  %v2279_v61 = vadd.f32 %v7000_v26, %v5595_v40  ;;  %v2270_v62 = vpop.f32.mrb[121].mxu0  ;;  %v2691_v44 = vsel %vm2653_vm2, %v6766_v8, %v2675_v16  ;;  %v5796_v16 = vld [vmem:[%s7910_s6 + $0x8] sm:$0xff]  }
 0x239   : > { %v2629_v42 = vmax.bf16 %v2567_v50, %v2565_v6  ;;  %v2271_v0 = vadd.f32 %v7000_v26, %v2270_v62  ;;  %v5596_v19 = vpop.f32.mrb[122].mxu0 }
 0x23a   : > { %v2282_v37 = vadd.f32 %v7000_v26, %v5596_v19  ;;  %v2273_v46 = vpop.f32.mrb[123].mxu0  ;;  %v2634_v7 = vmax.bf16 %v2632_v30, %v2630_v25  ;;  %v2487_v28 = vmax.f32 %v2279_v61, 0.0 }
 0x23b   : > { %v2274_v2 = vadd.f32 %v7000_v26, %v2273_v46  ;;  %v2633_v10 = vmax.bf16 %v2631_v53, %v2629_v42  ;;  %v2485_v43 = vmax.f32 %v2271_v0, 0.0 }
 0x23c   : > { %v2488_v52 = vmax.f32 %v2282_v37, 0.0 }
 0x23d   : > { %v2486_v11 = vmax.f32 %v2274_v2, 0.0 }
 0x23e   : > { %v2570_v57 = vpack.c.bf16 %v2488_v52, %v2487_v28 }
 0x23f   : > { %v2569_v12 = vpack.c.bf16 %v2486_v11, %v2485_v43  ;;  %v5599_v59 = vpop.f32.mrb[124].mxu0 }
 0x240   : > { %v2295_v5 = vadd.f32 %v7000_v26, %v5599_v59  ;;  %v2286_v58 = vpop.f32.mrb[125].mxu0 }
 0x241   : > { %v2287_v48 = vadd.f32 %v7000_v26, %v2286_v58  ;;  %v5600_v41 = vpop.f32.mrb[126].mxu0 }
 0x242   : > { %v2298_v20 = vadd.f32 %v7000_v26, %v5600_v41  ;;  %v2289_v30 = vpop.f32.mrb[127].mxu0  ;;  %v2491_v60 = vmax.f32 %v2295_v5, 0.0 }
 0x243   : > { %v2290_v18 = vadd.f32 %v7000_v26, %v2289_v30  ;;  %v2489_v53 = vmax.f32 %v2287_v48, 0.0  ;;  %v2659_v26 = vsel %vm2653_vm2, %v6748_v36, %v2640_v35 }
 0x244   : > { %v2492_v23 = vmax.f32 %v2298_v20, 0.0 }
 0x245   : > { %v2490_v24 = vmax.f32 %v2290_v18, 0.0 }
 0x246   : > { %v2572_v6 = vpack.c.bf16 %v2492_v23, %v2491_v60 }
 0x247   : > { %v2571_v21 = vpack.c.bf16 %v2490_v24, %v2489_v53 }
 0x248   : > { %v2620_v31 = vmax.bf16 %v2572_v6, %v2570_v57 }
 0x249   : > { %v2619_v9 = vmax.bf16 %v2571_v21, %v2569_v12 }
 0x24a   : > { %v2622_v56 = vmax.bf16 %v2620_v31, %v2618_v22 }
 0x24b   : > { %v2621_v15 = vmax.bf16 %v2619_v9, %v2617_v14  ;;  %v2673_v14 = vpop.permute.xlu0 %2672 }
 0x24c   : > { %2708 = vrot.lane.b32.xlu1 %v2622_v56, %s6198_s18  ;;  %v2688_v36 = vsel %vm2653_vm2, %v6772_v13, %v2673_v14 }
 0x24d   : > { %2706 = vrot.lane.b32.xlu0 %v2621_v15, %s6198_s18  ;;  %v5795_v15 = vld [vmem:[%s7910_s6] sm:$0xff]  }
 0x24e   : > { %5641 = vmatprep.subr.bf16.mxu1 %v5795_v15 }
 0x250   : > { %2732 = vrot.lane.b32.xlu1 %v6968_v45, %s6197_s22  ;;  %v2656_v45 = vsel %vm2653_vm2, %v6754_v38, %v2638_v55 }
 0x251   : > { %2730 = vrot.lane.b32.xlu0 %v6974_v51, %s6197_s22  ;;  %s4854_s22 = sshll.u32 %s7805_s12, 4  ;;  %s7858_s22 = int_to_ptr.vmem [resolvable:$true] %s4854_s22 }
 0x254   : > { %2736 = vrot.lane.b32.xlu1 %v7015_v3, %s6198_s18 }
 0x255   : > { %2734 = vrot.lane.b32.xlu0 %v7021_v27, %s6198_s18 }
 0x258   : > { %2742 = vrot.lane.b32.xlu1 %v2634_v7, %s6199_s24 }
 0x259   : > { %2740 = vrot.lane.b32.xlu0 %v2633_v10, %s6199_s24 }
 0x25e   : > { %v2646_v29 = vpop.permute.xlu1 %2645 }
 0x25f   : > { %v2664_v17 = vsel %vm2660_vm3, %v2659_v26, %v2646_v29 }
 0x262   : > { %v2644_v22 = vpop.permute.xlu1 %2643 }
 0x263   : > { %v2662_v3 = vsel %vm2660_vm3, %v2656_v45, %v2644_v22  ;;  %v5797_v22 = vld [vmem:[%s7910_s6 + $0x10] sm:$0xff]  }
 0x26e   : > { %v2652_v51 = vpop.permute.xlu1 %2651 }
 0x26f   : > { %v2650_v27 = vpop.permute.xlu0 %2649  ;;  %v2669_v54 = vsel %vm2665_vm4, %v2664_v17, %v2652_v51 }
 0x270   : > { %v2667_v49 = vsel %vm2665_vm4, %v2662_v3, %v2650_v27 }
 0x271   : > { %5625 = vmatprep.mubr.msk.bf16.mxu1 %vm2797_vm5, %v2667_v49  ;;  %v5798_v49 = vld [vmem:[%s7910_s6 + $0x18] sm:$0xff]  }
 0x272   : > { %5626 = vmatmul.mubr.msk.bf16.vlgmr.msra.gmra.mrb[16].mxu1 %vm2797_vm5, %v2669_v54  ;;  %v2679_v32 = vpop.permute.xlu1 %2678 }
 0x273   : > { %v2677_v38 = vpop.permute.xlu0 %2676  ;;  %v2695_v25 = vsel %vm2660_vm3, %v2691_v44, %v2679_v32  ;;  %5642 = vmatpush3.bf16.msra.mxu1 %v5795_v15  ;;  %v5814_v15 = vld [vmem:[%s6516_s30 + $0x14] ss:$8 sps:$4 sm:$0xff]  }
 0x274   : > { %v2693_v50 = vsel %vm2660_vm3, %v2688_v36, %v2677_v38  ;;  %5643 = vmatprep.subr.bf16.mxu1 %v5796_v16  ;;  %v5800_v36 = vld [vmem:[%s7910_s6 + $0x28] sm:$0xff]  }
 0x276   : > { %v2703_v33 = vpop.permute.xlu1 %2702 }
 0x277   : > { %v2701_v34 = vpop.permute.xlu0 %2700  ;;  %v2721_v13 = vsel %vm2653_vm2, %v6916_v4, %v2703_v33  ;;  %5644 = vmatpush3.bf16.msra.mxu1 %v5796_v16  ;;  %v5809_v16 = vld [vmem:[%s6516_s30 + $0x10] ss:$8 sps:$4 sm:$0xff]  }
 0x278   : > { %v2718_v8 = vsel %vm2653_vm2, %v6922_v1, %v2701_v34  ;;  %5645 = vmatprep.subr.bf16.mxu1 %v5797_v22  ;;  %v5799_v34 = vld [vmem:[%s7910_s6 + $0x20] sm:$0xff]  }
 0x27b   : > { %5646 = vmatpush3.bf16.msra.mxu1 %v5797_v22  ;;  %v5850_v22 = vld [vmem:[%s7912_s8 + $0x25c] ss:$48 sps:$4 sm:$0xff]  }
 0x27c   : > { %5647 = vmatprep.subr.bf16.mxu1 %v5798_v49 }
 0x27e   : > { %v2685_v39 = vpop.permute.xlu1 %2684 }
 0x27f   : > { %v2683_v40 = vpop.permute.xlu0 %2682  ;;  %v2699_v62 = vsel %vm2665_vm4, %v2695_v25, %v2685_v39  ;;  %5648 = vmatpush3.bf16.msra.mxu1 %v5798_v49  ;;  %v5801_v39 = vld [vmem:[%s7910_s6 + $0x30] sm:$0xff]   ;;  %v5874_v49 = vld [vmem:[%s7912_s8 + $0x3dc] ss:$48 sps:$4 sm:$0xff]  }
 0x280   : > { %v2697_v61 = vsel %vm2665_vm4, %v2693_v50, %v2683_v40  ;;  %5649 = vmatprep.subr.bf16.mxu1 %v5799_v34  ;;  %v5802_v50 = vld [vmem:[%s7910_s6 + $0x38] sm:$0xff]  }
 0x281   : > { %5629 = vmatprep.mubr.msk.bf16.mxu1 %vm2797_vm5, %v2697_v61 }
 0x282   : > { %5630 = vmatmul.mubr.msk.bf16.gmra.mrb[20].mxu1 %vm2797_vm5, %v2699_v62 }
 0x283   : > { %5650 = vmatpush3.bf16.msra.mxu1 %v5799_v34  ;;  %v5884_v34 = vld [vmem:[%s7912_s8 + $0x498] ss:$48 sps:$4 sm:$0xff]  }
 0x284   : > { %5651 = vmatprep.subr.bf16.mxu1 %v5800_v36 }
 0x287   : > { %5652 = vmatpush3.bf16.msra.mxu1 %v5800_v36  ;;  %v5892_v36 = vld [vmem:[%s7912_s8 + $0x4fc] ss:$48 sps:$4 sm:$0xff]  }
 0x288   : > { %5653 = vmatprep.subr.bf16.mxu1 %v5801_v39 }
 0x28b   : > { %5654 = vmatpush3.bf16.msra.mxu1 %v5801_v39  ;;  %v5890_v39 = vld [vmem:[%s7912_s8 + $0x4f8] ss:$48 sps:$4 sm:$0xff]  }
 0x28c   : > { %5655 = vmatprep.subr.bf16.mxu1 %v5802_v50 }
 0x28f   : > { %5656 = vmatpush3.bf16.msra.mxu1 %v5802_v50 }
 0x29e   : > { %v2715_v42 = vpop.permute.xlu1 %2714 }
 0x29f   : > { %v2713_v0 = vpop.permute.xlu0 %2712 }
 0x2be   : > { %v2709_v19 = vpop.permute.xlu1 %2708 }
 0x2bf   : > { %v2725_v37 = vsel %vm2660_vm3, %v2721_v13, %v2709_v19  ;;  %v2707_v46 = vpop.permute.xlu0 %2706 }
 0x2c0   : > { %v2723_v7 = vsel %vm2660_vm3, %v2718_v8, %v2707_v46  ;;  %v2729_v28 = vsel %vm2665_vm4, %v2725_v37, %v2715_v42 }
 0x2c1   : > { %v2727_v2 = vsel %vm2665_vm4, %v2723_v7, %v2713_v0 }
 0x2c2   : > { %v2733_v10 = vpop.permute.xlu1 %2732  ;;  %5633 = vmatprep.mubr.msk.bf16.mxu1 %vm2797_vm5, %v2727_v2 }
 0x2c3   : > { %v2731_v52 = vpop.permute.xlu0 %2730  ;;  %5634 = vmatmul.mubr.msk.bf16.gmra.mrb[24].mxu1 %vm2797_vm5, %v2729_v28  ;;  %v2749_v57 = vsel %vm2653_vm2, %v6937_v47, %v2733_v10  ;;  %v5803_v10 = vld [vmem:[%s7912_s8 + $0x18] ss:$48 sps:$4 sm:$0xff]   ;;  %v5805_v28 = vld [vmem:[%s7912_s8 + $0x1c] ss:$48 sps:$4 sm:$0xff]  }
 0x2c4   : > { %v2746_v1 = vsel %vm2653_vm2, %v6943_v63, %v2731_v52  ;;  %v7106_v63 = vld [vmem:[%s7909_s5] ss:$0 sm:$0xff]  ;;  %4512 = vmatprep.subr.bf16.mxu0 %v5805_v28 }
 0x2c5   : > { %4513 = vmatpush1.bf16.msra.mxu0 %v5803_v10  ;;  %v5835_v10 = vld [vmem:[%s7912_s8 + $0x124] ss:$48 sps:$4 sm:$0xff]   ;;  %v5833_v28 = vld [vmem:[%s7912_s8 + $0x120] ss:$48 sps:$4 sm:$0xff]  }
 0x2c6   : > { %v2737_v4 = vpop.permute.xlu1 %2736 }
 0x2c7   : > { %v2735_v43 = vpop.permute.xlu0 %2734  ;;  %v2753_v5 = vsel %vm2660_vm3, %v2749_v57, %v2737_v4 }
 0x2c8   : > { %v2751_v12 = vsel %vm2660_vm3, %v2746_v1, %v2735_v43  ;;  %v5813_v1 = vld [vmem:[%s7912_s8 + $0x7c] ss:$48 sps:$4 sm:$0xff]  }
 0x2c9   : > { %4514 = vmatprep.subr.bf16.mxu0 %v5813_v1  ;;  %v5842_v1 = vld [vmem:[%s7912_s8 + $0x1e0] ss:$48 sps:$4 sm:$0xff]  }
 0x2ca   : > { %v2743_v11 = vpop.permute.xlu1 %2742 }
 0x2cb   : > { %v2741_v59 = vpop.permute.xlu0 %2740  ;;  %v2757_v48 = vsel %vm2665_vm4, %v2753_v5, %v2743_v11 }
 0x2cc   : > { %v2755_v58 = vsel %vm2665_vm4, %v2751_v12, %v2741_v59  ;;  %v5811_v12 = vld [vmem:[%s7912_s8 + $0x78] ss:$48 sps:$4 sm:$0xff]  }
 0x2cd   : > { %5637 = vmatprep.mubr.msk.bf16.mxu1 %vm2797_vm5, %v2755_v58  ;;  %v5817_v58 = vld [vmem:[%s7912_s8 + $0xdc] ss:$48 sps:$4 sm:$0xff]   ;;  %4515 = vmatpush1.bf16.msra.mxu0 %v5811_v12  ;;  %v5853_v12 = vld [vmem:[%s7912_s8 + $0x2a4] ss:$48 sps:$4 sm:$0xff]  }
 0x2ce   : > { %5638 = vmatmul.mubr.msk.bf16.gmra.mrb[28].mxu1 %vm2797_vm5, %v2757_v48  ;;  %4516 = vmatprep.subr.bf16.mxu0 %v5817_v58  ;;  %v5857_v58 = vld [vmem:[%s7912_s8 + $0x300] ss:$48 sps:$4 sm:$0xff]  }
 0x345   : > { %v5627_v41 = vpop.f32.mrb[16].mxu1 }
 0x346   : > { %v2857_v47 = vadd.f32 %v5627_v41, %v7106_v63  ;;  %v2848_v20 = vpop.f32.mrb[17].mxu1 }
 0x347   : > { %v2849_v30 = vadd.f32 %v7106_v63, %v2848_v20  ;;  %v5628_v18 = vpop.f32.mrb[18].mxu1  ;;  %v5823_v20 = vld [vmem:[%s7912_s8 + $0x4] ss:$48 sps:$4 sm:$0xff]  }
 0x348   : > { %v2860_v60 = vadd.f32 %v5628_v18, %v7106_v63  ;;  %v2851_v23 = vpop.f32.mrb[19].mxu1  ;;  %v2913_v24 = vmax.f32 %v2857_v47, 0.0  ;;  %4353 = vmatprep.subr.bf16.mxu1 %v5823_v20  ;;  %v5869_v20 = vld [vmem:[%s7912_s8 + $0x3c0] ss:$48 sps:$4 sm:$0xff]  }
 0x349   : > { %v2852_v53 = vadd.f32 %v7106_v63, %v2851_v23  ;;  %v2911_v21 = vmax.f32 %v2849_v30, 0.0 }
 0x34a   : > { %v2914_v6 = vmax.f32 %v2860_v60, 0.0  ;;  %v5815_v60 = vld [vmem:[%s7912_s8 + $0xd8] ss:$48 sps:$4 sm:$0xff]  }
 0x34b   : > { %v2912_v31 = vmax.f32 %v2852_v53, 0.0  ;;  %4517 = vmatpush1.bf16.msra.mxu0 %v5815_v60  ;;  %v5883_v60 = vld [vmem:[%s7912_s8 + $0x484] ss:$48 sps:$4 sm:$0xff]  }
 0x34c   : > { %v7112_v9 = vpack.c.bf16 %v2914_v6, %v2913_v24  ;;  %v5808_v24 = vld [vmem:[%s6516_s30 + $0x4] ss:$8 sps:$4 sm:$0xff]   ;;  %v5806_v6 = vld [vmem:[%s6516_s30] ss:$8 sps:$4 sm:$0xff]   ;;  %s6202_s30 = smov [#allocation6]  }
 0x34d   : > { %v7114_v56 = vpack.c.bf16 %v2912_v31, %v2911_v21  ;;  %v5818_v21 = vld [vmem:[%s7912_s8 + $0x138] ss:$48 sps:$4 sm:$0xff]   ;;  %v5826_v31 = vld [vmem:[%s7912_s8 + $0x19c] ss:$48 sps:$4 sm:$0xff]   ;;  %s6130_s20 = sshll.u32 %s6202_s30, 4  ;;  %s6131_s20 = int_to_ptr.vmem [resolvable:$false] %s6130_s20 }
 0x34e   : > { %s6132_s23 = scalar_lea.vmem %s6131_s20, 6144  ;;  %p6133_p11 = scmp.lt.s32.totalorder %s7858_s22, %s6131_s20 }
 0x355   : > { %v5631_v35 = vpop.f32.mrb[20].mxu1 }
 0x356   : > { %v2873_v29 = vadd.f32 %v5631_v35, %v7106_v63  ;;  %v2864_v55 = vpop.f32.mrb[21].mxu1  ;;  %v5824_v35 = vld [vmem:[%s7912_s8 + $0x198] ss:$48 sps:$4 sm:$0xff]  }
 0x357   : > { %v2865_v14 = vadd.f32 %v7106_v63, %v2864_v55  ;;  %v5632_v45 = vpop.f32.mrb[22].mxu1  ;;  %v5839_v55 = vld [vmem:[%s7912_s8 + $0x1f8] ss:$48 sps:$4 sm:$0xff]  }
 0x358   : > { %v2876_v51 = vadd.f32 %v5632_v45, %v7106_v63  ;;  %v2867_v26 = vpop.f32.mrb[23].mxu1  ;;  %v2917_v27 = vmax.f32 %v2873_v29, 0.0  ;;  %v5841_v29 = vld [vmem:[%s7912_s8 + $0x1fc] ss:$48 sps:$4 sm:$0xff]  }
 0x359   : > { %v2868_v3 = vadd.f32 %v7106_v63, %v2867_v26  ;;  %v2915_v54 = vmax.f32 %v2865_v14, 0.0  ;;  %v5848_v14 = vld [vmem:[%s7912_s8 + $0x258] ss:$48 sps:$4 sm:$0xff]   ;;  %v5856_v45 = vld [vmem:[%s7912_s8 + $0x2bc] ss:$48 sps:$4 sm:$0xff]  }
 0x35a   : > { %v2918_v17 = vmax.f32 %v2876_v51, 0.0  ;;  %v5854_v51 = vld [vmem:[%s7912_s8 + $0x2b8] ss:$48 sps:$4 sm:$0xff]   ;;  %v5862_v26 = vld [vmem:[%s7912_s8 + $0x31c] ss:$48 sps:$4 sm:$0xff]  }
 0x35b   : > { %v2916_v32 = vmax.f32 %v2868_v3, 0.0  ;;  %v5860_v3 = vld [vmem:[%s7912_s8 + $0x318] ss:$48 sps:$4 sm:$0xff]  }
 0x35c   : > { %v2930_v38 = vpack.c.bf16 %v2918_v17, %v2917_v27  ;;  %v5868_v27 = vld [vmem:[%s7912_s8 + $0x37c] ss:$48 sps:$4 sm:$0xff]   ;;  %v5866_v17 = vld [vmem:[%s7912_s8 + $0x378] ss:$48 sps:$4 sm:$0xff]  }
 0x35d   : > { %v2929_v33 = vpack.c.bf16 %v2916_v32, %v2915_v54  ;;  %v5872_v54 = vld [vmem:[%s7912_s8 + $0x3d8] ss:$48 sps:$4 sm:$0xff]   ;;  %v5880_v32 = vld [vmem:[%s7912_s8 + $0x43c] ss:$48 sps:$4 sm:$0xff]  }
 0x35e   : > { %2939 = vrot.lane.b32.xlu1 %v2930_v38, %s6198_s18  ;;  %v5878_v38 = vld [vmem:[%s7912_s8 + $0x438] ss:$48 sps:$4 sm:$0xff]  }
 0x35f   : > { %2937 = vrot.lane.b32.xlu0 %v2929_v33, %s6198_s18  ;;  %s6200_s18 = smov 64   ;;  %v5886_v33 = vld [vmem:[%s7912_s8 + $0x49c] ss:$48 sps:$4 sm:$0xff]  }
 0x396   : > { %v5635_v44 = vpop.f32.mrb[24].mxu1 }
 0x397   : > { %v2889_v40 = vadd.f32 %v5635_v44, %v7106_v63  ;;  %v2880_v25 = vpop.f32.mrb[25].mxu1 }
 0x398   : > { %v2881_v61 = vadd.f32 %v7106_v63, %v2880_v25  ;;  %v5636_v62 = vpop.f32.mrb[26].mxu1 }
 0x399   : > { %v2892_v42 = vadd.f32 %v5636_v62, %v7106_v63  ;;  %v2883_v0 = vpop.f32.mrb[27].mxu1  ;;  %v2921_v19 = vmax.f32 %v2889_v40, 0.0 }
 0x39a   : > { %v2884_v13 = vadd.f32 %v7106_v63, %v2883_v0  ;;  %v2919_v37 = vmax.f32 %v2881_v61, 0.0 }
 0x39b   : > { %v2922_v8 = vmax.f32 %v2892_v42, 0.0 }
 0x39c   : > { %v2920_v46 = vmax.f32 %v2884_v13, 0.0 }
 0x39d   : > { %v2932_v7 = vpack.c.bf16 %v2922_v8, %v2921_v19  ;;  %v5821_v19 = vld [vmem:[%s7912_s8] ss:$48 sps:$4 sm:$0xff]  }
 0x39e   : > { %v2931_v2 = vpack.c.bf16 %v2920_v46, %v2919_v37  ;;  %v5829_v46 = vld [vmem:[%s7912_s8 + $0x64] ss:$48 sps:$4 sm:$0xff]  }
 0x39f   : > { %2945 = vrot.lane.b32.xlu1 %v2932_v7, %s6200_s18 }
 0x3a0   : > { %2943 = vrot.lane.b32.xlu0 %v2931_v2, %s6200_s18  ;;  %v5830_v2 = vld [vmem:[%s7912_s8 + $0xc0] ss:$48 sps:$4 sm:$0xff]  }
 0x3a1   : > { %v5639_v52 = vpop.f32.mrb[28].mxu1 }
 0x3a2   : > { %v2905_v4 = vadd.f32 %v5639_v52, %v7106_v63  ;;  %v2896_v43 = vpop.f32.mrb[29].mxu1  ;;  %v5838_v52 = vld [vmem:[%s7912_s8 + $0x184] ss:$48 sps:$4 sm:$0xff]  }
 0x3a3   : > { %v2897_v11 = vadd.f32 %v7106_v63, %v2896_v43  ;;  %v5640_v57 = vpop.f32.mrb[30].mxu1  ;;  %v5844_v43 = vld [vmem:[%s7912_s8 + $0x1e4] ss:$48 sps:$4 sm:$0xff]  }
 0x3a4   : > { %v2908_v59 = vadd.f32 %v5640_v57, %v7106_v63  ;;  %v2899_v5 = vpop.f32.mrb[31].mxu1  ;;  %v2925_v41 = vmax.f32 %v2905_v4, 0.0  ;;  %v5836_v4 = vld [vmem:[%s7912_s8 + $0x180] ss:$48 sps:$4 sm:$0xff]  }
 0x3a5   : > { %v2900_v48 = vadd.f32 %v7106_v63, %v2899_v5  ;;  %v2923_v30 = vmax.f32 %v2897_v11, 0.0  ;;  %v5820_v63 = vld [vmem:[%s7912_s8 + $0x13c] ss:$48 sps:$4 sm:$0xff]   ;;  %v5847_v11 = vld [vmem:[%s7912_s8 + $0x244] ss:$48 sps:$4 sm:$0xff]  }
 0x3a6   : > { %v2926_v47 = vmax.f32 %v2908_v59, 0.0  ;;  %4518 = vmatprep.subr.bf16.mxu0 %v5820_v63  ;;  %v5845_v57 = vld [vmem:[%s7912_s8 + $0x240] ss:$48 sps:$4 sm:$0xff]   ;;  %v5859_v5 = vld [vmem:[%s7912_s8 + $0x304] ss:$48 sps:$4 sm:$0xff]  }
 0x3a7   : > { %v2924_v18 = vmax.f32 %v2900_v48, 0.0  ;;  %4519 = vmatpush1.bf16.msra.mxu0 %v5818_v21  ;;  %v5851_v59 = vld [vmem:[%s7912_s8 + $0x2a0] ss:$48 sps:$4 sm:$0xff]   ;;  %v5865_v48 = vld [vmem:[%s7912_s8 + $0x364] ss:$48 sps:$4 sm:$0xff]  }
 0x3a8   : > { %v2934_v23 = vpack.c.bf16 %v2926_v47, %v2925_v41  ;;  %4520 = vmatprep.subr.bf16.mxu0 %v5826_v31  ;;  %v5863_v41 = vld [vmem:[%s7912_s8 + $0x360] ss:$48 sps:$4 sm:$0xff]   ;;  %v5871_v47 = vld [vmem:[%s7912_s8 + $0x3c4] ss:$48 sps:$4 sm:$0xff]   ;;  %v5896_v31 = vld [vmem:[%s7912_s8 + $0x558] ss:$48 sps:$4 sm:$0xff]  }
 0x3a9   : > { %v2933_v53 = vpack.c.bf16 %v2924_v18, %v2923_v30  ;;  %v5877_v30 = vld [vmem:[%s7912_s8 + $0x424] ss:$48 sps:$4 sm:$0xff]   ;;  %v5875_v18 = vld [vmem:[%s7912_s8 + $0x420] ss:$48 sps:$4 sm:$0xff]  }
 0x3aa   : > { %2951 = vrot.lane.b32.xlu1 %v2934_v23, %s6201_s29  ;;  %v5881_v23 = vld [vmem:[%s7912_s8 + $0x480] ss:$48 sps:$4 sm:$0xff]   ;;  %v5889_v63 = vld [vmem:[%s7912_s8 + $0x4e4] ss:$48 sps:$4 sm:$0xff]  }
 0x3ab   : > { %2949 = vrot.lane.b32.xlu0 %v2933_v53, %s6201_s29  ;;  %4521 = vmatpush1.bf16.msra.mxu0 %v5824_v35  ;;  %v5887_v53 = vld [vmem:[%s7912_s8 + $0x4e0] ss:$48 sps:$4 sm:$0xff]   ;;  %s6126_s29 = scalar_lea.vmem %s7858_s22, 3072 }
 0x3ac   : > { %4522 = vmatprep.subr.bf16.mxu0 %v5841_v29  ;;  %v5893_v21 = vld [vmem:[%s7912_s8 + $0x540] ss:$48 sps:$4 sm:$0xff]   ;;  %v5902_v29 = vld [vmem:[%s7912_s8 + $0x5b8] ss:$48 sps:$4 sm:$0xff]   ;;  %p6127_p5 = scmp.ne.s32.totalorder %s7858_s22, %s6126_s29  ;;  %p6134_p7 = scmp.lt.s32.totalorder %s6132_s23, %s6126_s29 }
 0x3ad   : > { %v5899_v35 = vld [vmem:[%s7912_s8 + $0x5a0] ss:$48 sps:$4 sm:$0xff]  }
 0x3ae   : > { %3118 = vrot.lane.b32.xlu1 %v5808_v24, %s6200_s18  ;;  %v5895_v24 = vld [vmem:[%s7912_s8 + $0x544] ss:$48 sps:$4 sm:$0xff]   ;;  %p6128_p9 = pnand %p6127_p5, %p7926_p6  ;;  %p6135_p8 = por %p6134_p7, %p6133_p11 }
 0x3af   : > { %3116 = vrot.lane.b32.xlu0 %v5806_v6, %s6200_s18  ;;  %4523 = vmatpush1.bf16.msra.mxu0 %v5839_v55  ;;  %v5898_v6 = vld [vmem:[%s7912_s8 + $0x55c] ss:$48 sps:$4 sm:$0xff]  }
 0x3b0   : > { %4524 = vmatprep.subr.bf16.mxu0 %v5850_v22  ;;  %p6129_p10 = pneg %p6128_p9 }
 0x3b2   : > { %3122 = vrot.lane.b32.xlu1 %v5814_v15, %s6200_s18  ;;  %v5901_v15 = vld [vmem:[%s7912_s8 + $0x5a4] ss:$48 sps:$4 sm:$0xff]   ;;  %p6136_p12 = pnand %p6135_p8, %p6129_p10 }
 0x3b3   : > { %3120 = vrot.lane.b32.xlu0 %v5809_v16, %s6200_s18  ;;  %4525 = vmatpush1.bf16.msra.mxu0 %v5848_v14  ;;  %v5904_v16 = vld [vmem:[%s7912_s8 + $0x5bc] ss:$48 sps:$4 sm:$0xff]   ;;  %s5668_s18 = smul.u32 3072, %s6280_s17  ;;  %s4840_s17 = scalar_lea.sflag [#allocation5], %s6509_s21 }
 0x3b4   : > { %4526 = vmatprep.subr.bf16.mxu0 %v5856_v45  ;;  %v5907_v14 = vld [vmem:[%s7912_s8 + $0xc] ss:$48 sps:$4 sm:$0xff]  }
 0x3b5   : > { %v5910_v45 = vld [vmem:[%s7912_s8 + $0x2c] ss:$48 sps:$4 sm:$0xff]   ;;  %s7855_s28 = scalar_lea.hbm %s7914_s10, %s5668_s18 }
 0x3b7   : > { %4527 = vmatpush1.bf16.msra.mxu0 %v5854_v51 }
 0x3b8   : > { %4528 = vmatprep.subr.bf16.mxu0 %v5862_v26  ;;  %v5115_v26 = vld [vmem:[%s7911_s7] ss:$0 sm:$0xff] }
 0x3bb   : > { %4529 = vmatpush1.bf16.msra.mxu0 %v5860_v3 }
 0x3bc   : > { %4530 = vmatprep.subr.bf16.mxu0 %v5868_v27 }
 0x3bf   : > { %4531 = vmatpush1.bf16.msra.mxu0 %v5866_v17 }
 0x3c0   : > { %4532 = vmatprep.subr.bf16.mxu0 %v5874_v49 }
 0x3c3   : > { %4533 = vmatpush1.bf16.msra.mxu0 %v5872_v54 }
 0x3c4   : > { %4534 = vmatprep.subr.bf16.mxu0 %v5880_v32 }
 0x3c7   : > { %4535 = vmatpush1.bf16.msra.mxu0 %v5878_v38 }
 0x3c8   : > { %4536 = vmatprep.subr.bf16.mxu0 %v5886_v33 }
 0x3cb   : > { %4537 = vmatpush1.bf16.msra.mxu0 %v5884_v34 }
 0x3cc   : > { %4538 = vmatprep.subr.bf16.mxu0 %v5892_v36 }
 0x3cf   : > { %4539 = vmatpush1.bf16.msra.mxu0 %v5890_v39 }
 0x3d0   : > { %v2940_v44 = vpop.permute.xlu1 %2939  ;;  %4540 = vmatprep.subr.bf16.mxu0 %v5898_v6  ;;  %v5953_v6 = vld [vmem:[%s7912_s8 + $0x308] ss:$48 sps:$4 sm:$0xff]  }
 0x3d1   : > { %v2938_v50 = vpop.permute.xlu0 %2937  ;;  %v2958_v42 = vsel %vm2660_vm3, %v7112_v9, %v2940_v44  ;;  %v5827_v9 = vld [vmem:[%s7912_s8 + $0x60] ss:$48 sps:$4 sm:$0xff]  }
 0x3d2   : > { %v2955_v61 = vsel %vm2660_vm3, %v7114_v56, %v2938_v50  ;;  %v5832_v56 = vld [vmem:[%s7912_s8 + $0xc4] ss:$48 sps:$4 sm:$0xff]  }
 0x3d3   : > { %4541 = vmatpush1.bf16.msra.mxu0 %v5896_v31  ;;  %v5961_v31 = vld [vmem:[%s7912_s8 + $0x36c] ss:$48 sps:$4 sm:$0xff]  }
 0x3d4   : > { %4542 = vmatprep.subr.bf16.mxu0 %v5904_v16  ;;  %v5959_v16 = vld [vmem:[%s7912_s8 + $0x368] ss:$48 sps:$4 sm:$0xff]  }
 0x3d7   : > { %4543 = vmatpush1.bf16.msra.mxu0 %v5902_v29  ;;  %v5967_v29 = vld [vmem:[%s7912_s8 + $0x3cc] ss:$48 sps:$4 sm:$0xff]  }
 0x3d8   : > { %4618 = vmatprep.subr.bf16.mxu0 %v5910_v45  ;;  %v5973_v45 = vld [vmem:[%s7912_s8 + $0x42c] ss:$48 sps:$4 sm:$0xff]  }
 0x411   : > { %v2946_v40 = vpop.permute.xlu1 %2945 }
 0x412   : > { %v2944_v25 = vpop.permute.xlu0 %2943  ;;  %v2962_v8 = vsel %vm2797_vm5, %v2958_v42, %v2946_v40  ;;  %v5913_v42 = vld [vmem:[%s7912_s8 + $0x6c] ss:$48 sps:$4 sm:$0xff]  }
 0x413   : > { %v2960_v0 = vsel %vm2797_vm5, %v2955_v61, %v2944_v25  ;;  %v5905_v25 = vld [vmem:[%s7912_s8 + $0x8] ss:$48 sps:$4 sm:$0xff]  }
 0x414   : > { %v5908_v61 = vld [vmem:[%s7912_s8 + $0x28] ss:$48 sps:$4 sm:$0xff]  }
 0x41c   : > { %v2952_v62 = vpop.permute.xlu1 %2951 }
 0x41d   : > { %v2950_v13 = vpop.permute.xlu0 %2949  ;;  %v2968_v7 = vsel %vm2963_vm6, %v2962_v8, %v2952_v62 }
 0x41e   : > { %v2965_v37 = vsel %vm2963_vm6, %v2960_v0, %v2950_v13  ;;  %v5916_v0 = vld [vmem:[%s7912_s8 + $0x8c] ss:$48 sps:$4 sm:$0xff]  }
 0x41f   : > { %5657 = vmatprep.mubr.bf16.mxu1 %v2965_v37  ;;  %v5911_v37 = vld [vmem:[%s7912_s8 + $0x68] ss:$48 sps:$4 sm:$0xff]  }
 0x420   : > { %5658 = vmatmul.mubr.bf16.vlgmr.msra.gmra.mrb[32].mxu1 %v2968_v7  ;;  %v3119_v22 = vpop.permute.xlu1 %3118  ;;  %v5919_v7 = vld [vmem:[%s7912_s8 + $0xcc] ss:$48 sps:$4 sm:$0xff]  }
 0x421   : > { %4354 = vmatpush1.bf16.msra.mxu1 %v5821_v19  ;;  %v3117_v55 = vpop.permute.xlu0 %3116 }
 0x422   : > { %4355 = vmatprep.subr.bf16.mxu1 %v5829_v46  ;;  %v7369_v51 = vsel %vm2797_vm5, %v3117_v55, %v3119_v22  ;;  %v5914_v46 = vld [vmem:[%s7912_s8 + $0x88] ss:$48 sps:$4 sm:$0xff]  }
 0x423   : > { %4385 = vmatprep.mubr.bf16.mxu1 %v7369_v51  ;;  %4544 = vmatprep.mubr.bf16.mxu0 %v7369_v51  ;;  %v5965_v22 = vld [vmem:[%s7912_s8 + $0x3c8] ss:$48 sps:$4 sm:$0xff]  }
 0x424   : > { %v3123_v62 = vpop.permute.xlu1 %3122 }
 0x425   : > { %4356 = vmatpush1.bf16.msra.mxu1 %v5827_v9  ;;  %v3121_v19 = vpop.permute.xlu0 %3120  ;;  %v5922_v9 = vld [vmem:[%s7912_s8 + $0xec] ss:$48 sps:$4 sm:$0xff]  }
 0x426   : > { %4357 = vmatprep.subr.bf16.mxu1 %v5832_v56  ;;  %v7394_v8 = vsel %vm2797_vm5, %v3121_v19, %v3123_v62  ;;  %v5917_v56 = vld [vmem:[%s7912_s8 + $0xc8] ss:$48 sps:$4 sm:$0xff]  }
 0x427   : > { %v5995_v62 = vld [vmem:[%s7912_s8 + $0x5a8] ss:$48 sps:$4 sm:$0xff]  }
 0x429   : > { %4358 = vmatpush1.bf16.msra.mxu1 %v5830_v2  ;;  %v5920_v2 = vld [vmem:[%s7912_s8 + $0xe8] ss:$48 sps:$4 sm:$0xff]  }
 0x42a   : > { %4359 = vmatprep.subr.bf16.mxu1 %v5835_v10 }
 0x42d   : > { %4360 = vmatpush1.bf16.msra.mxu1 %v5833_v28  ;;  %v5925_v28 = vld [vmem:[%s7912_s8 + $0x12c] ss:$48 sps:$4 sm:$0xff]  }
 0x42e   : > { %4361 = vmatprep.subr.bf16.mxu1 %v5838_v52  ;;  %v5928_v52 = vld [vmem:[%s7912_s8 + $0x14c] ss:$48 sps:$4 sm:$0xff]  }
 0x431   : > { %4362 = vmatpush1.bf16.msra.mxu1 %v5836_v4  ;;  %v5923_v4 = vld [vmem:[%s7912_s8 + $0x128] ss:$48 sps:$4 sm:$0xff]  }
 0x432   : > { %4363 = vmatprep.subr.bf16.mxu1 %v5844_v43  ;;  %v5926_v43 = vld [vmem:[%s7912_s8 + $0x148] ss:$48 sps:$4 sm:$0xff]  }
 0x435   : > { %4364 = vmatpush1.bf16.msra.mxu1 %v5842_v1  ;;  %v5931_v1 = vld [vmem:[%s7912_s8 + $0x18c] ss:$48 sps:$4 sm:$0xff]  }
 0x436   : > { %4365 = vmatprep.subr.bf16.mxu1 %v5847_v11  ;;  %v5934_v11 = vld [vmem:[%s7912_s8 + $0x1ac] ss:$48 sps:$4 sm:$0xff]  }
 0x439   : > { %4366 = vmatpush1.bf16.msra.mxu1 %v5845_v57  ;;  %v5929_v57 = vld [vmem:[%s7912_s8 + $0x188] ss:$48 sps:$4 sm:$0xff]  }
 0x43a   : > { %4367 = vmatprep.subr.bf16.mxu1 %v5853_v12  ;;  %v5932_v12 = vld [vmem:[%s7912_s8 + $0x1a8] ss:$48 sps:$4 sm:$0xff]  }
 0x43d   : > { %4368 = vmatpush1.bf16.msra.mxu1 %v5851_v59  ;;  %v5937_v59 = vld [vmem:[%s7912_s8 + $0x1ec] ss:$48 sps:$4 sm:$0xff]  }
 0x43e   : > { %4369 = vmatprep.subr.bf16.mxu1 %v5859_v5  ;;  %v5940_v5 = vld [vmem:[%s7912_s8 + $0x20c] ss:$48 sps:$4 sm:$0xff]  }
 0x441   : > { %4370 = vmatpush1.bf16.msra.mxu1 %v5857_v58  ;;  %v5935_v58 = vld [vmem:[%s7912_s8 + $0x1e8] ss:$48 sps:$4 sm:$0xff]  }
 0x442   : > { %4371 = vmatprep.subr.bf16.mxu1 %v5865_v48  ;;  %v5938_v48 = vld [vmem:[%s7912_s8 + $0x208] ss:$48 sps:$4 sm:$0xff]  }
 0x445   : > { %4372 = vmatpush1.bf16.msra.mxu1 %v5863_v41  ;;  %v5943_v41 = vld [vmem:[%s7912_s8 + $0x24c] ss:$48 sps:$4 sm:$0xff]  }
 0x446   : > { %4373 = vmatprep.subr.bf16.mxu1 %v5871_v47  ;;  %v5946_v47 = vld [vmem:[%s7912_s8 + $0x26c] ss:$48 sps:$4 sm:$0xff]  }
 0x449   : > { %4374 = vmatpush1.bf16.msra.mxu1 %v5869_v20  ;;  %v5941_v20 = vld [vmem:[%s7912_s8 + $0x248] ss:$48 sps:$4 sm:$0xff]  }
 0x44a   : > { %4375 = vmatprep.subr.bf16.mxu1 %v5877_v30  ;;  %v5944_v30 = vld [vmem:[%s7912_s8 + $0x268] ss:$48 sps:$4 sm:$0xff]  }
 0x44d   : > { %4376 = vmatpush1.bf16.msra.mxu1 %v5875_v18  ;;  %v5949_v18 = vld [vmem:[%s7912_s8 + $0x2ac] ss:$48 sps:$4 sm:$0xff]  }
 0x44e   : > { %4377 = vmatprep.subr.bf16.mxu1 %v5883_v60  ;;  %v5952_v60 = vld [vmem:[%s7912_s8 + $0x2cc] ss:$48 sps:$4 sm:$0xff]  }
 0x451   : > { %4378 = vmatpush1.bf16.msra.mxu1 %v5881_v23  ;;  %v5947_v23 = vld [vmem:[%s7912_s8 + $0x2a8] ss:$48 sps:$4 sm:$0xff]  }
 0x452   : > { %4379 = vmatprep.subr.bf16.mxu1 %v5889_v63  ;;  %v5950_v63 = vld [vmem:[%s7912_s8 + $0x2c8] ss:$48 sps:$4 sm:$0xff]  }
 0x455   : > { %4380 = vmatpush1.bf16.msra.mxu1 %v5887_v53  ;;  %v5955_v53 = vld [vmem:[%s7912_s8 + $0x30c] ss:$48 sps:$4 sm:$0xff]  }
 0x456   : > { %4381 = vmatprep.subr.bf16.mxu1 %v5895_v24  ;;  %v5958_v24 = vld [vmem:[%s7912_s8 + $0x32c] ss:$48 sps:$4 sm:$0xff]  }
 0x459   : > { %4382 = vmatpush1.bf16.msra.mxu1 %v5893_v21  ;;  %v5956_v21 = vld [vmem:[%s7912_s8 + $0x328] ss:$48 sps:$4 sm:$0xff]  }
 0x45a   : > { %4383 = vmatprep.subr.bf16.mxu1 %v5901_v15  ;;  %v5964_v15 = vld [vmem:[%s7912_s8 + $0x38c] ss:$48 sps:$4 sm:$0xff]  }
 0x45d   : > { %4384 = vmatpush1.bf16.msra.mxu1 %v5899_v35  ;;  %v5962_v35 = vld [vmem:[%s7912_s8 + $0x388] ss:$48 sps:$4 sm:$0xff]  }
 0x45e   : > { %4406 = vmatprep.subr.bf16.mxu1 %v5907_v14  ;;  %v5968_v14 = vld [vmem:[%s7912_s8 + $0x3e8] ss:$48 sps:$4 sm:$0xff]  }
 0x4f3   : > { %v5659_v3 = vpop.f32.mrb[32].mxu1 }
 0x4f4   : > { %v3084_v27 = vadd.f32 %v5659_v3, %v5115_v26  ;;  %v3075_v17 = vpop.f32.mrb[33].mxu1  ;;  %v5971_v3 = vld [vmem:[%s7912_s8 + $0x428] ss:$48 sps:$4 sm:$0xff]  }
 0x4f5   : > { %v3076_v49 = vadd.f32 %v5115_v26, %v3075_v17  ;;  %v5660_v54 = vpop.f32.mrb[34].mxu1  ;;  %v5979_v17 = vld [vmem:[%s7912_s8 + $0x48c] ss:$48 sps:$4 sm:$0xff]  }
 0x4f6   : > { %v3087_v32 = vadd.f32 %v5660_v54, %v5115_v26  ;;  %v3078_v38 = vpop.f32.mrb[35].mxu1  ;;  %v3092_v34 = vmax.f32 %v3084_v27, 0.0  ;;  %v5974_v27 = vld [vmem:[%s7912_s8 + $0x448] ss:$48 sps:$4 sm:$0xff]  }
 0x4f7   : > { %v3079_v33 = vadd.f32 %v5115_v26, %v3078_v38  ;;  %v3090_v39 = vmax.f32 %v3076_v49, 0.0  ;;  %v5976_v26 = vld [vmem:[%s7912_s8 + $0x44c] ss:$48 sps:$4 sm:$0xff]   ;;  %v5977_v54 = vld [vmem:[%s7912_s8 + $0x488] ss:$48 sps:$4 sm:$0xff]  }
 0x4f8   : > { %v3093_v36 = vmax.f32 %v3087_v32, 0.0  ;;  %v5982_v49 = vld [vmem:[%s7912_s8 + $0x4ac] ss:$48 sps:$4 sm:$0xff]   ;;  %v5980_v32 = vld [vmem:[%s7912_s8 + $0x4a8] ss:$48 sps:$4 sm:$0xff]  }
 0x4f9   : > { %v3091_v44 = vmax.f32 %v3079_v33, 0.0  ;;  %v5985_v38 = vld [vmem:[%s7912_s8 + $0x4ec] ss:$48 sps:$4 sm:$0xff]  }
 0x4fa   : > { %v3095_v50 = vpack.c.bf16 %v3093_v36, %v3092_v34  ;;  %v5988_v33 = vld [vmem:[%s7912_s8 + $0x50c] ss:$48 sps:$4 sm:$0xff]   ;;  %v5983_v34 = vld [vmem:[%s7912_s8 + $0x4e8] ss:$48 sps:$4 sm:$0xff]  }
 0x4fb   : > { %v3094_v40 = vpack.c.bf16 %v3091_v44, %v3090_v39  ;;  %v5986_v36 = vld [vmem:[%s7912_s8 + $0x508] ss:$48 sps:$4 sm:$0xff]   ;;  %v5991_v39 = vld [vmem:[%s7912_s8 + $0x54c] ss:$48 sps:$4 sm:$0xff]  }
 0x4fc   : > { %v7417_v10 = vsel %vm2797_vm5, %v3095_v50, %v3121_v19  ;;  %v5994_v44 = vld [vmem:[%s7912_s8 + $0x56c] ss:$48 sps:$4 sm:$0xff]   ;;  %v5989_v50 = vld [vmem:[%s7912_s8 + $0x548] ss:$48 sps:$4 sm:$0xff]   ;;  %v6001_v19 = vld [vmem:[%s7912_s8 + $0x10] ss:$48 sps:$4 sm:$0xff]  }
 0x4fd   : > { %v7389_v13 = vsel %vm2797_vm5, %v3094_v40, %v3117_v55  ;;  %v5970_v55 = vld [vmem:[%s7912_s8 + $0x3ec] ss:$48 sps:$4 sm:$0xff]   ;;  %v5992_v40 = vld [vmem:[%s7912_s8 + $0x568] ss:$48 sps:$4 sm:$0xff]  }
 0x4fe   : > { %4386 = vmatmul.mubr.bf16.vlgmr.msra.gmra.mrb[36].mxu1 %v7389_v13  ;;  %4545 = vmatmul.mubr.bf16.vlgmr.msra.gmra.mrb[128].mxu0 %v7389_v13 }
 0x4ff   : > { %4407 = vmatpush1.bf16.msra.mxu1 %v5905_v25  ;;  %4619 = vmatpush1.bf16.msra.mxu0 %v5908_v61  ;;  %v5997_v25 = vld [vmem:[%s7912_s8 + $0x5ac] ss:$48 sps:$4 sm:$0xff]  }
 0x500   : > { %4408 = vmatprep.subr.bf16.mxu1 %v5913_v42  ;;  %4620 = vmatprep.subr.bf16.mxu0 %v5916_v0  ;;  %v6000_v61 = vld [vmem:[%s7912_s8 + $0x5cc] ss:$48 sps:$4 sm:$0xff]   ;;  %v5998_v42 = vld [vmem:[%s7912_s8 + $0x5c8] ss:$48 sps:$4 sm:$0xff]   ;;  %v6003_v0 = vld [vmem:[%s7912_s8 + $0x14] ss:$48 sps:$4 sm:$0xff]  }
 0x501   : > { %4395 = vmatprep.mubr.bf16.mxu1 %v7394_v8  ;;  %4554 = vmatprep.mubr.bf16.mxu0 %v7394_v8 }
 0x503   : > { %4409 = vmatpush1.bf16.msra.mxu1 %v5911_v37  ;;  %4621 = vmatpush1.bf16.msra.mxu0 %v5914_v46  ;;  %v6006_v37 = vld [vmem:[%s7912_s8 + $0x74] ss:$48 sps:$4 sm:$0xff]   ;;  %v6004_v46 = vld [vmem:[%s7912_s8 + $0x70] ss:$48 sps:$4 sm:$0xff]  }
 0x504   : > { %4410 = vmatprep.subr.bf16.mxu1 %v5919_v7  ;;  %4622 = vmatprep.subr.bf16.mxu0 %v5922_v9  ;;  %v6009_v7 = vld [vmem:[%s7912_s8 + $0xd4] ss:$48 sps:$4 sm:$0xff]   ;;  %v6007_v9 = vld [vmem:[%s7912_s8 + $0xd0] ss:$48 sps:$4 sm:$0xff]  }
 0x506   : > { %4396 = vmatmul.mubr.bf16.gmra.mrb[40].mxu1 %v7417_v10  ;;  %4555 = vmatmul.mubr.bf16.gmra.mrb[132].mxu0 %v7417_v10 }
 0x507   : > { %4411 = vmatpush1.bf16.msra.mxu1 %v5917_v56  ;;  %4623 = vmatpush1.bf16.msra.mxu0 %v5920_v2  ;;  %v6012_v56 = vld [vmem:[%s7912_s8 + $0x134] ss:$48 sps:$4 sm:$0xff]   ;;  %v6010_v2 = vld [vmem:[%s7912_s8 + $0x130] ss:$48 sps:$4 sm:$0xff]  }
 0x508   : > { %4438 = vmatprep.mubr.bf16.mxu1 %v7369_v51  ;;  %4650 = vmatprep.mubr.bf16.mxu0 %v7369_v51 }
 0x509   : > { %4412 = vmatprep.subr.bf16.mxu1 %v5925_v28  ;;  %4624 = vmatprep.subr.bf16.mxu0 %v5928_v52  ;;  %v6015_v28 = vld [vmem:[%s7912_s8 + $0x194] ss:$48 sps:$4 sm:$0xff]   ;;  %v6013_v52 = vld [vmem:[%s7912_s8 + $0x190] ss:$48 sps:$4 sm:$0xff]  }
 0x50b   : > { %4413 = vmatpush1.bf16.msra.mxu1 %v5923_v4  ;;  %4625 = vmatpush1.bf16.msra.mxu0 %v5926_v43  ;;  %v6018_v4 = vld [vmem:[%s7912_s8 + $0x1f4] ss:$48 sps:$4 sm:$0xff]   ;;  %v6016_v43 = vld [vmem:[%s7912_s8 + $0x1f0] ss:$48 sps:$4 sm:$0xff]  }
 0x50c   : > { %4414 = vmatprep.subr.bf16.mxu1 %v5931_v1  ;;  %4626 = vmatprep.subr.bf16.mxu0 %v5934_v11  ;;  %v6021_v1 = vld [vmem:[%s7912_s8 + $0x254] ss:$48 sps:$4 sm:$0xff]   ;;  %v6019_v11 = vld [vmem:[%s7912_s8 + $0x250] ss:$48 sps:$4 sm:$0xff]  }
 0x50f   : > { %4415 = vmatpush1.bf16.msra.mxu1 %v5929_v57  ;;  %4627 = vmatpush1.bf16.msra.mxu0 %v5932_v12  ;;  %v6024_v57 = vld [vmem:[%s7912_s8 + $0x2b4] ss:$48 sps:$4 sm:$0xff]   ;;  %v6022_v12 = vld [vmem:[%s7912_s8 + $0x2b0] ss:$48 sps:$4 sm:$0xff]  }
 0x510   : > { %4416 = vmatprep.subr.bf16.mxu1 %v5937_v59  ;;  %4628 = vmatprep.subr.bf16.mxu0 %v5940_v5  ;;  %v6027_v59 = vld [vmem:[%s7912_s8 + $0x314] ss:$48 sps:$4 sm:$0xff]   ;;  %v6025_v5 = vld [vmem:[%s7912_s8 + $0x310] ss:$48 sps:$4 sm:$0xff]  }
 0x513   : > { %4417 = vmatpush1.bf16.msra.mxu1 %v5935_v58  ;;  %4629 = vmatpush1.bf16.msra.mxu0 %v5938_v48  ;;  %v6030_v58 = vld [vmem:[%s7912_s8 + $0x374] ss:$48 sps:$4 sm:$0xff]   ;;  %v6028_v48 = vld [vmem:[%s7912_s8 + $0x370] ss:$48 sps:$4 sm:$0xff]  }
 0x514   : > { %4418 = vmatprep.subr.bf16.mxu1 %v5943_v41  ;;  %4630 = vmatprep.subr.bf16.mxu0 %v5946_v47  ;;  %v6033_v41 = vld [vmem:[%s7912_s8 + $0x3d4] ss:$48 sps:$4 sm:$0xff]   ;;  %v6031_v47 = vld [vmem:[%s7912_s8 + $0x3d0] ss:$48 sps:$4 sm:$0xff]  }
 0x517   : > { %4419 = vmatpush1.bf16.msra.mxu1 %v5941_v20  ;;  %4631 = vmatpush1.bf16.msra.mxu0 %v5944_v30  ;;  %v6036_v20 = vld [vmem:[%s7912_s8 + $0x434] ss:$48 sps:$4 sm:$0xff]   ;;  %v6034_v30 = vld [vmem:[%s7912_s8 + $0x430] ss:$48 sps:$4 sm:$0xff]  }
 0x518   : > { %4420 = vmatprep.subr.bf16.mxu1 %v5949_v18  ;;  %4632 = vmatprep.subr.bf16.mxu0 %v5952_v60  ;;  %v6039_v18 = vld [vmem:[%s7912_s8 + $0x494] ss:$48 sps:$4 sm:$0xff]   ;;  %v6037_v60 = vld [vmem:[%s7912_s8 + $0x490] ss:$48 sps:$4 sm:$0xff]  }
 0x51b   : > { %4421 = vmatpush1.bf16.msra.mxu1 %v5947_v23  ;;  %4633 = vmatpush1.bf16.msra.mxu0 %v5950_v63  ;;  %v6042_v23 = vld [vmem:[%s7912_s8 + $0x4f4] ss:$48 sps:$4 sm:$0xff]   ;;  %v6040_v63 = vld [vmem:[%s7912_s8 + $0x4f0] ss:$48 sps:$4 sm:$0xff]  }
 0x51c   : > { %4422 = vmatprep.subr.bf16.mxu1 %v5955_v53  ;;  %4634 = vmatprep.subr.bf16.mxu0 %v5958_v24  ;;  %v6045_v53 = vld [vmem:[%s7912_s8 + $0x554] ss:$48 sps:$4 sm:$0xff]   ;;  %v6043_v24 = vld [vmem:[%s7912_s8 + $0x550] ss:$48 sps:$4 sm:$0xff]  }
 0x51f   : > { %4423 = vmatpush1.bf16.msra.mxu1 %v5953_v6  ;;  %4635 = vmatpush1.bf16.msra.mxu0 %v5956_v21  ;;  %v6048_v6 = vld [vmem:[%s7912_s8 + $0x5b4] ss:$48 sps:$4 sm:$0xff]   ;;  %v6046_v21 = vld [vmem:[%s7912_s8 + $0x5b0] ss:$48 sps:$4 sm:$0xff]  }
 0x520   : > { %4424 = vmatprep.subr.bf16.mxu1 %v5961_v31  ;;  %4636 = vmatprep.subr.bf16.mxu0 %v5964_v15  ;;  %v6051_v31 = vld [vmem:[%s7912_s8 + $0x24] ss:$48 sps:$4 sm:$0xff]   ;;  %v6049_v15 = vld [vmem:[%s7912_s8 + $0x20] ss:$48 sps:$4 sm:$0xff]  }
 0x523   : > { %4425 = vmatpush1.bf16.msra.mxu1 %v5959_v16  ;;  %4637 = vmatpush1.bf16.msra.mxu0 %v5962_v35  ;;  %v6054_v16 = vld [vmem:[%s7912_s8 + $0x84] ss:$48 sps:$4 sm:$0xff]   ;;  %v6052_v35 = vld [vmem:[%s7912_s8 + $0x80] ss:$48 sps:$4 sm:$0xff]  }
 0x524   : > { %4426 = vmatprep.subr.bf16.mxu1 %v5967_v29  ;;  %4638 = vmatprep.subr.bf16.mxu0 %v5970_v55  ;;  %v6057_v29 = vld [vmem:[%s7912_s8 + $0xe4] ss:$48 sps:$4 sm:$0xff]   ;;  %v6055_v55 = vld [vmem:[%s7912_s8 + $0xe0] ss:$48 sps:$4 sm:$0xff]  }
 0x527   : > { %4427 = vmatpush1.bf16.msra.mxu1 %v5965_v22  ;;  %4639 = vmatpush1.bf16.msra.mxu0 %v5968_v14  ;;  %v6060_v22 = vld [vmem:[%s7912_s8 + $0x144] ss:$48 sps:$4 sm:$0xff]   ;;  %v6058_v14 = vld [vmem:[%s7912_s8 + $0x140] ss:$48 sps:$4 sm:$0xff]  }
 0x528   : > { %4428 = vmatprep.subr.bf16.mxu1 %v5973_v45  ;;  %4640 = vmatprep.subr.bf16.mxu0 %v5976_v26  ;;  %v6063_v45 = vld [vmem:[%s7912_s8 + $0x1a4] ss:$48 sps:$4 sm:$0xff]   ;;  %v6061_v26 = vld [vmem:[%s7912_s8 + $0x1a0] ss:$48 sps:$4 sm:$0xff]  }
 0x52b   : > { %4429 = vmatpush1.bf16.msra.mxu1 %v5971_v3  ;;  %4641 = vmatpush1.bf16.msra.mxu0 %v5974_v27  ;;  %v6066_v3 = vld [vmem:[%s7912_s8 + $0x204] ss:$48 sps:$4 sm:$0xff]  }
 0x52c   : > { %4430 = vmatprep.subr.bf16.mxu1 %v5979_v17  ;;  %4642 = vmatprep.subr.bf16.mxu0 %v5982_v49  ;;  %v6069_v27 = vld [vmem:[%s7912_s8 + $0x264] ss:$48 sps:$4 sm:$0xff]   ;;  %v6067_v17 = vld [vmem:[%s7912_s8 + $0x260] ss:$48 sps:$4 sm:$0xff]  }
 0x52d   : > { %v6072_v49 = vld [vmem:[%s7912_s8 + $0x2c4] ss:$48 sps:$4 sm:$0xff]  }
 0x52f   : > { %4431 = vmatpush1.bf16.msra.mxu1 %v5977_v54  ;;  %4643 = vmatpush1.bf16.msra.mxu0 %v5980_v32  ;;  %v6070_v54 = vld [vmem:[%s7912_s8 + $0x2c0] ss:$48 sps:$4 sm:$0xff]   ;;  %v6075_v32 = vld [vmem:[%s7912_s8 + $0x324] ss:$48 sps:$4 sm:$0xff]  }
 0x530   : > { %4432 = vmatprep.subr.bf16.mxu1 %v5985_v38  ;;  %4644 = vmatprep.subr.bf16.mxu0 %v5988_v33  ;;  %v6073_v38 = vld [vmem:[%s7912_s8 + $0x320] ss:$48 sps:$4 sm:$0xff]   ;;  %v6078_v33 = vld [vmem:[%s7912_s8 + $0x384] ss:$48 sps:$4 sm:$0xff]  }
 0x533   : > { %4433 = vmatpush1.bf16.msra.mxu1 %v5983_v34  ;;  %4645 = vmatpush1.bf16.msra.mxu0 %v5986_v36  ;;  %v6076_v34 = vld [vmem:[%s7912_s8 + $0x380] ss:$48 sps:$4 sm:$0xff]   ;;  %v6081_v36 = vld [vmem:[%s7912_s8 + $0x3e4] ss:$48 sps:$4 sm:$0xff]  }
 0x534   : > { %4434 = vmatprep.subr.bf16.mxu1 %v5991_v39  ;;  %4646 = vmatprep.subr.bf16.mxu0 %v5994_v44  ;;  %v6079_v39 = vld [vmem:[%s7912_s8 + $0x3e0] ss:$48 sps:$4 sm:$0xff]   ;;  %v6084_v44 = vld [vmem:[%s7912_s8 + $0x444] ss:$48 sps:$4 sm:$0xff]  }
 0x537   : > { %4435 = vmatpush1.bf16.msra.mxu1 %v5989_v50  ;;  %4647 = vmatpush1.bf16.msra.mxu0 %v5992_v40  ;;  %v6082_v50 = vld [vmem:[%s7912_s8 + $0x440] ss:$48 sps:$4 sm:$0xff]   ;;  %v6087_v40 = vld [vmem:[%s7912_s8 + $0x4a4] ss:$48 sps:$4 sm:$0xff]  }
 0x538   : > { %4436 = vmatprep.subr.bf16.mxu1 %v5997_v25  ;;  %4648 = vmatprep.subr.bf16.mxu0 %v6000_v61  ;;  %v6085_v25 = vld [vmem:[%s7912_s8 + $0x4a0] ss:$48 sps:$4 sm:$0xff]   ;;  %v6090_v61 = vld [vmem:[%s7912_s8 + $0x504] ss:$48 sps:$4 sm:$0xff]  }
 0x53b   : > { %4437 = vmatpush1.bf16.msra.mxu1 %v5995_v62  ;;  %4649 = vmatpush1.bf16.msra.mxu0 %v5998_v42  ;;  %v6088_v62 = vld [vmem:[%s7912_s8 + $0x500] ss:$48 sps:$4 sm:$0xff]   ;;  %v6093_v42 = vld [vmem:[%s7912_s8 + $0x564] ss:$48 sps:$4 sm:$0xff]  }
 0x53c   : > { %4459 = vmatprep.subr.bf16.mxu1 %v6003_v0  ;;  %v6091_v0 = vld [vmem:[%s7912_s8 + $0x560] ss:$48 sps:$4 sm:$0xff]  }
 0x53e   : > { %4439 = vmatmul.mubr.bf16.vlgmr.msra.gmra.mrb[44].mxu1 %v7389_v13  ;;  %4651 = vmatmul.mubr.bf16.vlgmr.msra.gmra.mrb[136].mxu0 %v7389_v13 }
 0x53f   : > { %4448 = vmatprep.mubr.bf16.mxu1 %v7394_v8  ;;  %4460 = vmatpush1.bf16.msra.mxu1 %v6001_v19  ;;  %v6096_v19 = vld [vmem:[%s7912_s8 + $0x5c4] ss:$48 sps:$4 sm:$0xff]  }
 0x540   : > { %4660 = vmatprep.mubr.bf16.mxu0 %v7394_v8  ;;  %4461 = vmatprep.subr.bf16.mxu1 %v6006_v37  ;;  %v6094_v37 = vld [vmem:[%s7912_s8 + $0x5c0] ss:$48 sps:$4 sm:$0xff]  }
 0x543   : > { %4462 = vmatpush1.bf16.msra.mxu1 %v6004_v46  ;;  %v3333_v46 = vlaneseq }
 0x544   : > { %4463 = vmatprep.subr.bf16.mxu1 %v6009_v7 }
 0x545   : > { %v7785_v7 = vshrl.u32 %v3333_v46, 7 }
 0x546   : > { %4449 = vmatmul.mubr.bf16.gmra.mrb[48].mxu1 %v7417_v10  ;;  %4661 = vmatmul.mubr.bf16.gmra.mrb[140].mxu0 %v7417_v10 }
 0x547   : > { %4464 = vmatpush1.bf16.msra.mxu1 %v6007_v9  ;;  %4491 = vmatprep.mubr.bf16.mxu1 %v7369_v51  ;;  %v3335_v9 = vsub.s32 0, %v7785_v7 }
 0x548   : > { %4465 = vmatprep.subr.bf16.mxu1 %v6012_v56  ;;  %v3359_v56 = vsub.s32 6, %v7785_v7 }
 0x54b   : > { %4466 = vmatpush1.bf16.msra.mxu1 %v6010_v2  ;;  %v7792_v2 = vld [vmem:[%s7913_s9] sm:$0xff] }
 0x54c   : > { %4467 = vmatprep.subr.bf16.mxu1 %v6015_v28  ;;  %v3339_v28 = vsub.s32 1, %v7785_v7 }
 0x54f   : > { %4468 = vmatpush1.bf16.msra.mxu1 %v6013_v52  ;;  %v3340_v52 = vrot.slane %v7792_v2, %v3339_v28 }
 0x550   : > { %4469 = vmatprep.subr.bf16.mxu1 %v6018_v4 }
 0x553   : > { %4470 = vmatpush1.bf16.msra.mxu1 %v6016_v43 }
 0x554   : > { %4471 = vmatprep.subr.bf16.mxu1 %v6021_v1 }
 0x557   : > { %4472 = vmatpush1.bf16.msra.mxu1 %v6019_v11 }
 0x558   : > { %4473 = vmatprep.subr.bf16.mxu1 %v6024_v57 }
 0x55b   : > { %4474 = vmatpush1.bf16.msra.mxu1 %v6022_v12 }
 0x55c   : > { %4475 = vmatprep.subr.bf16.mxu1 %v6027_v59 }
 0x55f   : > { %4476 = vmatpush1.bf16.msra.mxu1 %v6025_v5 }
 0x560   : > { %4477 = vmatprep.subr.bf16.mxu1 %v6030_v58 }
 0x563   : > { %4478 = vmatpush1.bf16.msra.mxu1 %v6028_v48 }
 0x564   : > { %4479 = vmatprep.subr.bf16.mxu1 %v6033_v41 }
 0x567   : > { %4480 = vmatpush1.bf16.msra.mxu1 %v6031_v47 }
 0x568   : > { %4481 = vmatprep.subr.bf16.mxu1 %v6036_v20 }
 0x56b   : > { %4482 = vmatpush1.bf16.msra.mxu1 %v6034_v30 }
 0x56c   : > { %4483 = vmatprep.subr.bf16.mxu1 %v6039_v18 }
 0x56f   : > { %4484 = vmatpush1.bf16.msra.mxu1 %v6037_v60 }
 0x570   : > { %4485 = vmatprep.subr.bf16.mxu1 %v6042_v23 }
 0x573   : > { %4486 = vmatpush1.bf16.msra.mxu1 %v6040_v63 }
 0x574   : > { %4487 = vmatprep.subr.bf16.mxu1 %v6045_v53 }
 0x577   : > { %4488 = vmatpush1.bf16.msra.mxu1 %v6043_v24 }
 0x578   : > { %4489 = vmatprep.subr.bf16.mxu1 %v6048_v6 }
 0x57b   : > { %4490 = vmatpush1.bf16.msra.mxu1 %v6046_v21 }
 0x57c   : > { %4565 = vmatprep.subr.bf16.mxu1 %v6051_v31 }
 0x57e   : > { %4492 = vmatmul.mubr.bf16.vlgmr.msra.gmra.mrb[52].mxu1 %v7389_v13 }
 0x57f   : > { %4501 = vmatprep.mubr.bf16.mxu1 %v7394_v8  ;;  %4566 = vmatpush1.bf16.msra.mxu1 %v6049_v15 }
 0x580   : > { %4567 = vmatprep.subr.bf16.mxu1 %v6054_v16 }
 0x583   : > { %4568 = vmatpush1.bf16.msra.mxu1 %v6052_v35 }
 0x584   : > { %4569 = vmatprep.subr.bf16.mxu1 %v6057_v29 }
 0x586   : > { %4502 = vmatmul.mubr.bf16.gmra.mrb[56].mxu1 %v7417_v10 }
 0x587   : > { %4570 = vmatpush1.bf16.msra.mxu1 %v6055_v55  ;;  %4597 = vmatprep.mubr.bf16.mxu1 %v7369_v51  ;;  %v6064_v51 = vld [vmem:[%s7912_s8 + $0x200] ss:$48 sps:$4 sm:$0xff]  }
 0x588   : > { %4571 = vmatprep.subr.bf16.mxu1 %v6060_v22 }
 0x58b   : > { %4572 = vmatpush1.bf16.msra.mxu1 %v6058_v14 }
 0x58c   : > { %4573 = vmatprep.subr.bf16.mxu1 %v6063_v45 }
 0x58f   : > { %4574 = vmatpush1.bf16.msra.mxu1 %v6061_v26 }
 0x590   : > { %4575 = vmatprep.subr.bf16.mxu1 %v6066_v3 }
 0x593   : > { %4576 = vmatpush1.bf16.msra.mxu1 %v6064_v51 }
 0x594   : > { %4577 = vmatprep.subr.bf16.mxu1 %v6069_v27 }
 0x597   : > { %4578 = vmatpush1.bf16.msra.mxu1 %v6067_v17 }
 0x598   : > { %4579 = vmatprep.subr.bf16.mxu1 %v6072_v49 }
 0x59b   : > { %4580 = vmatpush1.bf16.msra.mxu1 %v6070_v54 }
 0x59c   : > { %4581 = vmatprep.subr.bf16.mxu1 %v6075_v32 }
 0x59f   : > { %4582 = vmatpush1.bf16.msra.mxu1 %v6073_v38 }
 0x5a0   : > { %4583 = vmatprep.subr.bf16.mxu1 %v6078_v33 }
 0x5a3   : > { %4584 = vmatpush1.bf16.msra.mxu1 %v6076_v34  ;;  %v3343_v34 = vsub.s32 2, %v7785_v7 }
 0x5a4   : > { %4585 = vmatprep.subr.bf16.mxu1 %v6081_v36  ;;  %v7819_v36 = vld [vmem:[%s7913_s9 + $0x8] sm:$0xf] }
 0x5a7   : > { %4586 = vmatpush1.bf16.msra.mxu1 %v6079_v39  ;;  %v3347_v39 = vsub.s32 3, %v7785_v7 }
 0x5a8   : > { %4587 = vmatprep.subr.bf16.mxu1 %v6084_v44  ;;  %v3344_v44 = vrot.slane %v7792_v2, %v3343_v34 }
 0x5ab   : > { %4588 = vmatpush1.bf16.msra.mxu1 %v6082_v50  ;;  %v3376_v50 = vrot.slane %v7819_v36, %v3343_v34 }
 0x5ac   : > { %4589 = vmatprep.subr.bf16.mxu1 %v6087_v40  ;;  %v3348_v40 = vrot.slane %v7792_v2, %v3347_v39 }
 0x5af   : > { %4590 = vmatpush1.bf16.msra.mxu1 %v6085_v25  ;;  %v3380_v25 = vrot.slane %v7819_v36, %v3347_v39 }
 0x5b0   : > { %4591 = vmatprep.subr.bf16.mxu1 %v6090_v61 }
 0x5b3   : > { %4592 = vmatpush1.bf16.msra.mxu1 %v6088_v62 }
 0x5b4   : > { %4593 = vmatprep.subr.bf16.mxu1 %v6093_v42 }
 0x5b7   : > { %4594 = vmatpush1.bf16.msra.mxu1 %v6091_v0 }
 0x5b8   : > { %4595 = vmatprep.subr.bf16.mxu1 %v6096_v19 }
 0x5bb   : > { %4596 = vmatpush1.bf16.msra.mxu1 %v6094_v37 }
 0x5be   : > { %4598 = vmatmul.mubr.bf16.vlgmr.msra.gmra.mrb[60].mxu1 %v7389_v13  ;;  %v3363_v13 = vsub.s32 7, %v7785_v7 }
 0x5bf   : > { %4607 = vmatprep.mubr.bf16.mxu1 %v7394_v8  ;;  %v3336_v8 = vrot.slane %v7792_v2, %v3335_v9 }
 0x5c0   : > { %v3364_v4 = vrot.slane %v7792_v2, %v3363_v13 }
 0x5c6   : > { %4608 = vmatmul.mubr.bf16.gmra.mrb[64].mxu1 %v7417_v10  ;;  %v3360_v10 = vrot.slane %v7792_v2, %v3359_v56 }
 0x5d1   : > { %v4387_v43 = vpop.f32.mrb[36].mxu1  ;;  %v4546_v1 = vpop.f32.mrb[128].mxu0 }
 0x5d2   : > { %v4388_v11 = vadd.f32 %v4387_v43, %v3336_v8  ;;  %v4547_v57 = vadd.f32 %v4546_v1, %v3360_v10  ;;  %v4389_v12 = vpop.f32.mrb[37].mxu1  ;;  %v4548_v59 = vpop.f32.mrb[129].mxu0 }
 0x5d3   : > { %v4390_v5 = vadd.f32 %v4389_v12, %v3340_v52  ;;  %v4549_v58 = vadd.f32 %v4548_v59, %v3364_v4  ;;  %v4391_v48 = vpop.f32.mrb[38].mxu1  ;;  %v4550_v41 = vpop.f32.mrb[130].mxu0 }
 0x5d4   : > { %v4392_v47 = vadd.f32 %v4391_v48, %v3336_v8  ;;  %v4551_v20 = vadd.f32 %v4550_v41, %v3360_v10  ;;  %v4393_v30 = vpop.f32.mrb[39].mxu1  ;;  %v4552_v18 = vpop.f32.mrb[131].mxu0 }
 0x5d5   : > { %v5352_v60 = vpack.c.bf16 %v4390_v5, %v4388_v11  ;;  %v5355_v23 = vpack.c.bf16 %v4549_v58, %v4547_v57  ;;  %v4394_v63 = vadd.f32 %v4393_v30, %v3340_v52  ;;  %v4553_v53 = vadd.f32 %v4552_v18, %v3364_v4 }
 0x5d7   : > { %4815 = vst [vmem:[%s7805_s12] sm:$0xff] %v5352_v60  ;;  %4818 = vst [vmem:[%s7805_s12 + $0x18] sm:$0xff] %v5355_v23  ;;  %v5358_v24 = vpack.c.bf16 %v4394_v63, %v4392_v47  ;;  %v5361_v6 = vpack.c.bf16 %v4553_v53, %v4551_v20 }
 0x5d9   : > { %4821 = vst [vmem:[%s7805_s12 + $0x30] sm:$0xff] %v5358_v24  ;;  %4824 = vst [vmem:[%s7805_s12 + $0x48] sm:$0xff] %v5361_v6  ;;  %v4397_v21 = vpop.f32.mrb[40].mxu1  ;;  %v4556_v31 = vpop.f32.mrb[132].mxu0 }
 0x5da   : > { %v4398_v15 = vadd.f32 %v4397_v21, %v3336_v8  ;;  %v4557_v16 = vadd.f32 %v4556_v31, %v3360_v10  ;;  %v4399_v35 = vpop.f32.mrb[41].mxu1  ;;  %v4558_v29 = vpop.f32.mrb[133].mxu0 }
 0x5db   : > { %v4400_v55 = vadd.f32 %v4399_v35, %v3340_v52  ;;  %v4559_v22 = vadd.f32 %v4558_v29, %v3364_v4  ;;  %v4401_v14 = vpop.f32.mrb[42].mxu1  ;;  %v4560_v45 = vpop.f32.mrb[134].mxu0 }
 0x5dc   : > { %v4402_v26 = vadd.f32 %v4401_v14, %v3336_v8  ;;  %v4561_v3 = vadd.f32 %v4560_v45, %v3360_v10  ;;  %v4403_v51 = vpop.f32.mrb[43].mxu1  ;;  %v4562_v27 = vpop.f32.mrb[135].mxu0  ;;  %v3355_v14 = vsub.s32 5, %v7785_v7 }
 0x5dd   : > { %v5364_v17 = vpack.c.bf16 %v4400_v55, %v4398_v15  ;;  %v5367_v49 = vpack.c.bf16 %v4559_v22, %v4557_v16  ;;  %v4404_v54 = vadd.f32 %v4403_v51, %v3340_v52  ;;  %v4563_v32 = vadd.f32 %v4562_v27, %v3364_v4 }
 0x5de   : > { %v3351_v22 = vsub.s32 4, %v7785_v7 }
 0x5df   : > { %4827 = vst [vmem:[%s7805_s12 + $0x60] sm:$0xff] %v5364_v17  ;;  %4830 = vst [vmem:[%s7805_s12 + $0x78] sm:$0xff] %v5367_v49  ;;  %v5370_v38 = vpack.c.bf16 %v4404_v54, %v4402_v26  ;;  %v5373_v33 = vpack.c.bf16 %v4563_v32, %v4561_v3  ;;  %v3356_v26 = vrot.slane %v7792_v2, %v3355_v14 }
 0x5e0   : > { %v3352_v45 = vrot.slane %v7792_v2, %v3351_v22 }
 0x5e1   : > { %4833 = vst [vmem:[%s7805_s12 + $0x90] sm:$0xff] %v5370_v38  ;;  %4836 = vst [vmem:[%s7805_s12 + $0xa8] sm:$0xff] %v5373_v33 }
 0x611   : > { %v4440_v61 = vpop.f32.mrb[44].mxu1  ;;  %v4652_v62 = vpop.f32.mrb[136].mxu0 }
 0x612   : > { %v4441_v42 = vadd.f32 %v4440_v61, %v3344_v44  ;;  %v4653_v0 = vadd.f32 %v4652_v62, %v3376_v50  ;;  %v4442_v19 = vpop.f32.mrb[45].mxu1  ;;  %v4654_v37 = vpop.f32.mrb[137].mxu0 }
 0x613   : > { %v4443_v46 = vadd.f32 %v4442_v19, %v3348_v40  ;;  %v4655_v56 = vadd.f32 %v4654_v37, %v3380_v25  ;;  %v4444_v13 = vpop.f32.mrb[46].mxu1  ;;  %v4656_v8 = vpop.f32.mrb[138].mxu0  ;;  %v3368_v19 = vrot.slane %v7819_v36, %v3335_v9  ;;  %v3372_v37 = vrot.slane %v7819_v36, %v3339_v28 }
 0x614   : > { %v4445_v10 = vadd.f32 %v4444_v13, %v3344_v44  ;;  %v4657_v52 = vadd.f32 %v4656_v8, %v3376_v50  ;;  %v4446_v4 = vpop.f32.mrb[47].mxu1  ;;  %v4658_v43 = vpop.f32.mrb[139].mxu0 }
 0x615   : > { %v5353_v1 = vpack.c.bf16 %v4443_v46, %v4441_v42  ;;  %v5357_v11 = vpack.c.bf16 %v4655_v56, %v4653_v0  ;;  %v4447_v57 = vadd.f32 %v4446_v4, %v3348_v40  ;;  %v4659_v12 = vadd.f32 %v4658_v43, %v3380_v25 }
 0x617   : > { %4816 = vst [vmem:[%s7805_s12 + $0x8] sm:$0xff] %v5353_v1  ;;  %4820 = vst [vmem:[%s7805_s12 + $0x28] sm:$0xff] %v5357_v11  ;;  %v5359_v59 = vpack.c.bf16 %v4447_v57, %v4445_v10  ;;  %v5363_v5 = vpack.c.bf16 %v4659_v12, %v4657_v52 }
 0x619   : > { %4822 = vst [vmem:[%s7805_s12 + $0x38] sm:$0xff] %v5359_v59  ;;  %4826 = vst [vmem:[%s7805_s12 + $0x58] sm:$0xff] %v5363_v5  ;;  %v4450_v58 = vpop.f32.mrb[48].mxu1  ;;  %v4662_v48 = vpop.f32.mrb[140].mxu0 }
 0x61a   : > { %v4451_v41 = vadd.f32 %v4450_v58, %v3344_v44  ;;  %v4663_v47 = vadd.f32 %v4662_v48, %v3376_v50  ;;  %v4452_v20 = vpop.f32.mrb[49].mxu1  ;;  %v4664_v30 = vpop.f32.mrb[141].mxu0 }
 0x61b   : > { %v4453_v18 = vadd.f32 %v4452_v20, %v3348_v40  ;;  %v4665_v60 = vadd.f32 %v4664_v30, %v3380_v25  ;;  %v4454_v23 = vpop.f32.mrb[50].mxu1  ;;  %v4666_v63 = vpop.f32.mrb[142].mxu0 }
 0x61c   : > { %v4455_v53 = vadd.f32 %v4454_v23, %v3344_v44  ;;  %v4667_v24 = vadd.f32 %v4666_v63, %v3376_v50  ;;  %v4456_v6 = vpop.f32.mrb[51].mxu1  ;;  %v4668_v21 = vpop.f32.mrb[143].mxu0 }
 0x61d   : > { %v5365_v31 = vpack.c.bf16 %v4453_v18, %v4451_v41  ;;  %v5369_v15 = vpack.c.bf16 %v4665_v60, %v4663_v47  ;;  %v4457_v16 = vadd.f32 %v4456_v6, %v3348_v40  ;;  %v4669_v35 = vadd.f32 %v4668_v21, %v3380_v25 }
 0x61f   : > { %4828 = vst [vmem:[%s7805_s12 + $0x68] sm:$0xff] %v5365_v31  ;;  %4832 = vst [vmem:[%s7805_s12 + $0x88] sm:$0xff] %v5369_v15  ;;  %v5371_v29 = vpack.c.bf16 %v4457_v16, %v4455_v53  ;;  %v5375_v55 = vpack.c.bf16 %v4669_v35, %v4667_v24 }
 0x621   : > { %4834 = vst [vmem:[%s7805_s12 + $0x98] sm:$0xff] %v5371_v29  ;;  %4838 = vst [vmem:[%s7805_s12 + $0xb8] sm:$0xff] %v5375_v55 }
 0x651   : > { %v4493_v3 = vpop.f32.mrb[52].mxu1 }
 0x652   : > { %v4494_v51 = vadd.f32 %v4493_v3, %v3352_v45  ;;  %v4495_v27 = vpop.f32.mrb[53].mxu1 }
 0x653   : > { %v4496_v17 = vadd.f32 %v4495_v27, %v3356_v26  ;;  %v4497_v49 = vpop.f32.mrb[54].mxu1 }
 0x654   : > { %v4498_v54 = vadd.f32 %v4497_v49, %v3352_v45  ;;  %v4499_v32 = vpop.f32.mrb[55].mxu1 }
 0x655   : > { %v5354_v38 = vpack.c.bf16 %v4496_v17, %v4494_v51  ;;  %v4500_v33 = vadd.f32 %v4499_v32, %v3356_v26 }
 0x657   : > { %4817 = vst [vmem:[%s7805_s12 + $0x10] sm:$0xff] %v5354_v38  ;;  %v5360_v34 = vpack.c.bf16 %v4500_v33, %v4498_v54 }
 0x659   : > { %4823 = vst [vmem:[%s7805_s12 + $0x40] sm:$0xff] %v5360_v34  ;;  %v4503_v39 = vpop.f32.mrb[56].mxu1 }
 0x65a   : > { %v4504_v44 = vadd.f32 %v4503_v39, %v3352_v45  ;;  %v4505_v50 = vpop.f32.mrb[57].mxu1 }
 0x65b   : > { %v4506_v40 = vadd.f32 %v4505_v50, %v3356_v26  ;;  %v4507_v25 = vpop.f32.mrb[58].mxu1 }
 0x65c   : > { %v4508_v2 = vadd.f32 %v4507_v25, %v3352_v45  ;;  %v4509_v61 = vpop.f32.mrb[59].mxu1 }
 0x65d   : > { %v5366_v62 = vpack.c.bf16 %v4506_v40, %v4504_v44  ;;  %v4510_v42 = vadd.f32 %v4509_v61, %v3356_v26 }
 0x65f   : > { %4829 = vst [vmem:[%s7805_s12 + $0x70] sm:$0xff] %v5366_v62  ;;  %v5372_v0 = vpack.c.bf16 %v4510_v42, %v4508_v2 }
 0x661   : > { %4835 = vst [vmem:[%s7805_s12 + $0xa0] sm:$0xff] %v5372_v0 }
 0x691   : > { %v4599_v46 = vpop.f32.mrb[60].mxu1 }
 0x692   : > { %v4600_v56 = vadd.f32 %v4599_v46, %v3368_v19  ;;  %v4601_v13 = vpop.f32.mrb[61].mxu1 }
 0x693   : > { %v4602_v8 = vadd.f32 %v4601_v13, %v3372_v37  ;;  %v4603_v10 = vpop.f32.mrb[62].mxu1 }
 0x694   : > { %v4604_v52 = vadd.f32 %v4603_v10, %v3368_v19  ;;  %v4605_v4 = vpop.f32.mrb[63].mxu1 }
 0x695   : > { %v5356_v43 = vpack.c.bf16 %v4602_v8, %v4600_v56  ;;  %v4606_v1 = vadd.f32 %v4605_v4, %v3372_v37 }
 0x697   : > { %4819 = vst [vmem:[%s7805_s12 + $0x20] sm:$0xff] %v5356_v43  ;;  %v5362_v11 = vpack.c.bf16 %v4606_v1, %v4604_v52 }
 0x699   : > { %4825 = vst [vmem:[%s7805_s12 + $0x50] sm:$0xff] %v5362_v11  ;;  %v4609_v9 = vpop.f32.mrb[64].mxu1 }
 0x69a   : > { %v4610_v7 = vadd.f32 %v4609_v9, %v3368_v19  ;;  %v4611_v28 = vpop.f32.mrb[65].mxu1 }
 0x69b   : > { %v4612_v36 = vadd.f32 %v4611_v28, %v3372_v37  ;;  %v4613_v57 = vpop.f32.mrb[66].mxu1 }
 0x69c   : > { %v4614_v12 = vadd.f32 %v4613_v57, %v3368_v19  ;;  %v4615_v59 = vpop.f32.mrb[67].mxu1 }
 0x69d   : > { %v5368_v5 = vpack.c.bf16 %v4612_v36, %v4610_v7  ;;  %v4616_v58 = vadd.f32 %v4615_v59, %v3372_v37 }
 0x69f   : > { %4831 = vst [vmem:[%s7805_s12 + $0x80] sm:$0xff] %v5368_v5  ;;  %v5374_v48 = vpack.c.bf16 %v4616_v58, %v4614_v12 }
 0x6a1   : > { %4837 = vst [vmem:[%s7805_s12 + $0xb0] sm:$0xff] %v5374_v48 }
 0x6a2   : > { %6139 = shalt.err (!%p6136_p12)
}
 0x6a3   : > { %s6140_s12 = scalar_lea.hbm %s7855_s28, 3072  ;;  %s6144_s18 = scalar_lea.hbm %s7914_s10, 6144 }
 0x6a4   : > { %p6141_p13 = scmp.ne.s32.totalorder %s7855_s28, %s6140_s12  ;;  %p6145_p0 = scmp.lt.u32.totalorder %s7855_s28, %s7914_s10 }
 0x6a5   : > { %p6146_p3 = scmp.lt.u32.totalorder %s6144_s18, %s6140_s12  ;;  %p6148_p5 = scmp.lt.u32.totalorder %s6140_s12, %s7855_s28 }
 0x6a6   : > { %p6142_p1 = pnand %p6141_p13, %p7926_p6 }
 0x6a7   : > { %p6147_p4 = por %p6146_p3, %p6145_p0 }
 0x6a8   : > { %p6143_p2 = pneg %p6142_p1 }
 0x6a9   : > { %p6149_p9 = por %p6148_p5, %p6147_p4 }
 0x6ab   : > { %p6150_p10 = pnand %p6149_p9, %p6143_p2 }
 0x6ad   : > { %6153 = shalt.err (!%p6150_p10)
}
 0x6ae   : > { %s6203_s29 = smov 768  }
 0x6af   : > { %5671 = dma.vmem_to_hbm [thread:$0]  (%p7926_p6), %s7858_s22, 3072, %s7855_s28, %s4840_s17, %s6203_s29, %s6203_s29, %s6199_s24  }
 0x6b0 PF: > { %s4869_s30 = sand.u32 1, %s6180_s13   ;;  %p7927_p11 = scmp.ne.s32.totalorder %s7924_s26, 0 }
 0x6b1   : > { %p7928_p7 = scmp.ge.s32.totalorder %s6192_s16, 2  ;;  %s4870_s20 = scalar_lea.sflag [#allocation5], %s4869_s30 }
 0x6b3   : > { %p5674_p8 = pnand %p7928_p7, %p7927_p11 }
 0x6b5   : > { %6175 = dma.done.wait (!%p5674_p8), %s4870_s20, 3072  }
 0x6b6   : > { %6177 = vsyncadd (!%p5674_p8), %s4870_s20, 4294964224  ;;  %s7929_s25 = sld [smem:[#allocation9_spill]]  ;;  %s7930_s15 = sld [smem:[#allocation10_spill]] }
 0x6b7   : > { %p23_p12 = scmp.ge.s32.totalorder %s6284_s19, 4   ;;  %s7931_s13 = smov %s6184_s14 }
 0x6b8   : > { %s7933_s16 = smov %s6284_s19 }
 0x6b9   :  { %25 = sbr.rel (!%p23_p12) target bundleno = 7 (0x7), region = 154 }
 0x6bc   : > { %s7932_s14 = smov %s7929_s25 }
 0x6c0   :  { %4875 = vsyncpa [#allocation4], 1 }
 0x6c1   :  { %4877 = vsyncpa [#allocation4 + $0x1], 1 }
 0x6c2   :  { %4878 = vsyncpa [#allocation5], 1 }
 0x6c3   :  { %4880 = vsyncpa [#allocation5 + $0x1], 1 }

</bundles_post_ra>
